<compile_context>
chip_gen: v7x
topology: tpu7x:2x2x1
jax: 0.10.0
libtpu: 0.0.40
codegen_flags: <defaults>
</compile_context>

<pallas_src>
from collections import namedtuple

import numpy as np
import jax
import jax.numpy as jnp
from jax.experimental import pallas as pl
from jax.experimental.pallas import tpu as pltpu

_KS = (5, 5, 3, 3)
_CH = (1, 8, 16, 32, 32)
_BN_EPS = 1e-5

Geom = namedtuple("Geom", "H W K p Hp Wp Np NG NF")


def _geometry(H, W):
    g = []
    h, w = H, W
    for K in _KS:
        p = K // 2
        Hp, Wp = h + 2 * p, w + 2 * p
        Np = Hp * Wp                      # flat length of the padded image
        NG = Np + Wp + 1                  # conv-output length incl. pooling-shift tail
        NF = Np + K * (Wp + 1)            # padded-input length incl. conv-shift tail
        g.append(Geom(h, w, K, p, Hp, Wp, Np, NG, NF))
        h, w = h // 2, w // 2
    return g, (h, w)


def _pool_select_matrix(gl, gn):
    """0/1 matrix that gathers the 2x2-maxpool anchors of layer l and scatters
    them into the zero-padded flat layout of layer l+1 (pad/tail columns stay 0)."""
    S = np.zeros((gl.Np, gn.NF), np.float32)
    for io in range(gl.H // 2):
        for jo in range(gl.W // 2):
            q_src = (2 * io) * gl.Wp + (2 * jo)
            q_dst = (io + gn.p) * gn.Wp + (jo + gn.p)
            S[q_src, q_dst] = 1.0
    return jnp.asarray(S)


def _make_kernel(geom, n_cls):
    g1, g2, g3, g4 = geom

    def conv1(F, w):                      # F: (1, NF1) f32, w: (Cout, K*K) f32 (Cin == 1)
        acc = jnp.zeros((w.shape[0], g1.NG), jnp.float32)
        for ki in range(g1.K):
            for kj in range(g1.K):
                s = ki * g1.K + kj
                d = ki * g1.Wp + kj
                acc = acc + w[:, s:s + 1] * F[:, d:d + g1.NG]
        return acc

    def conv(F, w_all, g):                # F: (Cin, NF) bf16, w_all: (K*K, Cout, Cin) bf16
        cout = w_all.shape[1]
        acc = jnp.zeros((cout, g.NG), jnp.float32)
        for ki in range(g.K):
            for kj in range(g.K):
                s = ki * g.K + kj
                d = ki * g.Wp + kj
                acc = acc + jnp.dot(w_all[s], F[:, d:d + g.NG],
                                    preferred_element_type=jnp.float32)
        return acc

    def bn_relu_pool(G, scale, bias, g):
        a = jnp.maximum(G * scale + bias, 0.0)                         # folded BN + ReLU (f32)
        cm = jnp.maximum(a[:, 0:g.Np + g.Wp], a[:, 1:g.Np + g.Wp + 1])  # max over j, j+1
        rm = jnp.maximum(cm[:, 0:g.Np], cm[:, g.Wp:g.Np + g.Wp])        # max over i, i+1
        return rm                                                       # anchors at 2i*Wp+2j

    def kernel(x_ref,
               w1_ref, sc1_ref, bi1_ref, s1_ref,
               w2_ref, sc2_ref, bi2_ref, s2_ref,
               w3_ref, sc3_ref, bi3_ref, s3_ref,
               w4_ref, sc4_ref, bi4_ref,
               fc1w_ref, fc1b_ref, fc2w_ref, fc2b_ref,
               o_ref):
        F1 = x_ref[0]                                                   # (1, NF1) f32
        rm1 = bn_relu_pool(conv1(F1, w1_ref[...]), sc1_ref[...], bi1_ref[...], g1)
        F2 = jnp.dot(rm1, s1_ref[...],
                     preferred_element_type=jnp.float32).astype(jnp.bfloat16)
        rm2 = bn_relu_pool(conv(F2, w2_ref[...], g2), sc2_ref[...], bi2_ref[...], g2)
        F3 = jnp.dot(rm2, s2_ref[...],
                     preferred_element_type=jnp.float32).astype(jnp.bfloat16)
        rm3 = bn_relu_pool(conv(F3, w3_ref[...], g3), sc3_ref[...], bi3_ref[...], g3)
        F4 = jnp.dot(rm3, s3_ref[...],
                     preferred_element_type=jnp.float32).astype(jnp.bfloat16)
        rm4 = bn_relu_pool(conv(F4, w4_ref[...], g4), sc4_ref[...], bi4_ref[...], g4)

        # Head: final feature map is 1x1 so the feature vector is rm4[:, 0].
        # Columns 1..7 are dead lanes kept only so no MXU dot has a dim < 8.
        feat = rm4[:, 0:8].astype(jnp.bfloat16)                         # (32, 8)
        h = jnp.dot(fc1w_ref[...], feat,
                    preferred_element_type=jnp.float32) + fc1b_ref[...]
        h = jnp.maximum(h, 0.0).astype(jnp.bfloat16)                    # (64, 8)
        logits = jnp.dot(fc2w_ref[...], h,
                         preferred_element_type=jnp.float32) + fc2b_ref[...]
        o_ref[0] = logits[0:n_cls, 0:1]                                 # (n_cls, 1)

    return kernel


def _pack_operands(params, geom):
    """Fold BN into scale/bias, rearrange weights for the shift-matmul form and
    build the pooling selection matrices (constant-folded by XLA under jit)."""
    ops = []
    for l, g in enumerate(geom):
        c = params["convs"][l]
        cout, cin = c["w"].shape[0], c["w"].shape[1]
        scale = c["gamma"] / jnp.sqrt(c["var"] + _BN_EPS)
        bias = c["beta"] + (c["b"] - c["mean"]) * scale
        if l == 0:                                                    # Cin == 1: VPU path
            w = c["w"].reshape(cout, g.K * g.K).astype(jnp.float32)   # (Cout, K*K)
        else:                                                         # MXU path (bf16)
            w = jnp.transpose(c["w"], (2, 3, 0, 1)).reshape(
                g.K * g.K, cout, cin).astype(jnp.bfloat16)            # (K*K, Cout, Cin)
        ops += [w,
                scale.reshape(cout, 1).astype(jnp.float32),
                bias.reshape(cout, 1).astype(jnp.float32)]
        if l < len(geom) - 1:
            ops.append(_pool_select_matrix(g, geom[l + 1]))
    n_cls = params["fc2_w"].shape[0]
    n_pad = max(8, n_cls)                                             # keep dot M >= 8
    fc2w = jnp.zeros((n_pad, params["fc2_w"].shape[1]), jnp.float32)
    fc2w = fc2w.at[:n_cls].set(params["fc2_w"])
    fc2b = jnp.zeros((n_pad, 1), jnp.float32).at[:n_cls, 0].set(params["fc2_b"])
    ops += [params["fc1_w"].astype(jnp.bfloat16),
            params["fc1_b"].reshape(-1, 1).astype(jnp.float32),
            fc2w.astype(jnp.bfloat16),
            fc2b]
    return ops, n_cls


def original_cnn_forward(x, params):
    B, Cin, H, W = x.shape
    assert Cin == 1, "OriginalCNN takes single-channel input"
    geom, (hf, wf) = _geometry(H, W)
    # TODO(synk): generalize the head to hf*wf > 1 (multi-anchor gather +
    # channel-major flatten); with a 16x16 input the final map is 1x1.
    assert hf == 1 and wf == 1, "this kernel expects a 16x16 input"

    g1 = geom[0]
    # Host prep: zero-pad and flatten each image (cheap, no 9x/25x inflation).
    xp = jnp.pad(x[:, 0].astype(jnp.float32),
                 ((0, 0), (g1.p, g1.p), (g1.p, g1.p)))                # (B, Hp, Wp)
    xf = xp.reshape(B, 1, g1.Np)
    xf = jnp.pad(xf, ((0, 0), (0, 0), (0, g1.NF - g1.Np)))            # (B, 1, NF1)

    ops, n_cls = _pack_operands(params, geom)
    kernel = _make_kernel(geom, n_cls)

    def _const_spec(a):
        nd = a.ndim
        return pl.BlockSpec(a.shape, lambda b: (0,) * nd)

    in_specs = [pl.BlockSpec((1, 1, g1.NF), lambda b: (b, 0, 0))]
    in_specs += [_const_spec(a) for a in ops]

    out = pl.pallas_call(
        kernel,
        out_shape=jax.ShapeDtypeStruct((B, n_cls, 1), jnp.float32),
        grid=(B,),
        in_specs=in_specs,
        out_specs=pl.BlockSpec((1, n_cls, 1), lambda b: (b, 0, 0)),
        compiler_params=pltpu.CompilerParams(
            dimension_semantics=("parallel",),
            vmem_limit_bytes=32 * 1024 * 1024),
    )(xf, *ops)
    return out[:, :, 0]                                               # (B, n_cls)


def init_params(key, num_classes=5, input_hw=(16, 16)):
    params = {"convs": []}
    for i, K in enumerate(_KS):
        cin, cout = _CH[i], _CH[i + 1]
        key, k1, k2, k3, k4, k5, k6 = jax.random.split(key, 7)
        params["convs"].append(dict(
            w=0.1 * jax.random.normal(k1, (cout, cin, K, K), jnp.float32),
            b=0.1 * jax.random.normal(k2, (cout,), jnp.float32),
            gamma=1.0 + 0.1 * jax.random.normal(k3, (cout,), jnp.float32),
            beta=0.1 * jax.random.normal(k4, (cout,), jnp.float32),
            mean=0.1 * jax.random.normal(k5, (cout,), jnp.float32),
            var=1.0 + 0.1 * jax.random.uniform(k6, (cout,), jnp.float32),
        ))
    hf, wf = input_hw[0] // 16, input_hw[1] // 16
    feat_in = hf * wf * _CH[-1]
    key, k1, k2, k3, k4 = jax.random.split(key, 5)
    params["fc1_w"] = 0.1 * jax.random.normal(k1, (64, feat_in), jnp.float32)
    params["fc1_b"] = 0.1 * jax.random.normal(k2, (64,), jnp.float32)
    params["fc2_w"] = 0.1 * jax.random.normal(k3, (num_classes, 64), jnp.float32)
    params["fc2_b"] = 0.1 * jax.random.normal(k4, (num_classes,), jnp.float32)
    return params


if __name__ == "__main__":
    key = jax.random.PRNGKey(0)
    pkey, xkey = jax.random.split(key)
    params = init_params(pkey, num_classes=5, input_hw=(16, 16))
    x = jax.random.normal(xkey, (2, 1, 16, 16), jnp.float32)

    fwd = jax.jit(lambda inp: original_cnn_forward(inp, params))
    out = jax.block_until_ready(fwd(x))
    assert out.shape == (2, 5), out.shape
    assert bool(jnp.all(jnp.isfinite(out)))
    print("KERNEL_OK")
</pallas_src>

<mosaic_0001>
module attributes {stable_mosaic.version = 11 : i64} {
  func.func @kernel(%arg0: i32, %arg1: memref<1x1x505xf32, #tpu.memory_space<vmem>>, %arg2: memref<8x25xf32, #tpu.memory_space<vmem>>, %arg3: memref<8x1xf32, #tpu.memory_space<vmem>>, %arg4: memref<8x1xf32, #tpu.memory_space<vmem>>, %arg5: memref<400x209xf32, #tpu.memory_space<vmem>>, %arg6: memref<25x16x8xbf16, #tpu.memory_space<vmem>>, %arg7: memref<16x1xf32, #tpu.memory_space<vmem>>, %arg8: memref<16x1xf32, #tpu.memory_space<vmem>>, %arg9: memref<144x57xf32, #tpu.memory_space<vmem>>, %arg10: memref<9x32x16xbf16, #tpu.memory_space<vmem>>, %arg11: memref<32x1xf32, #tpu.memory_space<vmem>>, %arg12: memref<32x1xf32, #tpu.memory_space<vmem>>, %arg13: memref<36x31xf32, #tpu.memory_space<vmem>>, %arg14: memref<9x32x32xbf16, #tpu.memory_space<vmem>>, %arg15: memref<32x1xf32, #tpu.memory_space<vmem>>, %arg16: memref<32x1xf32, #tpu.memory_space<vmem>>, %arg17: memref<64x32xbf16, #tpu.memory_space<vmem>>, %arg18: memref<64x1xf32, #tpu.memory_space<vmem>>, %arg19: memref<8x64xbf16, #tpu.memory_space<vmem>>, %arg20: memref<8x1xf32, #tpu.memory_space<vmem>>, %arg21: memref<1x5x1xf32, #tpu.memory_space<vmem>>) attributes {dimension_semantics = [#tpu.dimension_semantics<parallel>], iteration_bounds = array<i64: 2>, scalar_prefetch = 0 : i64, scratch_operands = 0 : i64, tpu.core_type = #tpu.core_type<tc>, window_params = [{transform_indices = @transform_0, window_bounds = array<i64: 1, 1, 505>}, {pipeline_mode = #tpu.pipeline_mode<synchronous>, transform_indices = @transform_1, window_bounds = array<i64: 8, 25>}, {pipeline_mode = #tpu.pipeline_mode<synchronous>, transform_indices = @transform_2, window_bounds = array<i64: 8, 1>}, {pipeline_mode = #tpu.pipeline_mode<synchronous>, transform_indices = @transform_3, window_bounds = array<i64: 8, 1>}, {pipeline_mode = #tpu.pipeline_mode<synchronous>, transform_indices = @transform_4, window_bounds = array<i64: 400, 209>}, {pipeline_mode = #tpu.pipeline_mode<synchronous>, transform_indices = @transform_5, window_bounds = array<i64: 25, 16, 8>}, {pipeline_mode = #tpu.pipeline_mode<synchronous>, transform_indices = @transform_6, window_bounds = array<i64: 16, 1>}, {pipeline_mode = #tpu.pipeline_mode<synchronous>, transform_indices = @transform_7, window_bounds = array<i64: 16, 1>}, {pipeline_mode = #tpu.pipeline_mode<synchronous>, transform_indices = @transform_8, window_bounds = array<i64: 144, 57>}, {pipeline_mode = #tpu.pipeline_mode<synchronous>, transform_indices = @transform_9, window_bounds = array<i64: 9, 32, 16>}, {pipeline_mode = #tpu.pipeline_mode<synchronous>, transform_indices = @transform_10, window_bounds = array<i64: 32, 1>}, {pipeline_mode = #tpu.pipeline_mode<synchronous>, transform_indices = @transform_11, window_bounds = array<i64: 32, 1>}, {pipeline_mode = #tpu.pipeline_mode<synchronous>, transform_indices = @transform_12, window_bounds = array<i64: 36, 31>}, {pipeline_mode = #tpu.pipeline_mode<synchronous>, transform_indices = @transform_13, window_bounds = array<i64: 9, 32, 32>}, {pipeline_mode = #tpu.pipeline_mode<synchronous>, transform_indices = @transform_14, window_bounds = array<i64: 32, 1>}, {pipeline_mode = #tpu.pipeline_mode<synchronous>, transform_indices = @transform_15, window_bounds = array<i64: 32, 1>}, {pipeline_mode = #tpu.pipeline_mode<synchronous>, transform_indices = @transform_16, window_bounds = array<i64: 64, 32>}, {pipeline_mode = #tpu.pipeline_mode<synchronous>, transform_indices = @transform_17, window_bounds = array<i64: 64, 1>}, {pipeline_mode = #tpu.pipeline_mode<synchronous>, transform_indices = @transform_18, window_bounds = array<i64: 8, 64>}, {pipeline_mode = #tpu.pipeline_mode<synchronous>, transform_indices = @transform_19, window_bounds = array<i64: 8, 1>}, {transform_indices = @transform_20, window_bounds = array<i64: 1, 5, 1>}]} {
    %c0 = arith.constant 0 : index
    %c0_0 = arith.constant 0 : index
    %c0_1 = arith.constant 0 : index
    %0 = vector.load %arg1[%c0, %c0_0, %c0_1] : memref<1x1x505xf32, #tpu.memory_space<vmem>>, vector<1x1x505xf32>
    %1 = vector.shape_cast %0 : vector<1x1x505xf32> to vector<1x505xf32>
    %c0_2 = arith.constant 0 : index
    %c0_3 = arith.constant 0 : index
    %2 = vector.load %arg2[%c0_2, %c0_3] : memref<8x25xf32, #tpu.memory_space<vmem>>, vector<8x25xf32>
    %cst = arith.constant 0.000000e+00 : f32
    %3 = vector.broadcast %cst : f32 to vector<8x421xf32>
    %4 = vector.extract_strided_slice %2 {offsets = [0, 0], sizes = [8, 1], strides = [1, 1]} : vector<8x25xf32> to vector<8x1xf32>
    %5 = vector.extract_strided_slice %1 {offsets = [0, 0], sizes = [1, 421], strides = [1, 1]} : vector<1x505xf32> to vector<1x421xf32>
    %6 = vector.broadcast %4 : vector<8x1xf32> to vector<8x421xf32>
    %7 = vector.broadcast %5 : vector<1x421xf32> to vector<8x421xf32>
    %8 = arith.mulf %6, %7 : vector<8x421xf32>
    %9 = arith.addf %3, %8 : vector<8x421xf32>
    %10 = vector.extract_strided_slice %2 {offsets = [0, 1], sizes = [8, 1], strides = [1, 1]} : vector<8x25xf32> to vector<8x1xf32>
    %11 = vector.extract_strided_slice %1 {offsets = [0, 1], sizes = [1, 421], strides = [1, 1]} : vector<1x505xf32> to vector<1x421xf32>
    %12 = vector.broadcast %10 : vector<8x1xf32> to vector<8x421xf32>
    %13 = vector.broadcast %11 : vector<1x421xf32> to vector<8x421xf32>
    %14 = arith.mulf %12, %13 : vector<8x421xf32>
    %15 = arith.addf %9, %14 : vector<8x421xf32>
    %16 = vector.extract_strided_slice %2 {offsets = [0, 2], sizes = [8, 1], strides = [1, 1]} : vector<8x25xf32> to vector<8x1xf32>
    %17 = vector.extract_strided_slice %1 {offsets = [0, 2], sizes = [1, 421], strides = [1, 1]} : vector<1x505xf32> to vector<1x421xf32>
    %18 = vector.broadcast %16 : vector<8x1xf32> to vector<8x421xf32>
    %19 = vector.broadcast %17 : vector<1x421xf32> to vector<8x421xf32>
    %20 = arith.mulf %18, %19 : vector<8x421xf32>
    %21 = arith.addf %15, %20 : vector<8x421xf32>
    %22 = vector.extract_strided_slice %2 {offsets = [0, 3], sizes = [8, 1], strides = [1, 1]} : vector<8x25xf32> to vector<8x1xf32>
    %23 = vector.extract_strided_slice %1 {offsets = [0, 3], sizes = [1, 421], strides = [1, 1]} : vector<1x505xf32> to vector<1x421xf32>
    %24 = vector.broadcast %22 : vector<8x1xf32> to vector<8x421xf32>
    %25 = vector.broadcast %23 : vector<1x421xf32> to vector<8x421xf32>
    %26 = arith.mulf %24, %25 : vector<8x421xf32>
    %27 = arith.addf %21, %26 : vector<8x421xf32>
    %28 = vector.extract_strided_slice %2 {offsets = [0, 4], sizes = [8, 1], strides = [1, 1]} : vector<8x25xf32> to vector<8x1xf32>
    %29 = vector.extract_strided_slice %1 {offsets = [0, 4], sizes = [1, 421], strides = [1, 1]} : vector<1x505xf32> to vector<1x421xf32>
    %30 = vector.broadcast %28 : vector<8x1xf32> to vector<8x421xf32>
    %31 = vector.broadcast %29 : vector<1x421xf32> to vector<8x421xf32>
    %32 = arith.mulf %30, %31 : vector<8x421xf32>
    %33 = arith.addf %27, %32 : vector<8x421xf32>
    %34 = vector.extract_strided_slice %2 {offsets = [0, 5], sizes = [8, 1], strides = [1, 1]} : vector<8x25xf32> to vector<8x1xf32>
    %35 = vector.extract_strided_slice %1 {offsets = [0, 20], sizes = [1, 421], strides = [1, 1]} : vector<1x505xf32> to vector<1x421xf32>
    %36 = vector.broadcast %34 : vector<8x1xf32> to vector<8x421xf32>
    %37 = vector.broadcast %35 : vector<1x421xf32> to vector<8x421xf32>
    %38 = arith.mulf %36, %37 : vector<8x421xf32>
    %39 = arith.addf %33, %38 : vector<8x421xf32>
    %40 = vector.extract_strided_slice %2 {offsets = [0, 6], sizes = [8, 1], strides = [1, 1]} : vector<8x25xf32> to vector<8x1xf32>
    %41 = vector.extract_strided_slice %1 {offsets = [0, 21], sizes = [1, 421], strides = [1, 1]} : vector<1x505xf32> to vector<1x421xf32>
    %42 = vector.broadcast %40 : vector<8x1xf32> to vector<8x421xf32>
    %43 = vector.broadcast %41 : vector<1x421xf32> to vector<8x421xf32>
    %44 = arith.mulf %42, %43 : vector<8x421xf32>
    %45 = arith.addf %39, %44 : vector<8x421xf32>
    %46 = vector.extract_strided_slice %2 {offsets = [0, 7], sizes = [8, 1], strides = [1, 1]} : vector<8x25xf32> to vector<8x1xf32>
    %47 = vector.extract_strided_slice %1 {offsets = [0, 22], sizes = [1, 421], strides = [1, 1]} : vector<1x505xf32> to vector<1x421xf32>
    %48 = vector.broadcast %46 : vector<8x1xf32> to vector<8x421xf32>
    %49 = vector.broadcast %47 : vector<1x421xf32> to vector<8x421xf32>
    %50 = arith.mulf %48, %49 : vector<8x421xf32>
    %51 = arith.addf %45, %50 : vector<8x421xf32>
    %52 = vector.extract_strided_slice %2 {offsets = [0, 8], sizes = [8, 1], strides = [1, 1]} : vector<8x25xf32> to vector<8x1xf32>
    %53 = vector.extract_strided_slice %1 {offsets = [0, 23], sizes = [1, 421], strides = [1, 1]} : vector<1x505xf32> to vector<1x421xf32>
    %54 = vector.broadcast %52 : vector<8x1xf32> to vector<8x421xf32>
    %55 = vector.broadcast %53 : vector<1x421xf32> to vector<8x421xf32>
    %56 = arith.mulf %54, %55 : vector<8x421xf32>
    %57 = arith.addf %51, %56 : vector<8x421xf32>
    %58 = vector.extract_strided_slice %2 {offsets = [0, 9], sizes = [8, 1], strides = [1, 1]} : vector<8x25xf32> to vector<8x1xf32>
    %59 = vector.extract_strided_slice %1 {offsets = [0, 24], sizes = [1, 421], strides = [1, 1]} : vector<1x505xf32> to vector<1x421xf32>
    %60 = vector.broadcast %58 : vector<8x1xf32> to vector<8x421xf32>
    %61 = vector.broadcast %59 : vector<1x421xf32> to vector<8x421xf32>
    %62 = arith.mulf %60, %61 : vector<8x421xf32>
    %63 = arith.addf %57, %62 : vector<8x421xf32>
    %64 = vector.extract_strided_slice %2 {offsets = [0, 10], sizes = [8, 1], strides = [1, 1]} : vector<8x25xf32> to vector<8x1xf32>
    %65 = vector.extract_strided_slice %1 {offsets = [0, 40], sizes = [1, 421], strides = [1, 1]} : vector<1x505xf32> to vector<1x421xf32>
    %66 = vector.broadcast %64 : vector<8x1xf32> to vector<8x421xf32>
    %67 = vector.broadcast %65 : vector<1x421xf32> to vector<8x421xf32>
    %68 = arith.mulf %66, %67 : vector<8x421xf32>
    %69 = arith.addf %63, %68 : vector<8x421xf32>
    %70 = vector.extract_strided_slice %2 {offsets = [0, 11], sizes = [8, 1], strides = [1, 1]} : vector<8x25xf32> to vector<8x1xf32>
    %71 = vector.extract_strided_slice %1 {offsets = [0, 41], sizes = [1, 421], strides = [1, 1]} : vector<1x505xf32> to vector<1x421xf32>
    %72 = vector.broadcast %70 : vector<8x1xf32> to vector<8x421xf32>
    %73 = vector.broadcast %71 : vector<1x421xf32> to vector<8x421xf32>
    %74 = arith.mulf %72, %73 : vector<8x421xf32>
    %75 = arith.addf %69, %74 : vector<8x421xf32>
    %76 = vector.extract_strided_slice %2 {offsets = [0, 12], sizes = [8, 1], strides = [1, 1]} : vector<8x25xf32> to vector<8x1xf32>
    %77 = vector.extract_strided_slice %1 {offsets = [0, 42], sizes = [1, 421], strides = [1, 1]} : vector<1x505xf32> to vector<1x421xf32>
    %78 = vector.broadcast %76 : vector<8x1xf32> to vector<8x421xf32>
    %79 = vector.broadcast %77 : vector<1x421xf32> to vector<8x421xf32>
    %80 = arith.mulf %78, %79 : vector<8x421xf32>
    %81 = arith.addf %75, %80 : vector<8x421xf32>
    %82 = vector.extract_strided_slice %2 {offsets = [0, 13], sizes = [8, 1], strides = [1, 1]} : vector<8x25xf32> to vector<8x1xf32>
    %83 = vector.extract_strided_slice %1 {offsets = [0, 43], sizes = [1, 421], strides = [1, 1]} : vector<1x505xf32> to vector<1x421xf32>
    %84 = vector.broadcast %82 : vector<8x1xf32> to vector<8x421xf32>
    %85 = vector.broadcast %83 : vector<1x421xf32> to vector<8x421xf32>
    %86 = arith.mulf %84, %85 : vector<8x421xf32>
    %87 = arith.addf %81, %86 : vector<8x421xf32>
    %88 = vector.extract_strided_slice %2 {offsets = [0, 14], sizes = [8, 1], strides = [1, 1]} : vector<8x25xf32> to vector<8x1xf32>
    %89 = vector.extract_strided_slice %1 {offsets = [0, 44], sizes = [1, 421], strides = [1, 1]} : vector<1x505xf32> to vector<1x421xf32>
    %90 = vector.broadcast %88 : vector<8x1xf32> to vector<8x421xf32>
    %91 = vector.broadcast %89 : vector<1x421xf32> to vector<8x421xf32>
    %92 = arith.mulf %90, %91 : vector<8x421xf32>
    %93 = arith.addf %87, %92 : vector<8x421xf32>
    %94 = vector.extract_strided_slice %2 {offsets = [0, 15], sizes = [8, 1], strides = [1, 1]} : vector<8x25xf32> to vector<8x1xf32>
    %95 = vector.extract_strided_slice %1 {offsets = [0, 60], sizes = [1, 421], strides = [1, 1]} : vector<1x505xf32> to vector<1x421xf32>
    %96 = vector.broadcast %94 : vector<8x1xf32> to vector<8x421xf32>
    %97 = vector.broadcast %95 : vector<1x421xf32> to vector<8x421xf32>
    %98 = arith.mulf %96, %97 : vector<8x421xf32>
    %99 = arith.addf %93, %98 : vector<8x421xf32>
    %100 = vector.extract_strided_slice %2 {offsets = [0, 16], sizes = [8, 1], strides = [1, 1]} : vector<8x25xf32> to vector<8x1xf32>
    %101 = vector.extract_strided_slice %1 {offsets = [0, 61], sizes = [1, 421], strides = [1, 1]} : vector<1x505xf32> to vector<1x421xf32>
    %102 = vector.broadcast %100 : vector<8x1xf32> to vector<8x421xf32>
    %103 = vector.broadcast %101 : vector<1x421xf32> to vector<8x421xf32>
    %104 = arith.mulf %102, %103 : vector<8x421xf32>
    %105 = arith.addf %99, %104 : vector<8x421xf32>
    %106 = vector.extract_strided_slice %2 {offsets = [0, 17], sizes = [8, 1], strides = [1, 1]} : vector<8x25xf32> to vector<8x1xf32>
    %107 = vector.extract_strided_slice %1 {offsets = [0, 62], sizes = [1, 421], strides = [1, 1]} : vector<1x505xf32> to vector<1x421xf32>
    %108 = vector.broadcast %106 : vector<8x1xf32> to vector<8x421xf32>
    %109 = vector.broadcast %107 : vector<1x421xf32> to vector<8x421xf32>
    %110 = arith.mulf %108, %109 : vector<8x421xf32>
    %111 = arith.addf %105, %110 : vector<8x421xf32>
    %112 = vector.extract_strided_slice %2 {offsets = [0, 18], sizes = [8, 1], strides = [1, 1]} : vector<8x25xf32> to vector<8x1xf32>
    %113 = vector.extract_strided_slice %1 {offsets = [0, 63], sizes = [1, 421], strides = [1, 1]} : vector<1x505xf32> to vector<1x421xf32>
    %114 = vector.broadcast %112 : vector<8x1xf32> to vector<8x421xf32>
    %115 = vector.broadcast %113 : vector<1x421xf32> to vector<8x421xf32>
    %116 = arith.mulf %114, %115 : vector<8x421xf32>
    %117 = arith.addf %111, %116 : vector<8x421xf32>
    %118 = vector.extract_strided_slice %2 {offsets = [0, 19], sizes = [8, 1], strides = [1, 1]} : vector<8x25xf32> to vector<8x1xf32>
    %119 = vector.extract_strided_slice %1 {offsets = [0, 64], sizes = [1, 421], strides = [1, 1]} : vector<1x505xf32> to vector<1x421xf32>
    %120 = vector.broadcast %118 : vector<8x1xf32> to vector<8x421xf32>
    %121 = vector.broadcast %119 : vector<1x421xf32> to vector<8x421xf32>
    %122 = arith.mulf %120, %121 : vector<8x421xf32>
    %123 = arith.addf %117, %122 : vector<8x421xf32>
    %124 = vector.extract_strided_slice %2 {offsets = [0, 20], sizes = [8, 1], strides = [1, 1]} : vector<8x25xf32> to vector<8x1xf32>
    %125 = vector.extract_strided_slice %1 {offsets = [0, 80], sizes = [1, 421], strides = [1, 1]} : vector<1x505xf32> to vector<1x421xf32>
    %126 = vector.broadcast %124 : vector<8x1xf32> to vector<8x421xf32>
    %127 = vector.broadcast %125 : vector<1x421xf32> to vector<8x421xf32>
    %128 = arith.mulf %126, %127 : vector<8x421xf32>
    %129 = arith.addf %123, %128 : vector<8x421xf32>
    %130 = vector.extract_strided_slice %2 {offsets = [0, 21], sizes = [8, 1], strides = [1, 1]} : vector<8x25xf32> to vector<8x1xf32>
    %131 = vector.extract_strided_slice %1 {offsets = [0, 81], sizes = [1, 421], strides = [1, 1]} : vector<1x505xf32> to vector<1x421xf32>
    %132 = vector.broadcast %130 : vector<8x1xf32> to vector<8x421xf32>
    %133 = vector.broadcast %131 : vector<1x421xf32> to vector<8x421xf32>
    %134 = arith.mulf %132, %133 : vector<8x421xf32>
    %135 = arith.addf %129, %134 : vector<8x421xf32>
    %136 = vector.extract_strided_slice %2 {offsets = [0, 22], sizes = [8, 1], strides = [1, 1]} : vector<8x25xf32> to vector<8x1xf32>
    %137 = vector.extract_strided_slice %1 {offsets = [0, 82], sizes = [1, 421], strides = [1, 1]} : vector<1x505xf32> to vector<1x421xf32>
    %138 = vector.broadcast %136 : vector<8x1xf32> to vector<8x421xf32>
    %139 = vector.broadcast %137 : vector<1x421xf32> to vector<8x421xf32>
    %140 = arith.mulf %138, %139 : vector<8x421xf32>
    %141 = arith.addf %135, %140 : vector<8x421xf32>
    %142 = vector.extract_strided_slice %2 {offsets = [0, 23], sizes = [8, 1], strides = [1, 1]} : vector<8x25xf32> to vector<8x1xf32>
    %143 = vector.extract_strided_slice %1 {offsets = [0, 83], sizes = [1, 421], strides = [1, 1]} : vector<1x505xf32> to vector<1x421xf32>
    %144 = vector.broadcast %142 : vector<8x1xf32> to vector<8x421xf32>
    %145 = vector.broadcast %143 : vector<1x421xf32> to vector<8x421xf32>
    %146 = arith.mulf %144, %145 : vector<8x421xf32>
    %147 = arith.addf %141, %146 : vector<8x421xf32>
    %148 = vector.extract_strided_slice %2 {offsets = [0, 24], sizes = [8, 1], strides = [1, 1]} : vector<8x25xf32> to vector<8x1xf32>
    %149 = vector.extract_strided_slice %1 {offsets = [0, 84], sizes = [1, 421], strides = [1, 1]} : vector<1x505xf32> to vector<1x421xf32>
    %150 = vector.broadcast %148 : vector<8x1xf32> to vector<8x421xf32>
    %151 = vector.broadcast %149 : vector<1x421xf32> to vector<8x421xf32>
    %152 = arith.mulf %150, %151 : vector<8x421xf32>
    %153 = arith.addf %147, %152 : vector<8x421xf32>
    %c0_4 = arith.constant 0 : index
    %c0_5 = arith.constant 0 : index
    %154 = vector.load %arg3[%c0_4, %c0_5] : memref<8x1xf32, #tpu.memory_space<vmem>>, vector<8x1xf32>
    %c0_6 = arith.constant 0 : index
    %c0_7 = arith.constant 0 : index
    %155 = vector.load %arg4[%c0_6, %c0_7] : memref<8x1xf32, #tpu.memory_space<vmem>>, vector<8x1xf32>
    %156 = vector.broadcast %154 : vector<8x1xf32> to vector<8x421xf32>
    %157 = arith.mulf %153, %156 : vector<8x421xf32>
    %158 = vector.broadcast %155 : vector<8x1xf32> to vector<8x421xf32>
    %159 = arith.addf %157, %158 : vector<8x421xf32>
    %cst_8 = arith.constant 0.000000e+00 : f32
    %160 = vector.broadcast %cst_8 : f32 to vector<8x421xf32>
    %161 = arith.maximumf %159, %160 : vector<8x421xf32>
    %162 = vector.extract_strided_slice %161 {offsets = [0, 0], sizes = [8, 420], strides = [1, 1]} : vector<8x421xf32> to vector<8x420xf32>
    %163 = vector.extract_strided_slice %161 {offsets = [0, 1], sizes = [8, 420], strides = [1, 1]} : vector<8x421xf32> to vector<8x420xf32>
    %164 = arith.maximumf %162, %163 : vector<8x420xf32>
    %165 = vector.extract_strided_slice %164 {offsets = [0, 0], sizes = [8, 400], strides = [1, 1]} : vector<8x420xf32> to vector<8x400xf32>
    %166 = vector.extract_strided_slice %164 {offsets = [0, 20], sizes = [8, 400], strides = [1, 1]} : vector<8x420xf32> to vector<8x400xf32>
    %167 = arith.maximumf %165, %166 : vector<8x400xf32>
    %c0_9 = arith.constant 0 : index
    %c0_10 = arith.constant 0 : index
    %168 = vector.load %arg5[%c0_9, %c0_10] : memref<400x209xf32, #tpu.memory_space<vmem>>, vector<400x209xf32>
    %cst_11 = arith.constant dense<0.000000e+00> : vector<8x209xf32>
    %169 = tpu.matmul %167, %168, %cst_11 {dimension_numbers = #tpu.dot_dimension_numbers<[1], [0], [0], [1], [0, 0, 1, 1], [], []>} : vector<8x400xf32>, vector<400x209xf32>, vector<8x209xf32> -> vector<8x209xf32>
    %170 = arith.truncf %169 : vector<8x209xf32> to vector<8x209xbf16>
    %c0_12 = arith.constant 0 : index
    %c0_13 = arith.constant 0 : index
    %c0_14 = arith.constant 0 : index
    %171 = vector.load %arg6[%c0_12, %c0_13, %c0_14] : memref<25x16x8xbf16, #tpu.memory_space<vmem>>, vector<25x16x8xbf16>
    %cst_15 = arith.constant 0.000000e+00 : f32
    %172 = vector.broadcast %cst_15 : f32 to vector<16x157xf32>
    %173 = vector.extract_strided_slice %171 {offsets = [0, 0, 0], sizes = [1, 16, 8], strides = [1, 1, 1]} : vector<25x16x8xbf16> to vector<1x16x8xbf16>
    %174 = vector.shape_cast %173 : vector<1x16x8xbf16> to vector<16x8xbf16>
    %175 = vector.extract_strided_slice %170 {offsets = [0, 0], sizes = [8, 157], strides = [1, 1]} : vector<8x209xbf16> to vector<8x157xbf16>
    %cst_16 = arith.constant dense<0.000000e+00> : vector<16x157xf32>
    %176 = tpu.matmul %174, %175, %cst_16 {dimension_numbers = #tpu.dot_dimension_numbers<[1], [0], [0], [1], [0, 0, 1, 1], [], []>} : vector<16x8xbf16>, vector<8x157xbf16>, vector<16x157xf32> -> vector<16x157xf32>
    %177 = arith.addf %172, %176 : vector<16x157xf32>
    %178 = vector.extract_strided_slice %171 {offsets = [1, 0, 0], sizes = [1, 16, 8], strides = [1, 1, 1]} : vector<25x16x8xbf16> to vector<1x16x8xbf16>
    %179 = vector.shape_cast %178 : vector<1x16x8xbf16> to vector<16x8xbf16>
    %180 = vector.extract_strided_slice %170 {offsets = [0, 1], sizes = [8, 157], strides = [1, 1]} : vector<8x209xbf16> to vector<8x157xbf16>
    %cst_17 = arith.constant dense<0.000000e+00> : vector<16x157xf32>
    %181 = tpu.matmul %179, %180, %cst_17 {dimension_numbers = #tpu.dot_dimension_numbers<[1], [0], [0], [1], [0, 0, 1, 1], [], []>} : vector<16x8xbf16>, vector<8x157xbf16>, vector<16x157xf32> -> vector<16x157xf32>
    %182 = arith.addf %177, %181 : vector<16x157xf32>
    %183 = vector.extract_strided_slice %171 {offsets = [2, 0, 0], sizes = [1, 16, 8], strides = [1, 1, 1]} : vector<25x16x8xbf16> to vector<1x16x8xbf16>
    %184 = vector.shape_cast %183 : vector<1x16x8xbf16> to vector<16x8xbf16>
    %185 = vector.extract_strided_slice %170 {offsets = [0, 2], sizes = [8, 157], strides = [1, 1]} : vector<8x209xbf16> to vector<8x157xbf16>
    %cst_18 = arith.constant dense<0.000000e+00> : vector<16x157xf32>
    %186 = tpu.matmul %184, %185, %cst_18 {dimension_numbers = #tpu.dot_dimension_numbers<[1], [0], [0], [1], [0, 0, 1, 1], [], []>} : vector<16x8xbf16>, vector<8x157xbf16>, vector<16x157xf32> -> vector<16x157xf32>
    %187 = arith.addf %182, %186 : vector<16x157xf32>
    %188 = vector.extract_strided_slice %171 {offsets = [3, 0, 0], sizes = [1, 16, 8], strides = [1, 1, 1]} : vector<25x16x8xbf16> to vector<1x16x8xbf16>
    %189 = vector.shape_cast %188 : vector<1x16x8xbf16> to vector<16x8xbf16>
    %190 = vector.extract_strided_slice %170 {offsets = [0, 3], sizes = [8, 157], strides = [1, 1]} : vector<8x209xbf16> to vector<8x157xbf16>
    %cst_19 = arith.constant dense<0.000000e+00> : vector<16x157xf32>
    %191 = tpu.matmul %189, %190, %cst_19 {dimension_numbers = #tpu.dot_dimension_numbers<[1], [0], [0], [1], [0, 0, 1, 1], [], []>} : vector<16x8xbf16>, vector<8x157xbf16>, vector<16x157xf32> -> vector<16x157xf32>
    %192 = arith.addf %187, %191 : vector<16x157xf32>
    %193 = vector.extract_strided_slice %171 {offsets = [4, 0, 0], sizes = [1, 16, 8], strides = [1, 1, 1]} : vector<25x16x8xbf16> to vector<1x16x8xbf16>
    %194 = vector.shape_cast %193 : vector<1x16x8xbf16> to vector<16x8xbf16>
    %195 = vector.extract_strided_slice %170 {offsets = [0, 4], sizes = [8, 157], strides = [1, 1]} : vector<8x209xbf16> to vector<8x157xbf16>
    %cst_20 = arith.constant dense<0.000000e+00> : vector<16x157xf32>
    %196 = tpu.matmul %194, %195, %cst_20 {dimension_numbers = #tpu.dot_dimension_numbers<[1], [0], [0], [1], [0, 0, 1, 1], [], []>} : vector<16x8xbf16>, vector<8x157xbf16>, vector<16x157xf32> -> vector<16x157xf32>
    %197 = arith.addf %192, %196 : vector<16x157xf32>
    %198 = vector.extract_strided_slice %171 {offsets = [5, 0, 0], sizes = [1, 16, 8], strides = [1, 1, 1]} : vector<25x16x8xbf16> to vector<1x16x8xbf16>
    %199 = vector.shape_cast %198 : vector<1x16x8xbf16> to vector<16x8xbf16>
    %200 = vector.extract_strided_slice %170 {offsets = [0, 12], sizes = [8, 157], strides = [1, 1]} : vector<8x209xbf16> to vector<8x157xbf16>
    %cst_21 = arith.constant dense<0.000000e+00> : vector<16x157xf32>
    %201 = tpu.matmul %199, %200, %cst_21 {dimension_numbers = #tpu.dot_dimension_numbers<[1], [0], [0], [1], [0, 0, 1, 1], [], []>} : vector<16x8xbf16>, vector<8x157xbf16>, vector<16x157xf32> -> vector<16x157xf32>
    %202 = arith.addf %197, %201 : vector<16x157xf32>
    %203 = vector.extract_strided_slice %171 {offsets = [6, 0, 0], sizes = [1, 16, 8], strides = [1, 1, 1]} : vector<25x16x8xbf16> to vector<1x16x8xbf16>
    %204 = vector.shape_cast %203 : vector<1x16x8xbf16> to vector<16x8xbf16>
    %205 = vector.extract_strided_slice %170 {offsets = [0, 13], sizes = [8, 157], strides = [1, 1]} : vector<8x209xbf16> to vector<8x157xbf16>
    %cst_22 = arith.constant dense<0.000000e+00> : vector<16x157xf32>
    %206 = tpu.matmul %204, %205, %cst_22 {dimension_numbers = #tpu.dot_dimension_numbers<[1], [0], [0], [1], [0, 0, 1, 1], [], []>} : vector<16x8xbf16>, vector<8x157xbf16>, vector<16x157xf32> -> vector<16x157xf32>
    %207 = arith.addf %202, %206 : vector<16x157xf32>
    %208 = vector.extract_strided_slice %171 {offsets = [7, 0, 0], sizes = [1, 16, 8], strides = [1, 1, 1]} : vector<25x16x8xbf16> to vector<1x16x8xbf16>
    %209 = vector.shape_cast %208 : vector<1x16x8xbf16> to vector<16x8xbf16>
    %210 = vector.extract_strided_slice %170 {offsets = [0, 14], sizes = [8, 157], strides = [1, 1]} : vector<8x209xbf16> to vector<8x157xbf16>
    %cst_23 = arith.constant dense<0.000000e+00> : vector<16x157xf32>
    %211 = tpu.matmul %209, %210, %cst_23 {dimension_numbers = #tpu.dot_dimension_numbers<[1], [0], [0], [1], [0, 0, 1, 1], [], []>} : vector<16x8xbf16>, vector<8x157xbf16>, vector<16x157xf32> -> vector<16x157xf32>
    %212 = arith.addf %207, %211 : vector<16x157xf32>
    %213 = vector.extract_strided_slice %171 {offsets = [8, 0, 0], sizes = [1, 16, 8], strides = [1, 1, 1]} : vector<25x16x8xbf16> to vector<1x16x8xbf16>
    %214 = vector.shape_cast %213 : vector<1x16x8xbf16> to vector<16x8xbf16>
    %215 = vector.extract_strided_slice %170 {offsets = [0, 15], sizes = [8, 157], strides = [1, 1]} : vector<8x209xbf16> to vector<8x157xbf16>
    %cst_24 = arith.constant dense<0.000000e+00> : vector<16x157xf32>
    %216 = tpu.matmul %214, %215, %cst_24 {dimension_numbers = #tpu.dot_dimension_numbers<[1], [0], [0], [1], [0, 0, 1, 1], [], []>} : vector<16x8xbf16>, vector<8x157xbf16>, vector<16x157xf32> -> vector<16x157xf32>
    %217 = arith.addf %212, %216 : vector<16x157xf32>
    %218 = vector.extract_strided_slice %171 {offsets = [9, 0, 0], sizes = [1, 16, 8], strides = [1, 1, 1]} : vector<25x16x8xbf16> to vector<1x16x8xbf16>
    %219 = vector.shape_cast %218 : vector<1x16x8xbf16> to vector<16x8xbf16>
    %220 = vector.extract_strided_slice %170 {offsets = [0, 16], sizes = [8, 157], strides = [1, 1]} : vector<8x209xbf16> to vector<8x157xbf16>
    %cst_25 = arith.constant dense<0.000000e+00> : vector<16x157xf32>
    %221 = tpu.matmul %219, %220, %cst_25 {dimension_numbers = #tpu.dot_dimension_numbers<[1], [0], [0], [1], [0, 0, 1, 1], [], []>} : vector<16x8xbf16>, vector<8x157xbf16>, vector<16x157xf32> -> vector<16x157xf32>
    %222 = arith.addf %217, %221 : vector<16x157xf32>
    %223 = vector.extract_strided_slice %171 {offsets = [10, 0, 0], sizes = [1, 16, 8], strides = [1, 1, 1]} : vector<25x16x8xbf16> to vector<1x16x8xbf16>
    %224 = vector.shape_cast %223 : vector<1x16x8xbf16> to vector<16x8xbf16>
    %225 = vector.extract_strided_slice %170 {offsets = [0, 24], sizes = [8, 157], strides = [1, 1]} : vector<8x209xbf16> to vector<8x157xbf16>
    %cst_26 = arith.constant dense<0.000000e+00> : vector<16x157xf32>
    %226 = tpu.matmul %224, %225, %cst_26 {dimension_numbers = #tpu.dot_dimension_numbers<[1], [0], [0], [1], [0, 0, 1, 1], [], []>} : vector<16x8xbf16>, vector<8x157xbf16>, vector<16x157xf32> -> vector<16x157xf32>
    %227 = arith.addf %222, %226 : vector<16x157xf32>
    %228 = vector.extract_strided_slice %171 {offsets = [11, 0, 0], sizes = [1, 16, 8], strides = [1, 1, 1]} : vector<25x16x8xbf16> to vector<1x16x8xbf16>
    %229 = vector.shape_cast %228 : vector<1x16x8xbf16> to vector<16x8xbf16>
    %230 = vector.extract_strided_slice %170 {offsets = [0, 25], sizes = [8, 157], strides = [1, 1]} : vector<8x209xbf16> to vector<8x157xbf16>
    %cst_27 = arith.constant dense<0.000000e+00> : vector<16x157xf32>
    %231 = tpu.matmul %229, %230, %cst_27 {dimension_numbers = #tpu.dot_dimension_numbers<[1], [0], [0], [1], [0, 0, 1, 1], [], []>} : vector<16x8xbf16>, vector<8x157xbf16>, vector<16x157xf32> -> vector<16x157xf32>
    %232 = arith.addf %227, %231 : vector<16x157xf32>
    %233 = vector.extract_strided_slice %171 {offsets = [12, 0, 0], sizes = [1, 16, 8], strides = [1, 1, 1]} : vector<25x16x8xbf16> to vector<1x16x8xbf16>
    %234 = vector.shape_cast %233 : vector<1x16x8xbf16> to vector<16x8xbf16>
    %235 = vector.extract_strided_slice %170 {offsets = [0, 26], sizes = [8, 157], strides = [1, 1]} : vector<8x209xbf16> to vector<8x157xbf16>
    %cst_28 = arith.constant dense<0.000000e+00> : vector<16x157xf32>
    %236 = tpu.matmul %234, %235, %cst_28 {dimension_numbers = #tpu.dot_dimension_numbers<[1], [0], [0], [1], [0, 0, 1, 1], [], []>} : vector<16x8xbf16>, vector<8x157xbf16>, vector<16x157xf32> -> vector<16x157xf32>
    %237 = arith.addf %232, %236 : vector<16x157xf32>
    %238 = vector.extract_strided_slice %171 {offsets = [13, 0, 0], sizes = [1, 16, 8], strides = [1, 1, 1]} : vector<25x16x8xbf16> to vector<1x16x8xbf16>
    %239 = vector.shape_cast %238 : vector<1x16x8xbf16> to vector<16x8xbf16>
    %240 = vector.extract_strided_slice %170 {offsets = [0, 27], sizes = [8, 157], strides = [1, 1]} : vector<8x209xbf16> to vector<8x157xbf16>
    %cst_29 = arith.constant dense<0.000000e+00> : vector<16x157xf32>
    %241 = tpu.matmul %239, %240, %cst_29 {dimension_numbers = #tpu.dot_dimension_numbers<[1], [0], [0], [1], [0, 0, 1, 1], [], []>} : vector<16x8xbf16>, vector<8x157xbf16>, vector<16x157xf32> -> vector<16x157xf32>
    %242 = arith.addf %237, %241 : vector<16x157xf32>
    %243 = vector.extract_strided_slice %171 {offsets = [14, 0, 0], sizes = [1, 16, 8], strides = [1, 1, 1]} : vector<25x16x8xbf16> to vector<1x16x8xbf16>
    %244 = vector.shape_cast %243 : vector<1x16x8xbf16> to vector<16x8xbf16>
    %245 = vector.extract_strided_slice %170 {offsets = [0, 28], sizes = [8, 157], strides = [1, 1]} : vector<8x209xbf16> to vector<8x157xbf16>
    %cst_30 = arith.constant dense<0.000000e+00> : vector<16x157xf32>
    %246 = tpu.matmul %244, %245, %cst_30 {dimension_numbers = #tpu.dot_dimension_numbers<[1], [0], [0], [1], [0, 0, 1, 1], [], []>} : vector<16x8xbf16>, vector<8x157xbf16>, vector<16x157xf32> -> vector<16x157xf32>
    %247 = arith.addf %242, %246 : vector<16x157xf32>
    %248 = vector.extract_strided_slice %171 {offsets = [15, 0, 0], sizes = [1, 16, 8], strides = [1, 1, 1]} : vector<25x16x8xbf16> to vector<1x16x8xbf16>
    %249 = vector.shape_cast %248 : vector<1x16x8xbf16> to vector<16x8xbf16>
    %250 = vector.extract_strided_slice %170 {offsets = [0, 36], sizes = [8, 157], strides = [1, 1]} : vector<8x209xbf16> to vector<8x157xbf16>
    %cst_31 = arith.constant dense<0.000000e+00> : vector<16x157xf32>
    %251 = tpu.matmul %249, %250, %cst_31 {dimension_numbers = #tpu.dot_dimension_numbers<[1], [0], [0], [1], [0, 0, 1, 1], [], []>} : vector<16x8xbf16>, vector<8x157xbf16>, vector<16x157xf32> -> vector<16x157xf32>
    %252 = arith.addf %247, %251 : vector<16x157xf32>
    %253 = vector.extract_strided_slice %171 {offsets = [16, 0, 0], sizes = [1, 16, 8], strides = [1, 1, 1]} : vector<25x16x8xbf16> to vector<1x16x8xbf16>
    %254 = vector.shape_cast %253 : vector<1x16x8xbf16> to vector<16x8xbf16>
    %255 = vector.extract_strided_slice %170 {offsets = [0, 37], sizes = [8, 157], strides = [1, 1]} : vector<8x209xbf16> to vector<8x157xbf16>
    %cst_32 = arith.constant dense<0.000000e+00> : vector<16x157xf32>
    %256 = tpu.matmul %254, %255, %cst_32 {dimension_numbers = #tpu.dot_dimension_numbers<[1], [0], [0], [1], [0, 0, 1, 1], [], []>} : vector<16x8xbf16>, vector<8x157xbf16>, vector<16x157xf32> -> vector<16x157xf32>
    %257 = arith.addf %252, %256 : vector<16x157xf32>
    %258 = vector.extract_strided_slice %171 {offsets = [17, 0, 0], sizes = [1, 16, 8], strides = [1, 1, 1]} : vector<25x16x8xbf16> to vector<1x16x8xbf16>
    %259 = vector.shape_cast %258 : vector<1x16x8xbf16> to vector<16x8xbf16>
    %260 = vector.extract_strided_slice %170 {offsets = [0, 38], sizes = [8, 157], strides = [1, 1]} : vector<8x209xbf16> to vector<8x157xbf16>
    %cst_33 = arith.constant dense<0.000000e+00> : vector<16x157xf32>
    %261 = tpu.matmul %259, %260, %cst_33 {dimension_numbers = #tpu.dot_dimension_numbers<[1], [0], [0], [1], [0, 0, 1, 1], [], []>} : vector<16x8xbf16>, vector<8x157xbf16>, vector<16x157xf32> -> vector<16x157xf32>
    %262 = arith.addf %257, %261 : vector<16x157xf32>
    %263 = vector.extract_strided_slice %171 {offsets = [18, 0, 0], sizes = [1, 16, 8], strides = [1, 1, 1]} : vector<25x16x8xbf16> to vector<1x16x8xbf16>
    %264 = vector.shape_cast %263 : vector<1x16x8xbf16> to vector<16x8xbf16>
    %265 = vector.extract_strided_slice %170 {offsets = [0, 39], sizes = [8, 157], strides = [1, 1]} : vector<8x209xbf16> to vector<8x157xbf16>
    %cst_34 = arith.constant dense<0.000000e+00> : vector<16x157xf32>
    %266 = tpu.matmul %264, %265, %cst_34 {dimension_numbers = #tpu.dot_dimension_numbers<[1], [0], [0], [1], [0, 0, 1, 1], [], []>} : vector<16x8xbf16>, vector<8x157xbf16>, vector<16x157xf32> -> vector<16x157xf32>
    %267 = arith.addf %262, %266 : vector<16x157xf32>
    %268 = vector.extract_strided_slice %171 {offsets = [19, 0, 0], sizes = [1, 16, 8], strides = [1, 1, 1]} : vector<25x16x8xbf16> to vector<1x16x8xbf16>
    %269 = vector.shape_cast %268 : vector<1x16x8xbf16> to vector<16x8xbf16>
    %270 = vector.extract_strided_slice %170 {offsets = [0, 40], sizes = [8, 157], strides = [1, 1]} : vector<8x209xbf16> to vector<8x157xbf16>
    %cst_35 = arith.constant dense<0.000000e+00> : vector<16x157xf32>
    %271 = tpu.matmul %269, %270, %cst_35 {dimension_numbers = #tpu.dot_dimension_numbers<[1], [0], [0], [1], [0, 0, 1, 1], [], []>} : vector<16x8xbf16>, vector<8x157xbf16>, vector<16x157xf32> -> vector<16x157xf32>
    %272 = arith.addf %267, %271 : vector<16x157xf32>
    %273 = vector.extract_strided_slice %171 {offsets = [20, 0, 0], sizes = [1, 16, 8], strides = [1, 1, 1]} : vector<25x16x8xbf16> to vector<1x16x8xbf16>
    %274 = vector.shape_cast %273 : vector<1x16x8xbf16> to vector<16x8xbf16>
    %275 = vector.extract_strided_slice %170 {offsets = [0, 48], sizes = [8, 157], strides = [1, 1]} : vector<8x209xbf16> to vector<8x157xbf16>
    %cst_36 = arith.constant dense<0.000000e+00> : vector<16x157xf32>
    %276 = tpu.matmul %274, %275, %cst_36 {dimension_numbers = #tpu.dot_dimension_numbers<[1], [0], [0], [1], [0, 0, 1, 1], [], []>} : vector<16x8xbf16>, vector<8x157xbf16>, vector<16x157xf32> -> vector<16x157xf32>
    %277 = arith.addf %272, %276 : vector<16x157xf32>
    %278 = vector.extract_strided_slice %171 {offsets = [21, 0, 0], sizes = [1, 16, 8], strides = [1, 1, 1]} : vector<25x16x8xbf16> to vector<1x16x8xbf16>
    %279 = vector.shape_cast %278 : vector<1x16x8xbf16> to vector<16x8xbf16>
    %280 = vector.extract_strided_slice %170 {offsets = [0, 49], sizes = [8, 157], strides = [1, 1]} : vector<8x209xbf16> to vector<8x157xbf16>
    %cst_37 = arith.constant dense<0.000000e+00> : vector<16x157xf32>
    %281 = tpu.matmul %279, %280, %cst_37 {dimension_numbers = #tpu.dot_dimension_numbers<[1], [0], [0], [1], [0, 0, 1, 1], [], []>} : vector<16x8xbf16>, vector<8x157xbf16>, vector<16x157xf32> -> vector<16x157xf32>
    %282 = arith.addf %277, %281 : vector<16x157xf32>
    %283 = vector.extract_strided_slice %171 {offsets = [22, 0, 0], sizes = [1, 16, 8], strides = [1, 1, 1]} : vector<25x16x8xbf16> to vector<1x16x8xbf16>
    %284 = vector.shape_cast %283 : vector<1x16x8xbf16> to vector<16x8xbf16>
    %285 = vector.extract_strided_slice %170 {offsets = [0, 50], sizes = [8, 157], strides = [1, 1]} : vector<8x209xbf16> to vector<8x157xbf16>
    %cst_38 = arith.constant dense<0.000000e+00> : vector<16x157xf32>
    %286 = tpu.matmul %284, %285, %cst_38 {dimension_numbers = #tpu.dot_dimension_numbers<[1], [0], [0], [1], [0, 0, 1, 1], [], []>} : vector<16x8xbf16>, vector<8x157xbf16>, vector<16x157xf32> -> vector<16x157xf32>
    %287 = arith.addf %282, %286 : vector<16x157xf32>
    %288 = vector.extract_strided_slice %171 {offsets = [23, 0, 0], sizes = [1, 16, 8], strides = [1, 1, 1]} : vector<25x16x8xbf16> to vector<1x16x8xbf16>
    %289 = vector.shape_cast %288 : vector<1x16x8xbf16> to vector<16x8xbf16>
    %290 = vector.extract_strided_slice %170 {offsets = [0, 51], sizes = [8, 157], strides = [1, 1]} : vector<8x209xbf16> to vector<8x157xbf16>
    %cst_39 = arith.constant dense<0.000000e+00> : vector<16x157xf32>
    %291 = tpu.matmul %289, %290, %cst_39 {dimension_numbers = #tpu.dot_dimension_numbers<[1], [0], [0], [1], [0, 0, 1, 1], [], []>} : vector<16x8xbf16>, vector<8x157xbf16>, vector<16x157xf32> -> vector<16x157xf32>
    %292 = arith.addf %287, %291 : vector<16x157xf32>
    %293 = vector.extract_strided_slice %171 {offsets = [24, 0, 0], sizes = [1, 16, 8], strides = [1, 1, 1]} : vector<25x16x8xbf16> to vector<1x16x8xbf16>
    %294 = vector.shape_cast %293 : vector<1x16x8xbf16> to vector<16x8xbf16>
    %295 = vector.extract_strided_slice %170 {offsets = [0, 52], sizes = [8, 157], strides = [1, 1]} : vector<8x209xbf16> to vector<8x157xbf16>
    %cst_40 = arith.constant dense<0.000000e+00> : vector<16x157xf32>
    %296 = tpu.matmul %294, %295, %cst_40 {dimension_numbers = #tpu.dot_dimension_numbers<[1], [0], [0], [1], [0, 0, 1, 1], [], []>} : vector<16x8xbf16>, vector<8x157xbf16>, vector<16x157xf32> -> vector<16x157xf32>
    %297 = arith.addf %292, %296 : vector<16x157xf32>
    %c0_41 = arith.constant 0 : index
    %c0_42 = arith.constant 0 : index
    %298 = vector.load %arg7[%c0_41, %c0_42] : memref<16x1xf32, #tpu.memory_space<vmem>>, vector<16x1xf32>
    %c0_43 = arith.constant 0 : index
    %c0_44 = arith.constant 0 : index
    %299 = vector.load %arg8[%c0_43, %c0_44] : memref<16x1xf32, #tpu.memory_space<vmem>>, vector<16x1xf32>
    %300 = vector.broadcast %298 : vector<16x1xf32> to vector<16x157xf32>
    %301 = arith.mulf %297, %300 : vector<16x157xf32>
    %302 = vector.broadcast %299 : vector<16x1xf32> to vector<16x157xf32>
    %303 = arith.addf %301, %302 : vector<16x157xf32>
    %cst_45 = arith.constant 0.000000e+00 : f32
    %304 = vector.broadcast %cst_45 : f32 to vector<16x157xf32>
    %305 = arith.maximumf %303, %304 : vector<16x157xf32>
    %306 = vector.extract_strided_slice %305 {offsets = [0, 0], sizes = [16, 156], strides = [1, 1]} : vector<16x157xf32> to vector<16x156xf32>
    %307 = vector.extract_strided_slice %305 {offsets = [0, 1], sizes = [16, 156], strides = [1, 1]} : vector<16x157xf32> to vector<16x156xf32>
    %308 = arith.maximumf %306, %307 : vector<16x156xf32>
    %309 = vector.extract_strided_slice %308 {offsets = [0, 0], sizes = [16, 144], strides = [1, 1]} : vector<16x156xf32> to vector<16x144xf32>
    %310 = vector.extract_strided_slice %308 {offsets = [0, 12], sizes = [16, 144], strides = [1, 1]} : vector<16x156xf32> to vector<16x144xf32>
    %311 = arith.maximumf %309, %310 : vector<16x144xf32>
    %c0_46 = arith.constant 0 : index
    %c0_47 = arith.constant 0 : index
    %312 = vector.load %arg9[%c0_46, %c0_47] : memref<144x57xf32, #tpu.memory_space<vmem>>, vector<144x57xf32>
    %cst_48 = arith.constant dense<0.000000e+00> : vector<16x57xf32>
    %313 = tpu.matmul %311, %312, %cst_48 {dimension_numbers = #tpu.dot_dimension_numbers<[1], [0], [0], [1], [0, 0, 1, 1], [], []>} : vector<16x144xf32>, vector<144x57xf32>, vector<16x57xf32> -> vector<16x57xf32>
    %314 = arith.truncf %313 : vector<16x57xf32> to vector<16x57xbf16>
    %c0_49 = arith.constant 0 : index
    %c0_50 = arith.constant 0 : index
    %c0_51 = arith.constant 0 : index
    %315 = vector.load %arg10[%c0_49, %c0_50, %c0_51] : memref<9x32x16xbf16, #tpu.memory_space<vmem>>, vector<9x32x16xbf16>
    %cst_52 = arith.constant 0.000000e+00 : f32
    %316 = vector.broadcast %cst_52 : f32 to vector<32x43xf32>
    %317 = vector.extract_strided_slice %315 {offsets = [0, 0, 0], sizes = [1, 32, 16], strides = [1, 1, 1]} : vector<9x32x16xbf16> to vector<1x32x16xbf16>
    %318 = vector.shape_cast %317 : vector<1x32x16xbf16> to vector<32x16xbf16>
    %319 = vector.extract_strided_slice %314 {offsets = [0, 0], sizes = [16, 43], strides = [1, 1]} : vector<16x57xbf16> to vector<16x43xbf16>
    %cst_53 = arith.constant dense<0.000000e+00> : vector<32x43xf32>
    %320 = tpu.matmul %318, %319, %cst_53 {dimension_numbers = #tpu.dot_dimension_numbers<[1], [0], [0], [1], [0, 0, 1, 1], [], []>} : vector<32x16xbf16>, vector<16x43xbf16>, vector<32x43xf32> -> vector<32x43xf32>
    %321 = arith.addf %316, %320 : vector<32x43xf32>
    %322 = vector.extract_strided_slice %315 {offsets = [1, 0, 0], sizes = [1, 32, 16], strides = [1, 1, 1]} : vector<9x32x16xbf16> to vector<1x32x16xbf16>
    %323 = vector.shape_cast %322 : vector<1x32x16xbf16> to vector<32x16xbf16>
    %324 = vector.extract_strided_slice %314 {offsets = [0, 1], sizes = [16, 43], strides = [1, 1]} : vector<16x57xbf16> to vector<16x43xbf16>
    %cst_54 = arith.constant dense<0.000000e+00> : vector<32x43xf32>
    %325 = tpu.matmul %323, %324, %cst_54 {dimension_numbers = #tpu.dot_dimension_numbers<[1], [0], [0], [1], [0, 0, 1, 1], [], []>} : vector<32x16xbf16>, vector<16x43xbf16>, vector<32x43xf32> -> vector<32x43xf32>
    %326 = arith.addf %321, %325 : vector<32x43xf32>
    %327 = vector.extract_strided_slice %315 {offsets = [2, 0, 0], sizes = [1, 32, 16], strides = [1, 1, 1]} : vector<9x32x16xbf16> to vector<1x32x16xbf16>
    %328 = vector.shape_cast %327 : vector<1x32x16xbf16> to vector<32x16xbf16>
    %329 = vector.extract_strided_slice %314 {offsets = [0, 2], sizes = [16, 43], strides = [1, 1]} : vector<16x57xbf16> to vector<16x43xbf16>
    %cst_55 = arith.constant dense<0.000000e+00> : vector<32x43xf32>
    %330 = tpu.matmul %328, %329, %cst_55 {dimension_numbers = #tpu.dot_dimension_numbers<[1], [0], [0], [1], [0, 0, 1, 1], [], []>} : vector<32x16xbf16>, vector<16x43xbf16>, vector<32x43xf32> -> vector<32x43xf32>
    %331 = arith.addf %326, %330 : vector<32x43xf32>
    %332 = vector.extract_strided_slice %315 {offsets = [3, 0, 0], sizes = [1, 32, 16], strides = [1, 1, 1]} : vector<9x32x16xbf16> to vector<1x32x16xbf16>
    %333 = vector.shape_cast %332 : vector<1x32x16xbf16> to vector<32x16xbf16>
    %334 = vector.extract_strided_slice %314 {offsets = [0, 6], sizes = [16, 43], strides = [1, 1]} : vector<16x57xbf16> to vector<16x43xbf16>
    %cst_56 = arith.constant dense<0.000000e+00> : vector<32x43xf32>
    %335 = tpu.matmul %333, %334, %cst_56 {dimension_numbers = #tpu.dot_dimension_numbers<[1], [0], [0], [1], [0, 0, 1, 1], [], []>} : vector<32x16xbf16>, vector<16x43xbf16>, vector<32x43xf32> -> vector<32x43xf32>
    %336 = arith.addf %331, %335 : vector<32x43xf32>
    %337 = vector.extract_strided_slice %315 {offsets = [4, 0, 0], sizes = [1, 32, 16], strides = [1, 1, 1]} : vector<9x32x16xbf16> to vector<1x32x16xbf16>
    %338 = vector.shape_cast %337 : vector<1x32x16xbf16> to vector<32x16xbf16>
    %339 = vector.extract_strided_slice %314 {offsets = [0, 7], sizes = [16, 43], strides = [1, 1]} : vector<16x57xbf16> to vector<16x43xbf16>
    %cst_57 = arith.constant dense<0.000000e+00> : vector<32x43xf32>
    %340 = tpu.matmul %338, %339, %cst_57 {dimension_numbers = #tpu.dot_dimension_numbers<[1], [0], [0], [1], [0, 0, 1, 1], [], []>} : vector<32x16xbf16>, vector<16x43xbf16>, vector<32x43xf32> -> vector<32x43xf32>
    %341 = arith.addf %336, %340 : vector<32x43xf32>
    %342 = vector.extract_strided_slice %315 {offsets = [5, 0, 0], sizes = [1, 32, 16], strides = [1, 1, 1]} : vector<9x32x16xbf16> to vector<1x32x16xbf16>
    %343 = vector.shape_cast %342 : vector<1x32x16xbf16> to vector<32x16xbf16>
    %344 = vector.extract_strided_slice %314 {offsets = [0, 8], sizes = [16, 43], strides = [1, 1]} : vector<16x57xbf16> to vector<16x43xbf16>
    %cst_58 = arith.constant dense<0.000000e+00> : vector<32x43xf32>
    %345 = tpu.matmul %343, %344, %cst_58 {dimension_numbers = #tpu.dot_dimension_numbers<[1], [0], [0], [1], [0, 0, 1, 1], [], []>} : vector<32x16xbf16>, vector<16x43xbf16>, vector<32x43xf32> -> vector<32x43xf32>
    %346 = arith.addf %341, %345 : vector<32x43xf32>
    %347 = vector.extract_strided_slice %315 {offsets = [6, 0, 0], sizes = [1, 32, 16], strides = [1, 1, 1]} : vector<9x32x16xbf16> to vector<1x32x16xbf16>
    %348 = vector.shape_cast %347 : vector<1x32x16xbf16> to vector<32x16xbf16>
    %349 = vector.extract_strided_slice %314 {offsets = [0, 12], sizes = [16, 43], strides = [1, 1]} : vector<16x57xbf16> to vector<16x43xbf16>
    %cst_59 = arith.constant dense<0.000000e+00> : vector<32x43xf32>
    %350 = tpu.matmul %348, %349, %cst_59 {dimension_numbers = #tpu.dot_dimension_numbers<[1], [0], [0], [1], [0, 0, 1, 1], [], []>} : vector<32x16xbf16>, vector<16x43xbf16>, vector<32x43xf32> -> vector<32x43xf32>
    %351 = arith.addf %346, %350 : vector<32x43xf32>
    %352 = vector.extract_strided_slice %315 {offsets = [7, 0, 0], sizes = [1, 32, 16], strides = [1, 1, 1]} : vector<9x32x16xbf16> to vector<1x32x16xbf16>
    %353 = vector.shape_cast %352 : vector<1x32x16xbf16> to vector<32x16xbf16>
    %354 = vector.extract_strided_slice %314 {offsets = [0, 13], sizes = [16, 43], strides = [1, 1]} : vector<16x57xbf16> to vector<16x43xbf16>
    %cst_60 = arith.constant dense<0.000000e+00> : vector<32x43xf32>
    %355 = tpu.matmul %353, %354, %cst_60 {dimension_numbers = #tpu.dot_dimension_numbers<[1], [0], [0], [1], [0, 0, 1, 1], [], []>} : vector<32x16xbf16>, vector<16x43xbf16>, vector<32x43xf32> -> vector<32x43xf32>
    %356 = arith.addf %351, %355 : vector<32x43xf32>
    %357 = vector.extract_strided_slice %315 {offsets = [8, 0, 0], sizes = [1, 32, 16], strides = [1, 1, 1]} : vector<9x32x16xbf16> to vector<1x32x16xbf16>
    %358 = vector.shape_cast %357 : vector<1x32x16xbf16> to vector<32x16xbf16>
    %359 = vector.extract_strided_slice %314 {offsets = [0, 14], sizes = [16, 43], strides = [1, 1]} : vector<16x57xbf16> to vector<16x43xbf16>
    %cst_61 = arith.constant dense<0.000000e+00> : vector<32x43xf32>
    %360 = tpu.matmul %358, %359, %cst_61 {dimension_numbers = #tpu.dot_dimension_numbers<[1], [0], [0], [1], [0, 0, 1, 1], [], []>} : vector<32x16xbf16>, vector<16x43xbf16>, vector<32x43xf32> -> vector<32x43xf32>
    %361 = arith.addf %356, %360 : vector<32x43xf32>
    %c0_62 = arith.constant 0 : index
    %c0_63 = arith.constant 0 : index
    %362 = vector.load %arg11[%c0_62, %c0_63] : memref<32x1xf32, #tpu.memory_space<vmem>>, vector<32x1xf32>
    %c0_64 = arith.constant 0 : index
    %c0_65 = arith.constant 0 : index
    %363 = vector.load %arg12[%c0_64, %c0_65] : memref<32x1xf32, #tpu.memory_space<vmem>>, vector<32x1xf32>
    %364 = vector.broadcast %362 : vector<32x1xf32> to vector<32x43xf32>
    %365 = arith.mulf %361, %364 : vector<32x43xf32>
    %366 = vector.broadcast %363 : vector<32x1xf32> to vector<32x43xf32>
    %367 = arith.addf %365, %366 : vector<32x43xf32>
    %cst_66 = arith.constant 0.000000e+00 : f32
    %368 = vector.broadcast %cst_66 : f32 to vector<32x43xf32>
    %369 = arith.maximumf %367, %368 : vector<32x43xf32>
    %370 = vector.extract_strided_slice %369 {offsets = [0, 0], sizes = [32, 42], strides = [1, 1]} : vector<32x43xf32> to vector<32x42xf32>
    %371 = vector.extract_strided_slice %369 {offsets = [0, 1], sizes = [32, 42], strides = [1, 1]} : vector<32x43xf32> to vector<32x42xf32>
    %372 = arith.maximumf %370, %371 : vector<32x42xf32>
    %373 = vector.extract_strided_slice %372 {offsets = [0, 0], sizes = [32, 36], strides = [1, 1]} : vector<32x42xf32> to vector<32x36xf32>
    %374 = vector.extract_strided_slice %372 {offsets = [0, 6], sizes = [32, 36], strides = [1, 1]} : vector<32x42xf32> to vector<32x36xf32>
    %375 = arith.maximumf %373, %374 : vector<32x36xf32>
    %c0_67 = arith.constant 0 : index
    %c0_68 = arith.constant 0 : index
    %376 = vector.load %arg13[%c0_67, %c0_68] : memref<36x31xf32, #tpu.memory_space<vmem>>, vector<36x31xf32>
    %cst_69 = arith.constant dense<0.000000e+00> : vector<32x31xf32>
    %377 = tpu.matmul %375, %376, %cst_69 {dimension_numbers = #tpu.dot_dimension_numbers<[1], [0], [0], [1], [0, 0, 1, 1], [], []>} : vector<32x36xf32>, vector<36x31xf32>, vector<32x31xf32> -> vector<32x31xf32>
    %378 = arith.truncf %377 : vector<32x31xf32> to vector<32x31xbf16>
    %c0_70 = arith.constant 0 : index
    %c0_71 = arith.constant 0 : index
    %c0_72 = arith.constant 0 : index
    %379 = vector.load %arg14[%c0_70, %c0_71, %c0_72] : memref<9x32x32xbf16, #tpu.memory_space<vmem>>, vector<9x32x32xbf16>
    %cst_73 = arith.constant 0.000000e+00 : f32
    %380 = vector.broadcast %cst_73 : f32 to vector<32x21xf32>
    %381 = vector.extract_strided_slice %379 {offsets = [0, 0, 0], sizes = [1, 32, 32], strides = [1, 1, 1]} : vector<9x32x32xbf16> to vector<1x32x32xbf16>
    %382 = vector.shape_cast %381 : vector<1x32x32xbf16> to vector<32x32xbf16>
    %383 = vector.extract_strided_slice %378 {offsets = [0, 0], sizes = [32, 21], strides = [1, 1]} : vector<32x31xbf16> to vector<32x21xbf16>
    %cst_74 = arith.constant dense<0.000000e+00> : vector<32x21xf32>
    %384 = tpu.matmul %382, %383, %cst_74 {dimension_numbers = #tpu.dot_dimension_numbers<[1], [0], [0], [1], [0, 0, 1, 1], [], []>} : vector<32x32xbf16>, vector<32x21xbf16>, vector<32x21xf32> -> vector<32x21xf32>
    %385 = arith.addf %380, %384 : vector<32x21xf32>
    %386 = vector.extract_strided_slice %379 {offsets = [1, 0, 0], sizes = [1, 32, 32], strides = [1, 1, 1]} : vector<9x32x32xbf16> to vector<1x32x32xbf16>
    %387 = vector.shape_cast %386 : vector<1x32x32xbf16> to vector<32x32xbf16>
    %388 = vector.extract_strided_slice %378 {offsets = [0, 1], sizes = [32, 21], strides = [1, 1]} : vector<32x31xbf16> to vector<32x21xbf16>
    %cst_75 = arith.constant dense<0.000000e+00> : vector<32x21xf32>
    %389 = tpu.matmul %387, %388, %cst_75 {dimension_numbers = #tpu.dot_dimension_numbers<[1], [0], [0], [1], [0, 0, 1, 1], [], []>} : vector<32x32xbf16>, vector<32x21xbf16>, vector<32x21xf32> -> vector<32x21xf32>
    %390 = arith.addf %385, %389 : vector<32x21xf32>
    %391 = vector.extract_strided_slice %379 {offsets = [2, 0, 0], sizes = [1, 32, 32], strides = [1, 1, 1]} : vector<9x32x32xbf16> to vector<1x32x32xbf16>
    %392 = vector.shape_cast %391 : vector<1x32x32xbf16> to vector<32x32xbf16>
    %393 = vector.extract_strided_slice %378 {offsets = [0, 2], sizes = [32, 21], strides = [1, 1]} : vector<32x31xbf16> to vector<32x21xbf16>
    %cst_76 = arith.constant dense<0.000000e+00> : vector<32x21xf32>
    %394 = tpu.matmul %392, %393, %cst_76 {dimension_numbers = #tpu.dot_dimension_numbers<[1], [0], [0], [1], [0, 0, 1, 1], [], []>} : vector<32x32xbf16>, vector<32x21xbf16>, vector<32x21xf32> -> vector<32x21xf32>
    %395 = arith.addf %390, %394 : vector<32x21xf32>
    %396 = vector.extract_strided_slice %379 {offsets = [3, 0, 0], sizes = [1, 32, 32], strides = [1, 1, 1]} : vector<9x32x32xbf16> to vector<1x32x32xbf16>
    %397 = vector.shape_cast %396 : vector<1x32x32xbf16> to vector<32x32xbf16>
    %398 = vector.extract_strided_slice %378 {offsets = [0, 4], sizes = [32, 21], strides = [1, 1]} : vector<32x31xbf16> to vector<32x21xbf16>
    %cst_77 = arith.constant dense<0.000000e+00> : vector<32x21xf32>
    %399 = tpu.matmul %397, %398, %cst_77 {dimension_numbers = #tpu.dot_dimension_numbers<[1], [0], [0], [1], [0, 0, 1, 1], [], []>} : vector<32x32xbf16>, vector<32x21xbf16>, vector<32x21xf32> -> vector<32x21xf32>
    %400 = arith.addf %395, %399 : vector<32x21xf32>
    %401 = vector.extract_strided_slice %379 {offsets = [4, 0, 0], sizes = [1, 32, 32], strides = [1, 1, 1]} : vector<9x32x32xbf16> to vector<1x32x32xbf16>
    %402 = vector.shape_cast %401 : vector<1x32x32xbf16> to vector<32x32xbf16>
    %403 = vector.extract_strided_slice %378 {offsets = [0, 5], sizes = [32, 21], strides = [1, 1]} : vector<32x31xbf16> to vector<32x21xbf16>
    %cst_78 = arith.constant dense<0.000000e+00> : vector<32x21xf32>
    %404 = tpu.matmul %402, %403, %cst_78 {dimension_numbers = #tpu.dot_dimension_numbers<[1], [0], [0], [1], [0, 0, 1, 1], [], []>} : vector<32x32xbf16>, vector<32x21xbf16>, vector<32x21xf32> -> vector<32x21xf32>
    %405 = arith.addf %400, %404 : vector<32x21xf32>
    %406 = vector.extract_strided_slice %379 {offsets = [5, 0, 0], sizes = [1, 32, 32], strides = [1, 1, 1]} : vector<9x32x32xbf16> to vector<1x32x32xbf16>
    %407 = vector.shape_cast %406 : vector<1x32x32xbf16> to vector<32x32xbf16>
    %408 = vector.extract_strided_slice %378 {offsets = [0, 6], sizes = [32, 21], strides = [1, 1]} : vector<32x31xbf16> to vector<32x21xbf16>
    %cst_79 = arith.constant dense<0.000000e+00> : vector<32x21xf32>
    %409 = tpu.matmul %407, %408, %cst_79 {dimension_numbers = #tpu.dot_dimension_numbers<[1], [0], [0], [1], [0, 0, 1, 1], [], []>} : vector<32x32xbf16>, vector<32x21xbf16>, vector<32x21xf32> -> vector<32x21xf32>
    %410 = arith.addf %405, %409 : vector<32x21xf32>
    %411 = vector.extract_strided_slice %379 {offsets = [6, 0, 0], sizes = [1, 32, 32], strides = [1, 1, 1]} : vector<9x32x32xbf16> to vector<1x32x32xbf16>
    %412 = vector.shape_cast %411 : vector<1x32x32xbf16> to vector<32x32xbf16>
    %413 = vector.extract_strided_slice %378 {offsets = [0, 8], sizes = [32, 21], strides = [1, 1]} : vector<32x31xbf16> to vector<32x21xbf16>
    %cst_80 = arith.constant dense<0.000000e+00> : vector<32x21xf32>
    %414 = tpu.matmul %412, %413, %cst_80 {dimension_numbers = #tpu.dot_dimension_numbers<[1], [0], [0], [1], [0, 0, 1, 1], [], []>} : vector<32x32xbf16>, vector<32x21xbf16>, vector<32x21xf32> -> vector<32x21xf32>
    %415 = arith.addf %410, %414 : vector<32x21xf32>
    %416 = vector.extract_strided_slice %379 {offsets = [7, 0, 0], sizes = [1, 32, 32], strides = [1, 1, 1]} : vector<9x32x32xbf16> to vector<1x32x32xbf16>
    %417 = vector.shape_cast %416 : vector<1x32x32xbf16> to vector<32x32xbf16>
    %418 = vector.extract_strided_slice %378 {offsets = [0, 9], sizes = [32, 21], strides = [1, 1]} : vector<32x31xbf16> to vector<32x21xbf16>
    %cst_81 = arith.constant dense<0.000000e+00> : vector<32x21xf32>
    %419 = tpu.matmul %417, %418, %cst_81 {dimension_numbers = #tpu.dot_dimension_numbers<[1], [0], [0], [1], [0, 0, 1, 1], [], []>} : vector<32x32xbf16>, vector<32x21xbf16>, vector<32x21xf32> -> vector<32x21xf32>
    %420 = arith.addf %415, %419 : vector<32x21xf32>
    %421 = vector.extract_strided_slice %379 {offsets = [8, 0, 0], sizes = [1, 32, 32], strides = [1, 1, 1]} : vector<9x32x32xbf16> to vector<1x32x32xbf16>
    %422 = vector.shape_cast %421 : vector<1x32x32xbf16> to vector<32x32xbf16>
    %423 = vector.extract_strided_slice %378 {offsets = [0, 10], sizes = [32, 21], strides = [1, 1]} : vector<32x31xbf16> to vector<32x21xbf16>
    %cst_82 = arith.constant dense<0.000000e+00> : vector<32x21xf32>
    %424 = tpu.matmul %422, %423, %cst_82 {dimension_numbers = #tpu.dot_dimension_numbers<[1], [0], [0], [1], [0, 0, 1, 1], [], []>} : vector<32x32xbf16>, vector<32x21xbf16>, vector<32x21xf32> -> vector<32x21xf32>
    %425 = arith.addf %420, %424 : vector<32x21xf32>
    %c0_83 = arith.constant 0 : index
    %c0_84 = arith.constant 0 : index
    %426 = vector.load %arg15[%c0_83, %c0_84] : memref<32x1xf32, #tpu.memory_space<vmem>>, vector<32x1xf32>
    %c0_85 = arith.constant 0 : index
    %c0_86 = arith.constant 0 : index
    %427 = vector.load %arg16[%c0_85, %c0_86] : memref<32x1xf32, #tpu.memory_space<vmem>>, vector<32x1xf32>
    %428 = vector.broadcast %426 : vector<32x1xf32> to vector<32x21xf32>
    %429 = arith.mulf %425, %428 : vector<32x21xf32>
    %430 = vector.broadcast %427 : vector<32x1xf32> to vector<32x21xf32>
    %431 = arith.addf %429, %430 : vector<32x21xf32>
    %cst_87 = arith.constant 0.000000e+00 : f32
    %432 = vector.broadcast %cst_87 : f32 to vector<32x21xf32>
    %433 = arith.maximumf %431, %432 : vector<32x21xf32>
    %434 = vector.extract_strided_slice %433 {offsets = [0, 0], sizes = [32, 20], strides = [1, 1]} : vector<32x21xf32> to vector<32x20xf32>
    %435 = vector.extract_strided_slice %433 {offsets = [0, 1], sizes = [32, 20], strides = [1, 1]} : vector<32x21xf32> to vector<32x20xf32>
    %436 = arith.maximumf %434, %435 : vector<32x20xf32>
    %437 = vector.extract_strided_slice %436 {offsets = [0, 0], sizes = [32, 16], strides = [1, 1]} : vector<32x20xf32> to vector<32x16xf32>
    %438 = vector.extract_strided_slice %436 {offsets = [0, 4], sizes = [32, 16], strides = [1, 1]} : vector<32x20xf32> to vector<32x16xf32>
    %439 = arith.maximumf %437, %438 : vector<32x16xf32>
    %440 = vector.extract_strided_slice %439 {offsets = [0, 0], sizes = [32, 8], strides = [1, 1]} : vector<32x16xf32> to vector<32x8xf32>
    %441 = arith.truncf %440 : vector<32x8xf32> to vector<32x8xbf16>
    %c0_88 = arith.constant 0 : index
    %c0_89 = arith.constant 0 : index
    %442 = vector.load %arg17[%c0_88, %c0_89] : memref<64x32xbf16, #tpu.memory_space<vmem>>, vector<64x32xbf16>
    %cst_90 = arith.constant dense<0.000000e+00> : vector<64x8xf32>
    %443 = tpu.matmul %442, %441, %cst_90 {dimension_numbers = #tpu.dot_dimension_numbers<[1], [0], [0], [1], [0, 0, 1, 1], [], []>} : vector<64x32xbf16>, vector<32x8xbf16>, vector<64x8xf32> -> vector<64x8xf32>
    %c0_91 = arith.constant 0 : index
    %c0_92 = arith.constant 0 : index
    %444 = vector.load %arg18[%c0_91, %c0_92] : memref<64x1xf32, #tpu.memory_space<vmem>>, vector<64x1xf32>
    %445 = vector.broadcast %444 : vector<64x1xf32> to vector<64x8xf32>
    %446 = arith.addf %443, %445 : vector<64x8xf32>
    %cst_93 = arith.constant 0.000000e+00 : f32
    %447 = vector.broadcast %cst_93 : f32 to vector<64x8xf32>
    %448 = arith.maximumf %446, %447 : vector<64x8xf32>
    %449 = arith.truncf %448 : vector<64x8xf32> to vector<64x8xbf16>
    %c0_94 = arith.constant 0 : index
    %c0_95 = arith.constant 0 : index
    %450 = vector.load %arg19[%c0_94, %c0_95] : memref<8x64xbf16, #tpu.memory_space<vmem>>, vector<8x64xbf16>
    %cst_96 = arith.constant dense<0.000000e+00> : vector<8x8xf32>
    %451 = tpu.matmul %450, %449, %cst_96 {dimension_numbers = #tpu.dot_dimension_numbers<[1], [0], [0], [1], [0, 0, 1, 1], [], []>} : vector<8x64xbf16>, vector<64x8xbf16>, vector<8x8xf32> -> vector<8x8xf32>
    %c0_97 = arith.constant 0 : index
    %c0_98 = arith.constant 0 : index
    %452 = vector.load %arg20[%c0_97, %c0_98] : memref<8x1xf32, #tpu.memory_space<vmem>>, vector<8x1xf32>
    %453 = vector.broadcast %452 : vector<8x1xf32> to vector<8x8xf32>
    %454 = arith.addf %451, %453 : vector<8x8xf32>
    %455 = vector.extract_strided_slice %454 {offsets = [0, 0], sizes = [5, 1], strides = [1, 1]} : vector<8x8xf32> to vector<5x1xf32>
    %c0_99 = arith.constant 0 : index
    %c0_100 = arith.constant 0 : index
    %c0_101 = arith.constant 0 : index
    %456 = vector.load %arg21[%c0_99, %c0_100, %c0_101] : memref<1x5x1xf32, #tpu.memory_space<vmem>>, vector<1x5x1xf32>
    %457 = vector.shape_cast %456 : vector<1x5x1xf32> to vector<5x1xf32>
    %458 = vector.shape_cast %455 : vector<5x1xf32> to vector<1x5x1xf32>
    tpu.vector_store %arg21[%c0_99, %c0_100, %c0_101], %458 {strides = array<i32>} : memref<1x5x1xf32, #tpu.memory_space<vmem>>, vector<1x5x1xf32>,
    return
  }
  func.func @transform_0(%arg0: i32) -> (i32, i32, i32) {
    %c0_i32 = arith.constant 0 : i32
    %c0_i32_0 = arith.constant 0 : i32
    %c0_i32_1 = arith.constant 0 : i32
    return %arg0, %c0_i32, %c0_i32_0 : i32, i32, i32
  }
  func.func @transform_1(%arg0: i32) -> (i32, i32) {
    %c0_i32 = arith.constant 0 : i32
    %c0_i32_0 = arith.constant 0 : i32
    %c0_i32_1 = arith.constant 0 : i32
    return %c0_i32, %c0_i32_0 : i32, i32
  }
  func.func @transform_2(%arg0: i32) -> (i32, i32) {
    %c0_i32 = arith.constant 0 : i32
    %c0_i32_0 = arith.constant 0 : i32
    %c0_i32_1 = arith.constant 0 : i32
    return %c0_i32, %c0_i32_0 : i32, i32
  }
  func.func @transform_3(%arg0: i32) -> (i32, i32) {
    %c0_i32 = arith.constant 0 : i32
    %c0_i32_0 = arith.constant 0 : i32
    %c0_i32_1 = arith.constant 0 : i32
    return %c0_i32, %c0_i32_0 : i32, i32
  }
  func.func @transform_4(%arg0: i32) -> (i32, i32) {
    %c0_i32 = arith.constant 0 : i32
    %c0_i32_0 = arith.constant 0 : i32
    %c0_i32_1 = arith.constant 0 : i32
    return %c0_i32, %c0_i32_0 : i32, i32
  }
  func.func @transform_5(%arg0: i32) -> (i32, i32, i32) {
    %c0_i32 = arith.constant 0 : i32
    %c0_i32_0 = arith.constant 0 : i32
    %c0_i32_1 = arith.constant 0 : i32
    %c0_i32_2 = arith.constant 0 : i32
    return %c0_i32, %c0_i32_0, %c0_i32_1 : i32, i32, i32
  }
  func.func @transform_6(%arg0: i32) -> (i32, i32) {
    %c0_i32 = arith.constant 0 : i32
    %c0_i32_0 = arith.constant 0 : i32
    %c0_i32_1 = arith.constant 0 : i32
    return %c0_i32, %c0_i32_0 : i32, i32
  }
  func.func @transform_7(%arg0: i32) -> (i32, i32) {
    %c0_i32 = arith.constant 0 : i32
    %c0_i32_0 = arith.constant 0 : i32
    %c0_i32_1 = arith.constant 0 : i32
    return %c0_i32, %c0_i32_0 : i32, i32
  }
  func.func @transform_8(%arg0: i32) -> (i32, i32) {
    %c0_i32 = arith.constant 0 : i32
    %c0_i32_0 = arith.constant 0 : i32
    %c0_i32_1 = arith.constant 0 : i32
    return %c0_i32, %c0_i32_0 : i32, i32
  }
  func.func @transform_9(%arg0: i32) -> (i32, i32, i32) {
    %c0_i32 = arith.constant 0 : i32
    %c0_i32_0 = arith.constant 0 : i32
    %c0_i32_1 = arith.constant 0 : i32
    %c0_i32_2 = arith.constant 0 : i32
    return %c0_i32, %c0_i32_0, %c0_i32_1 : i32, i32, i32
  }
  func.func @transform_10(%arg0: i32) -> (i32, i32) {
    %c0_i32 = arith.constant 0 : i32
    %c0_i32_0 = arith.constant 0 : i32
    %c0_i32_1 = arith.constant 0 : i32
    return %c0_i32, %c0_i32_0 : i32, i32
  }
  func.func @transform_11(%arg0: i32) -> (i32, i32) {
    %c0_i32 = arith.constant 0 : i32
    %c0_i32_0 = arith.constant 0 : i32
    %c0_i32_1 = arith.constant 0 : i32
    return %c0_i32, %c0_i32_0 : i32, i32
  }
  func.func @transform_12(%arg0: i32) -> (i32, i32) {
    %c0_i32 = arith.constant 0 : i32
    %c0_i32_0 = arith.constant 0 : i32
    %c0_i32_1 = arith.constant 0 : i32
    return %c0_i32, %c0_i32_0 : i32, i32
  }
  func.func @transform_13(%arg0: i32) -> (i32, i32, i32) {
    %c0_i32 = arith.constant 0 : i32
    %c0_i32_0 = arith.constant 0 : i32
    %c0_i32_1 = arith.constant 0 : i32
    %c0_i32_2 = arith.constant 0 : i32
    return %c0_i32, %c0_i32_0, %c0_i32_1 : i32, i32, i32
  }
  func.func @transform_14(%arg0: i32) -> (i32, i32) {
    %c0_i32 = arith.constant 0 : i32
    %c0_i32_0 = arith.constant 0 : i32
    %c0_i32_1 = arith.constant 0 : i32
    return %c0_i32, %c0_i32_0 : i32, i32
  }
  func.func @transform_15(%arg0: i32) -> (i32, i32) {
    %c0_i32 = arith.constant 0 : i32
    %c0_i32_0 = arith.constant 0 : i32
    %c0_i32_1 = arith.constant 0 : i32
    return %c0_i32, %c0_i32_0 : i32, i32
  }
  func.func @transform_16(%arg0: i32) -> (i32, i32) {
    %c0_i32 = arith.constant 0 : i32
    %c0_i32_0 = arith.constant 0 : i32
    %c0_i32_1 = arith.constant 0 : i32
    return %c0_i32, %c0_i32_0 : i32, i32
  }
  func.func @transform_17(%arg0: i32) -> (i32, i32) {
    %c0_i32 = arith.constant 0 : i32
    %c0_i32_0 = arith.constant 0 : i32
    %c0_i32_1 = arith.constant 0 : i32
    return %c0_i32, %c0_i32_0 : i32, i32
  }
  func.func @transform_18(%arg0: i32) -> (i32, i32) {
    %c0_i32 = arith.constant 0 : i32
    %c0_i32_0 = arith.constant 0 : i32
    %c0_i32_1 = arith.constant 0 : i32
    return %c0_i32, %c0_i32_0 : i32, i32
  }
  func.func @transform_19(%arg0: i32) -> (i32, i32) {
    %c0_i32 = arith.constant 0 : i32
    %c0_i32_0 = arith.constant 0 : i32
    %c0_i32_1 = arith.constant 0 : i32
    return %c0_i32, %c0_i32_0 : i32, i32
  }
  func.func @transform_20(%arg0: i32) -> (i32, i32, i32) {
    %c0_i32 = arith.constant 0 : i32
    %c0_i32_0 = arith.constant 0 : i32
    %c0_i32_1 = arith.constant 0 : i32
    return %arg0, %c0_i32, %c0_i32_0 : i32, i32, i32
  }
}

</mosaic_0001>

<bundles_post_ra>
// kernel: _lambda_.1
= control target key start
LH: loop header
LB: loop body
LE: loop exit
PB: predicated region body
PF: predicated region fallthrough
CT: control target
= control target key end

     0   :  { %s9272_s0 = inlined_call_operand.vmem [shape: f32[2,1,505], index: 0, kind: input, shape index: {}]   ;;  %s9273_s1 = inlined_call_operand.hbm [shape: f32[8,25], index: 1, kind: input, shape index: {}]   ;;  %s9274_s2 = inlined_call_operand.hbm [shape: f32[8,1], index: 2, kind: input, shape index: {}]   ;;  %s9275_s3 = inlined_call_operand.hbm [shape: f32[8,1], index: 3, kind: input, shape index: {}]   ;;  %s9276_s4 = inlined_call_operand.hbm [shape: f32[400,209], index: 4, kind: input, shape index: {}]   ;;  %s9277_s5 = inlined_call_operand.vmem [shape: bf16[25,16,8], index: 5, kind: input, shape index: {}]   ;;  %s9278_s6 = inlined_call_operand.hbm [shape: f32[16,1], index: 6, kind: input, shape index: {}]   ;;  %s9279_s7 = inlined_call_operand.hbm [shape: f32[16,1], index: 7, kind: input, shape index: {}]   ;;  %s9280_s8 = inlined_call_operand.hbm [shape: f32[144,57], index: 8, kind: input, shape index: {}]   ;;  %s9281_s9 = inlined_call_operand.hbm [shape: bf16[9,32,16], index: 9, kind: input, shape index: {}]   ;;  %s9282_s10 = inlined_call_operand.hbm [shape: f32[32,1], index: 10, kind: input, shape index: {}]   ;;  %s9283_s11 = inlined_call_operand.hbm [shape: f32[32,1], index: 11, kind: input, shape index: {}]   ;;  %s9284_s12 = inlined_call_operand.vmem [shape: f32[36,31], index: 12, kind: input, shape index: {}]   ;;  %s9285_s13 = inlined_call_operand.hbm [shape: bf16[9,32,32], index: 13, kind: input, shape index: {}]   ;;  %s9286_s14 = inlined_call_operand.hbm [shape: f32[32,1], index: 14, kind: input, shape index: {}]   ;;  %s9287_s15 = inlined_call_operand.hbm [shape: f32[32,1], index: 15, kind: input, shape index: {}]   ;;  %s9288_s16 = inlined_call_operand.hbm [shape: bf16[64,32], index: 16, kind: input, shape index: {}]   ;;  %s9289_s17 = inlined_call_operand.hbm [shape: f32[64,1], index: 17, kind: input, shape index: {}]   ;;  %s9290_s18 = inlined_call_operand.vmem [shape: bf16[8,64], index: 18, kind: input, shape index: {}]   ;;  %s9291_s19 = inlined_call_operand.vmem [shape: f32[8,1], index: 19, kind: input, shape index: {}]   ;;  %s9292_s20 = inlined_call_operand.vmem [shape: f32[2,5,1], index: 20, kind: output, shape index: {}]  }
   0x1   :  { %9330 = sst [smem:[#allocation60_spill]] %s9272_s0 }
   0x2   :  { %9331 = sst [smem:[#allocation61_spill]] %s9273_s1 }
   0x3   :  { %9332 = sst [smem:[#allocation62_spill]] %s9274_s2 }
   0x4   :  { %9333 = sst [smem:[#allocation63_spill]] %s9275_s3 }
   0x5   :  { %9334 = sst [smem:[#allocation64_spill]] %s9276_s4 }
   0x6   :  { %9335 = sst [smem:[#allocation65_spill]] %s9277_s5 }
   0x7   :  { %9336 = sst [smem:[#allocation66_spill]] %s9279_s7 }
   0x8   :  { %9337 = sst [smem:[#allocation67_spill]] %s9281_s9 }
   0x9   :  { %9338 = sst [smem:[#allocation68_spill]] %s9283_s11 }
   0xa   :  { %9339 = sst [smem:[#allocation69_spill]] %s9284_s12 }
   0xb   :  { %9340 = sst [smem:[#allocation70_spill]] %s9290_s18 }
   0xc   :  { %9341 = sst [smem:[#allocation71_spill]] %s9291_s19 }
   0xd   :  { %9342 = sst [smem:[#allocation72_spill]] %s9292_s20 }
   0xe   :  { %25 = vsyncpa [#allocation3], 0 }
   0xf   :  { %26 = vsyncpa [#allocation5], 0 }
  0x10   :  { %27 = vsyncpa [#allocation8], 0 }
  0x11   :  { %28 = vsyncpa [#allocation11], 0 }
  0x12   :  { %29 = vsyncpa [#allocation14], 0 }
  0x13   :  { %30 = vsyncpa [#allocation17], 0 }
  0x14   :  { %31 = vsyncpa [#allocation20], 0 }
  0x15   :  { %32 = vsyncpa [#allocation23], 0  ;;  %s7728_s1 = smov 0  }
  0x16 LB: > { %9343 = sst [smem:[#allocation33_spill]] %s7524_s1  ;;  %s7526_s22 = smov [#allocation4]   ;;  %s7524_s1 = sphi %s7728_s1, %s38_s1  }
  0x17   : > { %s518_s23 = sshll.u32 %s7526_s22, 4  ;;  %s7734_s24 = sadd.s32 4294967295, %s7524_s1   ;;  %s519_s23 = int_to_ptr.vmem [resolvable:$true] %s518_s23 }
  0x18   : > { %p5957_p0 = scmp.ge.s32.totalorder %s7524_s1, 1  ;;  %p494_p1 = scmp.lt.s32.totalorder %s7524_s1, 3 }
  0x19   : > { %p9298_p2 = scmp.eq.s32.totalorder %s7734_s24, 0  ;;  %s7527_s25 = smov [#allocation7]  }
  0x1a   : > { %p7739_p3 = pnand %p5957_p0, %p494_p1  ;;  %s539_s3 = sshll.u32 %s7527_s25, 4  ;;  %s7745_s3 = int_to_ptr.vmem [resolvable:$true] %s539_s3 }
  0x1b   : > { %s7528_s27 = smov [#allocation10]   ;;  %s9346_s30 = sld [smem:[#allocation62_spill]] }
  0x1c   : > { %s9344_s2 = scalar_select %p7739_p3, 1, 0 }
  0x1d   : > { %p6764_p4 = pneg %p7739_p3  ;;  %s7753_s28 = sshll.u32 %s7528_s27, 4  ;;  %s569_s28 = int_to_ptr.vmem [resolvable:$true] %s7753_s28 }
  0x1f   : > { %p7749_p5 = pnand %p9298_p2, %p6764_p4 }
  0x21   : > { %s7066_s0 = scalar_lea.hbm %s9346_s30, 128  ;;  %p7763_p7 = pneg %p7749_p5 }
  0x22   : > { %p7067_p6 = scmp.ne.s32.totalorder %s9346_s30, %s7066_s0  ;;  %p7073_p10 = scmp.lt.u32.totalorder %s7066_s0, %s9346_s30 }
  0x24   : > { %p7069_p8 = pnand %p7763_p7, %p7067_p6 }
  0x26   : > { %p7070_p9 = pneg %p7069_p8 }
  0x28   : > { %p7075_p11 = pnand %p7073_p10, %p7070_p9 }
  0x2a   : > { %7078 = shalt.err (!%p7075_p11)
}
  0x2b   : > { %s7079_s4 = scalar_lea.vmem %s519_s23, 128  ;;  %p7087_p1 = scmp.lt.s32.totalorder %s519_s23, %s519_s23 }
  0x2c   : > { %p7080_p12 = scmp.ne.s32.totalorder %s519_s23, %s7079_s4  ;;  %p7088_p4 = scmp.lt.s32.totalorder %s7079_s4, %s7079_s4 }
  0x2e   : > { %p7082_p13 = pnand %p7080_p12, %p7763_p7  ;;  %p7089_p2 = por %p7088_p4, %p7087_p1 }
  0x30   : > { %p7083_p0 = pneg %p7082_p13 }
  0x32   : > { %p7090_p3 = pnand %p7089_p2, %p7083_p0 }
  0x34   : > { %7093 = shalt.err (!%p7090_p3)
}
  0x35   : > { %6770 = dma.hbm_to_vmem [thread:$0]  (!%p7749_p5), %s9346_s30, 128, %s519_s23, [#allocation5]  }
  0x36   : > { %s9348_s22 = sld [smem:[#allocation64_spill]] }
  0x3c   : > { %s7094_s27 = scalar_lea.hbm %s9348_s22, 12800 }
  0x3d   : > { %p7095_p6 = scmp.ne.s32.totalorder %s9348_s22, %s7094_s27  ;;  %p7101_p2 = scmp.lt.u32.totalorder %s7094_s27, %s9348_s22 }
  0x3f   : > { %p7097_p8 = pnand %p7095_p6, %p7763_p7 }
  0x41   : > { %p7098_p9 = pneg %p7097_p8 }
  0x43   : > { %p7103_p3 = pnand %p7101_p2, %p7098_p9 }
  0x45   : > { %7106 = shalt.err (!%p7103_p3)
}
  0x46   : > { %s7107_s23 = scalar_lea.vmem %s7745_s3, 12800  ;;  %p7115_p13 = scmp.lt.s32.totalorder %s7745_s3, %s7745_s3 }
  0x47   : > { %p7108_p10 = scmp.ne.s32.totalorder %s7745_s3, %s7107_s23  ;;  %p7116_p0 = scmp.lt.s32.totalorder %s7107_s23, %s7107_s23 }
  0x49   : > { %p7110_p11 = pnand %p7108_p10, %p7763_p7  ;;  %p7117_p1 = por %p7116_p0, %p7115_p13 }
  0x4b   : > { %p7111_p12 = pneg %p7110_p11 }
  0x4d   : > { %p7118_p4 = pnand %p7117_p1, %p7111_p12 }
  0x4f   : > { %7121 = shalt.err (!%p7118_p4)
}
  0x50   : > { %s7529_s18 = smov 256   ;;  %s7530_s19 = smov 16  }
  0x51   : > { %6776 = dma.hbm_to_vmem [thread:$0]  (!%p7749_p5), %s9348_s22, 12800, %s7745_s3, [#allocation8], %s7529_s18, %s7529_s18, %s7530_s19  }
  0x52   : > { %s7531_s21 = smov [#allocation13]   ;;  %s9349_s7 = sld [smem:[#allocation66_spill]] }
  0x53   : > { %s594_s1 = sshll.u32 %s7531_s21, 4  ;;  %s595_s1 = int_to_ptr.vmem [resolvable:$true] %s594_s1 }
  0x58   : > { %s7122_s4 = scalar_lea.hbm %s9349_s7, 256 }
  0x59   : > { %p7123_p6 = scmp.ne.s32.totalorder %s9349_s7, %s7122_s4  ;;  %p7129_p2 = scmp.lt.u32.totalorder %s7122_s4, %s9349_s7 }
  0x5b   : > { %p7125_p8 = pnand %p7123_p6, %p7763_p7 }
  0x5d   : > { %p7126_p9 = pneg %p7125_p8 }
  0x5f   : > { %p7131_p3 = pnand %p7129_p2, %p7126_p9 }
  0x61   : > { %7134 = shalt.err (!%p7131_p3)
}
  0x62   : > { %s7135_s3 = scalar_lea.vmem %s569_s28, 256  ;;  %p7143_p13 = scmp.lt.s32.totalorder %s569_s28, %s569_s28 }
  0x63   : > { %p7136_p10 = scmp.ne.s32.totalorder %s569_s28, %s7135_s3  ;;  %p7144_p0 = scmp.lt.s32.totalorder %s7135_s3, %s7135_s3 }
  0x65   : > { %p7138_p11 = pnand %p7136_p10, %p7763_p7  ;;  %p7145_p1 = por %p7144_p0, %p7143_p13 }
  0x67   : > { %p7139_p12 = pneg %p7138_p11 }
  0x69   : > { %p7146_p4 = pnand %p7145_p1, %p7139_p12 }
  0x6b   : > { %7149 = shalt.err (!%p7146_p4)
}
  0x6c   : > { %s9303_s30 = smov 128   ;;  %s9305_s18 = smov 8  }
  0x6d   : > { %6782 = dma.hbm_to_vmem [thread:$0]  (!%p7749_p5), %s9349_s7, 256, %s569_s28, [#allocation11], %s9303_s30, %s9303_s30, %s9305_s18  }
  0x6e   : > { %s9350_s9 = sld [smem:[#allocation67_spill]] }
  0x74   : > { %s7150_s29 = scalar_lea.hbm %s9350_s9, 2304 }
  0x75   : > { %p7151_p6 = scmp.ne.s32.totalorder %s9350_s9, %s7150_s29  ;;  %p7157_p2 = scmp.lt.u32.totalorder %s7150_s29, %s9350_s9 }
  0x77   : > { %p7153_p8 = pnand %p7151_p6, %p7763_p7 }
  0x79   : > { %p7154_p9 = pneg %p7153_p8 }
  0x7b   : > { %p7159_p3 = pnand %p7157_p2, %p7154_p9 }
  0x7d   : > { %7162 = shalt.err (!%p7159_p3)
}
  0x7e   : > { %s7163_s23 = scalar_lea.vmem %s595_s1, 2304  ;;  %p7171_p13 = scmp.lt.s32.totalorder %s595_s1, %s595_s1 }
  0x7f   : > { %p7164_p10 = scmp.ne.s32.totalorder %s595_s1, %s7163_s23  ;;  %p7172_p0 = scmp.lt.s32.totalorder %s7163_s23, %s7163_s23 }
  0x81   : > { %p7166_p11 = pnand %p7164_p10, %p7763_p7  ;;  %p7173_p1 = por %p7172_p0, %p7171_p13 }
  0x83   : > { %p7167_p12 = pneg %p7166_p11 }
  0x85   : > { %p7174_p4 = pnand %p7173_p1, %p7167_p12 }
  0x87   : > { %7177 = shalt.err (!%p7174_p4)
}
  0x88   : > { %s9307_s28 = smov 64   ;;  %s9309_s3 = smov 4  }
  0x89   : > { %6788 = dma.hbm_to_vmem [thread:$0]  (!%p7749_p5), %s9350_s9, 2304, %s595_s1, [#allocation14], %s9307_s28, %s9307_s28, %s9309_s3  }
  0x8a   : > { %s7536_s19 = smov [#allocation16]   ;;  %s7537_s29 = smov [#allocation19]  }
  0x8b   : > { %s620_s20 = sshll.u32 %s7536_s19, 4  ;;  %s649_s21 = sshll.u32 %s7537_s29, 4  ;;  %s621_s20 = int_to_ptr.vmem [resolvable:$true] %s620_s20  ;;  %s650_s21 = int_to_ptr.vmem [resolvable:$true] %s649_s21 }
  0x8c   : > { %s9351_s11 = sld [smem:[#allocation68_spill]] }
  0x92   : > { %s7178_s4 = scalar_lea.hbm %s9351_s11, 512 }
  0x93   : > { %p7179_p6 = scmp.ne.s32.totalorder %s9351_s11, %s7178_s4  ;;  %p7185_p2 = scmp.lt.u32.totalorder %s7178_s4, %s9351_s11 }
  0x95   : > { %p7181_p8 = pnand %p7179_p6, %p7763_p7 }
  0x97   : > { %p7182_p9 = pneg %p7181_p8 }
  0x99   : > { %p7187_p3 = pnand %p7185_p2, %p7182_p9 }
  0x9b   : > { %7190 = shalt.err (!%p7187_p3)
}
  0x9c   : > { %s7191_s1 = scalar_lea.vmem %s621_s20, 512  ;;  %p7199_p13 = scmp.lt.s32.totalorder %s621_s20, %s621_s20 }
  0x9d   : > { %p7192_p10 = scmp.ne.s32.totalorder %s621_s20, %s7191_s1  ;;  %p7200_p0 = scmp.lt.s32.totalorder %s7191_s1, %s7191_s1 }
  0x9f   : > { %p7194_p11 = pnand %p7192_p10, %p7763_p7  ;;  %p7201_p1 = por %p7200_p0, %p7199_p13 }
  0xa1   : > { %p7195_p12 = pneg %p7194_p11 }
  0xa3   : > { %p7202_p4 = pnand %p7201_p1, %p7195_p12 }
  0xa5   : > { %7205 = shalt.err (!%p7202_p4)
}
  0xa6   : > { %s9352_s30 = smov 8   ;;  %s9353_s5 = smov 128  }
  0xa7   : > { %6794 = dma.hbm_to_vmem [thread:$0]  (!%p7749_p5), %s9351_s11, 512, %s621_s20, [#allocation17], %s9353_s5, %s9353_s5, %s9352_s30  }
  0xa8   : > { %s7206_s29 = scalar_lea.hbm %s9286_s14, 512 }
  0xa9   : > { %p7207_p6 = scmp.ne.s32.totalorder %s9286_s14, %s7206_s29  ;;  %p7213_p2 = scmp.lt.u32.totalorder %s7206_s29, %s9286_s14 }
  0xab   : > { %p7209_p8 = pnand %p7207_p6, %p7763_p7 }
  0xad   : > { %p7210_p9 = pneg %p7209_p8 }
  0xaf   : > { %p7215_p3 = pnand %p7213_p2, %p7210_p9 }
  0xb1   : > { %7218 = shalt.err (!%p7215_p3)
}
  0xb2   : > { %s7219_s1 = scalar_lea.vmem %s650_s21, 512  ;;  %p7227_p13 = scmp.lt.s32.totalorder %s650_s21, %s650_s21 }
  0xb3   : > { %p7220_p10 = scmp.ne.s32.totalorder %s650_s21, %s7219_s1  ;;  %p7228_p0 = scmp.lt.s32.totalorder %s7219_s1, %s7219_s1 }
  0xb5   : > { %p7222_p11 = pnand %p7220_p10, %p7763_p7  ;;  %p7229_p1 = por %p7228_p0, %p7227_p13 }
  0xb7   : > { %p7223_p12 = pneg %p7222_p11 }
  0xb9   : > { %p7230_p4 = pnand %p7229_p1, %p7223_p12 }
  0xbb   : > { %7233 = shalt.err (!%p7230_p4)
}
  0xbc   : > { %6800 = dma.hbm_to_vmem [thread:$0]  (!%p7749_p5), %s9286_s14, 512, %s650_s21, [#allocation20], %s9353_s5, %s9353_s5, %s9352_s30  }
  0xbd   : > { %s7538_s18 = smov [#allocation22]   ;;  %s7539_s19 = smov [#allocation2]  }
  0xbe   : > { %s675_s12 = sshll.u32 %s7538_s18, 4  ;;  %s507_s29 = sshll.u32 %s7539_s19, 4  ;;  %s676_s12 = int_to_ptr.vmem [resolvable:$true] %s675_s12  ;;  %s508_s29 = int_to_ptr.vmem [resolvable:$true] %s507_s29 }
  0xbf   : > { %s7234_s4 = scalar_lea.hbm %s9288_s16, 512 }
  0xc0   : > { %p7235_p6 = scmp.ne.s32.totalorder %s9288_s16, %s7234_s4  ;;  %p7241_p2 = scmp.lt.u32.totalorder %s7234_s4, %s9288_s16 }
  0xc2   : > { %p7237_p8 = pnand %p7235_p6, %p7763_p7 }
  0xc4   : > { %p7238_p9 = pneg %p7237_p8 }
  0xc6   : > { %p7243_p3 = pnand %p7241_p2, %p7238_p9 }
  0xc8   : > { %7246 = shalt.err (!%p7243_p3)
}
  0xc9   : > { %s7247_s21 = scalar_lea.vmem %s676_s12, 512  ;;  %p7255_p13 = scmp.lt.s32.totalorder %s676_s12, %s676_s12 }
  0xca   : > { %p7248_p10 = scmp.ne.s32.totalorder %s676_s12, %s7247_s21  ;;  %p7256_p0 = scmp.lt.s32.totalorder %s7247_s21, %s7247_s21 }
  0xcc   : > { %p7250_p11 = pnand %p7248_p10, %p7763_p7  ;;  %p7257_p1 = por %p7256_p0, %p7255_p13 }
  0xce   : > { %p7251_p12 = pneg %p7250_p11 }
  0xd0   : > { %p7258_p4 = pnand %p7257_p1, %p7251_p12 }
  0xd2   : > { %7261 = shalt.err (!%p7258_p4)
}
  0xd3   : > { %s9354_s7 = smov 64   ;;  %s9355_s27 = sld [smem:[#allocation61_spill]] }
  0xd4   : > { %6806 = dma.hbm_to_vmem [thread:$0]  (!%p7749_p5), %s9288_s16, 512, %s676_s12, [#allocation23], %s9354_s7, %s9354_s7, %s9309_s3  }
  0xd9   : > { %s7262_s4 = scalar_lea.hbm %s9355_s27, 128 }
  0xda   : > { %p7263_p6 = scmp.ne.s32.totalorder %s9355_s27, %s7262_s4  ;;  %p7269_p2 = scmp.lt.u32.totalorder %s7262_s4, %s9355_s27 }
  0xdc   : > { %p7265_p8 = pnand %p7263_p6, %p7763_p7 }
  0xde   : > { %p7266_p9 = pneg %p7265_p8 }
  0xe0   : > { %p7271_p3 = pnand %p7269_p2, %p7266_p9 }
  0xe2   : > { %7274 = shalt.err (!%p7271_p3)
}
  0xe3   : > { %s7275_s28 = scalar_lea.vmem %s508_s29, 128  ;;  %p7283_p13 = scmp.lt.s32.totalorder %s508_s29, %s508_s29 }
  0xe4   : > { %p7276_p10 = scmp.ne.s32.totalorder %s508_s29, %s7275_s28  ;;  %p7284_p0 = scmp.lt.s32.totalorder %s7275_s28, %s7275_s28 }
  0xe6   : > { %p7278_p11 = pnand %p7276_p10, %p7763_p7  ;;  %p7285_p1 = por %p7284_p0, %p7283_p13 }
  0xe8   : > { %p7279_p12 = pneg %p7278_p11 }
  0xea   : > { %p7286_p4 = pnand %p7285_p1, %p7279_p12 }
  0xec   : > { %7289 = shalt.err (!%p7286_p4)
}
  0xed   : > { %6767 = dma.hbm_to_vmem [thread:$0]  (!%p7749_p5), %s9355_s27, 128, %s508_s29, [#allocation3]  }
  0xee   : > { %s7540_s19 = smov [#allocation6]   ;;  %s7541_s4 = smov [#allocation9]  }
  0xef   : > { %s529_s0 = sshll.u32 %s7540_s19, 4  ;;  %s555_s23 = sshll.u32 %s7541_s4, 4  ;;  %s530_s0 = int_to_ptr.vmem [resolvable:$true] %s529_s0  ;;  %s556_s23 = int_to_ptr.vmem [resolvable:$true] %s555_s23 }
  0xf0   : > { %s9356_s21 = sld [smem:[#allocation63_spill]] }
  0xf6   : > { %s7290_s3 = scalar_lea.hbm %s9356_s21, 128 }
  0xf7   : > { %p7291_p6 = scmp.ne.s32.totalorder %s9356_s21, %s7290_s3  ;;  %p7297_p2 = scmp.lt.u32.totalorder %s7290_s3, %s9356_s21 }
  0xf9   : > { %p7293_p8 = pnand %p7291_p6, %p7763_p7 }
  0xfb   : > { %p7294_p9 = pneg %p7293_p8 }
  0xfd   : > { %p7299_p3 = pnand %p7297_p2, %p7294_p9 }
  0xff   : > { %7302 = shalt.err (!%p7299_p3)
}
 0x100   : > { %s7303_s29 = scalar_lea.vmem %s530_s0, 128  ;;  %p7311_p13 = scmp.lt.s32.totalorder %s530_s0, %s530_s0 }
 0x101   : > { %p7304_p10 = scmp.ne.s32.totalorder %s530_s0, %s7303_s29  ;;  %p7312_p0 = scmp.lt.s32.totalorder %s7303_s29, %s7303_s29 }
 0x103   : > { %p7306_p11 = pnand %p7304_p10, %p7763_p7  ;;  %p7313_p1 = por %p7312_p0, %p7311_p13 }
 0x105   : > { %p7307_p12 = pneg %p7306_p11 }
 0x107   : > { %p7314_p4 = pnand %p7313_p1, %p7307_p12 }
 0x109   : > { %7317 = shalt.err (!%p7314_p4)
}
 0x10a   : > { %6773 = dma.hbm_to_vmem [thread:$0]  (!%p7749_p5), %s9356_s21, 128, %s530_s0, [#allocation5]  }
 0x10b   : > { %s7318_s19 = scalar_lea.hbm %s9278_s6, 256 }
 0x10c   : > { %p7319_p6 = scmp.ne.s32.totalorder %s9278_s6, %s7318_s19  ;;  %p7325_p2 = scmp.lt.u32.totalorder %s7318_s19, %s9278_s6 }
 0x10e   : > { %p7321_p8 = pnand %p7319_p6, %p7763_p7 }
 0x110   : > { %p7322_p9 = pneg %p7321_p8 }
 0x112   : > { %p7327_p3 = pnand %p7325_p2, %p7322_p9 }
 0x114   : > { %7330 = shalt.err (!%p7327_p3)
}
 0x115   : > { %s7331_s12 = scalar_lea.vmem %s556_s23, 256  ;;  %p7339_p13 = scmp.lt.s32.totalorder %s556_s23, %s556_s23 }
 0x116   : > { %p7332_p10 = scmp.ne.s32.totalorder %s556_s23, %s7331_s12  ;;  %p7340_p0 = scmp.lt.s32.totalorder %s7331_s12, %s7331_s12 }
 0x118   : > { %p7334_p11 = pnand %p7332_p10, %p7763_p7  ;;  %p7341_p1 = por %p7340_p0, %p7339_p13 }
 0x11a   : > { %p7335_p12 = pneg %p7334_p11 }
 0x11c   : > { %p7342_p4 = pnand %p7341_p1, %p7335_p12 }
 0x11e   : > { %7345 = shalt.err (!%p7342_p4)
}
 0x11f   : > { %6779 = dma.hbm_to_vmem [thread:$0]  (!%p7749_p5), %s9278_s6, 256, %s556_s23, [#allocation8], %s9353_s5, %s9353_s5, %s9352_s30  }
 0x120   : > { %s7542_s9 = smov [#allocation12]   ;;  %s7543_s11 = smov [#allocation15]  }
 0x121   : > { %s581_s18 = sshll.u32 %s7542_s9, 4  ;;  %s607_s3 = sshll.u32 %s7543_s11, 4  ;;  %s582_s18 = int_to_ptr.vmem [resolvable:$true] %s581_s18  ;;  %s608_s3 = int_to_ptr.vmem [resolvable:$true] %s607_s3 }
 0x122   : > { %s7346_s1 = scalar_lea.hbm %s9280_s8, 2304 }
 0x123   : > { %p7347_p6 = scmp.ne.s32.totalorder %s9280_s8, %s7346_s1  ;;  %p7353_p2 = scmp.lt.u32.totalorder %s7346_s1, %s9280_s8 }
 0x125   : > { %p7349_p8 = pnand %p7347_p6, %p7763_p7 }
 0x127   : > { %p7350_p9 = pneg %p7349_p8 }
 0x129   : > { %p7355_p3 = pnand %p7353_p2, %p7350_p9 }
 0x12b   : > { %7358 = shalt.err (!%p7355_p3)
}
 0x12c   : > { %s7359_s23 = scalar_lea.vmem %s582_s18, 2304  ;;  %p7367_p13 = scmp.lt.s32.totalorder %s582_s18, %s582_s18 }
 0x12d   : > { %p7360_p10 = scmp.ne.s32.totalorder %s582_s18, %s7359_s23  ;;  %p7368_p0 = scmp.lt.s32.totalorder %s7359_s23, %s7359_s23 }
 0x12f   : > { %p7362_p11 = pnand %p7360_p10, %p7763_p7  ;;  %p7369_p1 = por %p7368_p0, %p7367_p13 }
 0x131   : > { %p7363_p12 = pneg %p7362_p11 }
 0x133   : > { %p7370_p4 = pnand %p7369_p1, %p7363_p12 }
 0x135   : > { %7373 = shalt.err (!%p7370_p4)
}
 0x136   : > { %6785 = dma.hbm_to_vmem [thread:$0]  (!%p7749_p5), %s9280_s8, 2304, %s582_s18, [#allocation11], %s9353_s5, %s9353_s5, %s9352_s30  }
 0x137   : > { %s7374_s4 = scalar_lea.hbm %s9282_s10, 512 }
 0x138   : > { %p7375_p6 = scmp.ne.s32.totalorder %s9282_s10, %s7374_s4  ;;  %p7381_p2 = scmp.lt.u32.totalorder %s7374_s4, %s9282_s10 }
 0x13a   : > { %p7377_p8 = pnand %p7375_p6, %p7763_p7 }
 0x13c   : > { %p7378_p9 = pneg %p7377_p8 }
 0x13e   : > { %p7383_p3 = pnand %p7381_p2, %p7378_p9 }
 0x140   : > { %7386 = shalt.err (!%p7383_p3)
}
 0x141   : > { %s7387_s0 = scalar_lea.vmem %s608_s3, 512  ;;  %p7395_p13 = scmp.lt.s32.totalorder %s608_s3, %s608_s3 }
 0x142   : > { %p7388_p10 = scmp.ne.s32.totalorder %s608_s3, %s7387_s0  ;;  %p7396_p0 = scmp.lt.s32.totalorder %s7387_s0, %s7387_s0 }
 0x144   : > { %p7390_p11 = pnand %p7388_p10, %p7763_p7  ;;  %p7397_p1 = por %p7396_p0, %p7395_p13 }
 0x146   : > { %p7391_p12 = pneg %p7390_p11 }
 0x148   : > { %p7398_p4 = pnand %p7397_p1, %p7391_p12 }
 0x14a   : > { %7401 = shalt.err (!%p7398_p4)
}
 0x14b   : > { %6791 = dma.hbm_to_vmem [thread:$0]  (!%p7749_p5), %s9282_s10, 512, %s608_s3, [#allocation14], %s9353_s5, %s9353_s5, %s9352_s30  }
 0x14c   : > { %s7544_s29 = smov [#allocation18]   ;;  %s7545_s11 = smov [#allocation21]  }
 0x14d   : > { %s636_s9 = sshll.u32 %s7544_s29, 4  ;;  %s662_s19 = sshll.u32 %s7545_s11, 4  ;;  %s637_s9 = int_to_ptr.vmem [resolvable:$true] %s636_s9  ;;  %s663_s19 = int_to_ptr.vmem [resolvable:$true] %s662_s19 }
 0x14e   : > { %s7402_s20 = scalar_lea.hbm %s9285_s13, 2304 }
 0x14f   : > { %p7403_p6 = scmp.ne.s32.totalorder %s9285_s13, %s7402_s20  ;;  %p7409_p2 = scmp.lt.u32.totalorder %s7402_s20, %s9285_s13 }
 0x151   : > { %p7405_p8 = pnand %p7403_p6, %p7763_p7 }
 0x153   : > { %p7406_p9 = pneg %p7405_p8 }
 0x155   : > { %p7411_p3 = pnand %p7409_p2, %p7406_p9 }
 0x157   : > { %7414 = shalt.err (!%p7411_p3)
}
 0x158   : > { %s7415_s3 = scalar_lea.vmem %s637_s9, 2304  ;;  %p7423_p13 = scmp.lt.s32.totalorder %s637_s9, %s637_s9 }
 0x159   : > { %p7416_p10 = scmp.ne.s32.totalorder %s637_s9, %s7415_s3  ;;  %p7424_p0 = scmp.lt.s32.totalorder %s7415_s3, %s7415_s3 }
 0x15b   : > { %p7418_p11 = pnand %p7416_p10, %p7763_p7  ;;  %p7425_p1 = por %p7424_p0, %p7423_p13 }
 0x15d   : > { %p7419_p12 = pneg %p7418_p11 }
 0x15f   : > { %p7426_p4 = pnand %p7425_p1, %p7419_p12 }
 0x161   : > { %7429 = shalt.err (!%p7426_p4)
}
 0x162   : > { %s9357_s23 = smov 4   ;;  %s7430_s20 = scalar_lea.hbm %s9287_s15, 512 }
 0x163   : > { %6797 = dma.hbm_to_vmem [thread:$0]  (!%p7749_p5), %s9285_s13, 2304, %s637_s9, [#allocation17], %s9354_s7, %s9354_s7, %s9357_s23  }
 0x164   : > { %p7431_p6 = scmp.ne.s32.totalorder %s9287_s15, %s7430_s20  ;;  %p7437_p2 = scmp.lt.u32.totalorder %s7430_s20, %s9287_s15 }
 0x166   : > { %p7433_p8 = pnand %p7431_p6, %p7763_p7 }
 0x168   : > { %p7434_p9 = pneg %p7433_p8 }
 0x16a   : > { %p7439_p3 = pnand %p7437_p2, %p7434_p9 }
 0x16c   : > { %7442 = shalt.err (!%p7439_p3)
}
 0x16d   : > { %s7443_s3 = scalar_lea.vmem %s663_s19, 512  ;;  %p7451_p13 = scmp.lt.s32.totalorder %s663_s19, %s663_s19 }
 0x16e   : > { %p7444_p10 = scmp.ne.s32.totalorder %s663_s19, %s7443_s3  ;;  %p7452_p0 = scmp.lt.s32.totalorder %s7443_s3, %s7443_s3 }
 0x170   : > { %p7446_p11 = pnand %p7444_p10, %p7763_p7  ;;  %p7453_p1 = por %p7452_p0, %p7451_p13 }
 0x172   : > { %p7447_p12 = pneg %p7446_p11 }
 0x174   : > { %p7454_p4 = pnand %p7453_p1, %p7447_p12 }
 0x176   : > { %7457 = shalt.err (!%p7454_p4)
}
 0x177   : > { %6803 = dma.hbm_to_vmem [thread:$0]  (!%p7749_p5), %s9287_s15, 512, %s663_s19, [#allocation20], %s9353_s5, %s9353_s5, %s9352_s30  }
 0x178   : > { %s7546_s23 = smov [#allocation24]   ;;  %s7458_s1 = scalar_lea.hbm %s9289_s17, 1024 }
 0x179   : > { %s688_s29 = sshll.u32 %s7546_s23, 4  ;;  %p7459_p6 = scmp.ne.s32.totalorder %s9289_s17, %s7458_s1  ;;  %s689_s29 = int_to_ptr.vmem [resolvable:$true] %s688_s29 }
 0x17a   : > { %p7465_p2 = scmp.lt.u32.totalorder %s7458_s1, %s9289_s17 }
 0x17b   : > { %p7461_p8 = pnand %p7459_p6, %p7763_p7 }
 0x17d   : > { %p7462_p9 = pneg %p7461_p8 }
 0x17f   : > { %p7467_p3 = pnand %p7465_p2, %p7462_p9 }
 0x181   : > { %7470 = shalt.err (!%p7467_p3)
}
 0x182   : > { %s7471_s19 = scalar_lea.vmem %s689_s29, 1024  ;;  %p7479_p13 = scmp.lt.s32.totalorder %s689_s29, %s689_s29 }
 0x183   : > { %p7472_p10 = scmp.ne.s32.totalorder %s689_s29, %s7471_s19  ;;  %p7480_p0 = scmp.lt.s32.totalorder %s7471_s19, %s7471_s19 }
 0x185   : > { %p7474_p11 = pnand %p7472_p10, %p7763_p7  ;;  %p7481_p1 = por %p7480_p0, %p7479_p13 }
 0x187   : > { %p7475_p12 = pneg %p7474_p11 }
 0x189   : > { %p7482_p4 = pnand %p7481_p1, %p7475_p12 }
 0x18b   : > { %7485 = shalt.err (!%p7482_p4)
}
 0x18c   : > { %6809 = dma.hbm_to_vmem [thread:$0]  (!%p7749_p5), %s9289_s17, 1024, %s689_s29, [#allocation23], %s9353_s5, %s9353_s5, %s9352_s30  }
 0x18d   : > { %p9358_p6 = scmp.ne.s32.totalorder %s9344_s2, 0 }
 0x18f   : > { %717 = sbr.rel (%p9358_p6) target bundleno = 4471 (0x1177), region = 100 }
 0x196   : > { %p9359_p7 = scmp.eq.s32.totalorder %s7734_s24, 0 }
 0x198   : > { %7491 = dma.done.wait (%p9359_p7), [#allocation3], 128   ;;  %p9360_p8 = pmov %p9359_p7 }
 0x199   : > { %p9361_p9 = pmov %p9359_p7 }
 0x19a   : > { %7493 = vsyncadd (%p9360_p8), [#allocation3], 4294967168 }
 0x19b   : > { %7495 = dma.done.wait (%p9361_p9), [#allocation5], 256   ;;  %p9362_p2 = pmov %p9359_p7 }
 0x19d   : > { %7497 = vsyncadd (%p9362_p2), [#allocation5], 4294967040  ;;  %p9363_p3 = pmov %p9362_p2 }
 0x19e   : > { %p9364_p5 = pmov %p9362_p2 }
 0x19f   : > { %7499 = dma.done.wait (%p9363_p3), [#allocation8], 13056  }
 0x1a0   : > { %7501 = vsyncadd (%p9364_p5), [#allocation8], 4294954240  ;;  %p9365_p10 = pmov %p9362_p2 }
 0x1a1   : > { %p9366_p11 = pmov %p9362_p2 }
 0x1a2   : > { %7503 = dma.done.wait (%p9365_p10), [#allocation11], 2560  }
 0x1a3   : > { %7505 = vsyncadd (%p9366_p11), [#allocation11], 4294964736  ;;  %p9367_p12 = pmov %p9362_p2 }
 0x1a4   : > { %p9368_p13 = pmov %p9362_p2 }
 0x1a5   : > { %7507 = dma.done.wait (%p9367_p12), [#allocation14], 2816  }
 0x1a6   : > { %7509 = vsyncadd (%p9368_p13), [#allocation14], 4294964480  ;;  %p9369_p0 = pmov %p9362_p2 }
 0x1a8   : > { %7511 = dma.done.wait (%p9369_p0), [#allocation17], 2816   ;;  %p9370_p1 = pmov %p9369_p0 }
 0x1a9   : > { %p9371_p4 = pmov %p9369_p0 }
 0x1aa   : > { %7513 = vsyncadd (%p9370_p1), [#allocation17], 4294964480 }
 0x1ab   : > { %7515 = dma.done.wait (%p9371_p4), [#allocation20], 1024   ;;  %p9372_p6 = pmov %p9369_p0 }
 0x1ac   : > { %p9373_p7 = pmov %p9369_p0 }
 0x1ad   : > { %7517 = vsyncadd (%p9372_p6), [#allocation20], 4294966272 }
 0x1ae   : > { %7519 = dma.done.wait (%p9373_p7), [#allocation23], 1536   ;;  %p9374_p8 = pmov %p9369_p0 }
 0x1af   : > { %v7547_v0 = vmov 1   ;;  %v7548_v1 = vmov 3   ;;  %v9310_v2 = vmov 0   ;;  %v8105_v3 = vld [vmem:[#allocation2] sm:$0xff]  ;;  %v7550_v4 = vmov 2   ;;  %p829_p9 = scmp.lt.s32.totalorder %s7734_s24, 1 }
 0x1b0   : > { %7521 = vsyncadd (%p9374_p8), [#allocation23], 4294965760  ;;  %6945 = vset.pattern.permute.xlu0 %v7547_v0  ;;  %6947 = vset.pattern.permute.xlu1 %v7548_v1  ;;  %v7551_v5 = vmov 4   ;;  %v7552_v6 = vmov 5   ;;  %v7553_v7 = vmov 6   ;;  %v7554_v8 = vmov 7  }
 0x1b1   : > { %2186 = vmatprep.mubr.bf16.mxu1 %v9310_v2  ;;  %875 = vperm.xlu0 %6945, %v8105_v3   ;;  %v7555_v9 = vmov 9   ;;  %v7556_v10 = vmov 8   ;;  %v7557_v11 = vmov 12   ;;  %v7558_v12 = vmov 10   ;;  %s9436_s24 = smov (!%p829_p9, %s7734_s24), 1  ;;  %s9375_s30 = sld [smem:[#allocation60_spill]] }
 0x1b2   : > { %939 = vperm.xlu1 %6947, %v8105_v3   ;;  %v7559_v13 = vmov 15   ;;  %v7560_v14 = vmov 11   ;;  %v7561_v15 = vmov 18   ;;  %v7562_v16 = vmov 13   ;;  %s5990_s2 = sshll.u32 %s9436_s24, 2  ;;  %s7572_s7 = smov 127  }
 0x1b3   : > { %v7563_v17 = vmov 21   ;;  %v7564_v18 = vmov 14   ;;  %v7565_v19 = vmov 24   ;;  %v7566_v20 = vmov 16   ;;  %s7573_s9 = smov 126   ;;  %s7574_s23 = smov 125  }
 0x1b4   : > { %v7567_v21 = vmov 17   ;;  %v7568_v22 = vmov 19   ;;  %v7569_v23 = vmov 20   ;;  %v7570_v24 = vmov 22   ;;  %s7575_s29 = smov 124   ;;  %s7576_s11 = smov 108  }
 0x1b5   : > { %6946 = vset.pattern.permute.xlu0 %v7550_v4  ;;  %v7571_v25 = vmov 23   ;;  %v846_v26 = vlaneseq  ;;  %s7577_s4 = smov 107   ;;  %s7578_s1 = smov 106   ;;  %vm894_vm0 = vcmask 1039360   ;;  %vm926_vm1 = vcmask 1031168  }
 0x1b6   : > { %6948 = vset.pattern.permute.xlu1 %v7551_v5  ;;  %907 = vperm.xlu0 %6946, %v8105_v3   ;;  %s7579_s20 = smov 105   ;;  %s7580_s28 = smov 104   ;;  %vm958_vm2 = vcmask 1022976   ;;  %vm990_vm3 = vcmask 1014784   ;;  %vm1022_vm4 = vcmask 883712   ;;  %vm1054_vm5 = vcmask 875520  }
 0x1b7   : > { %971 = vperm.xlu1 %6948, %v8105_v3   ;;  %v847_v27 = vshrl.u32 %v846_v26, 7  ;;  %s832_s5 = scalar_lea.vmem %s9375_s30, %s5990_s2  ;;  %s7581_s12 = smov 88   ;;  %vm1086_vm6 = vcmask 867328   ;;  %vm1118_vm7 = vcmask 859136   ;;  %vm1150_vm8 = vcmask 850944  }
 0x1b8   : > { %v838_v30 = vld [vmem:[%s832_s5] sm:$0xf]  ;;  %s7582_s0 = smov 87   ;;  %s7583_s19 = smov 86   ;;  %vm1182_vm9 = vcmask 719872   ;;  %vm1214_vm10 = vcmask 711680  }
 0x1b9   : > { %v856_v28 = vsub.s32 2, %v847_v27  ;;  %v852_v29 = vsub.s32 1, %v847_v27  ;;  %v860_v33 = vsub.s32 3, %v847_v27  ;;  %v848_v34 = vsub.s32 0, %v847_v27  ;;  %s7584_s18 = smov 85   ;;  %s7585_s3 = smov 84  }
 0x1ba   : > { %6950 = vset.pattern.permute.xlu0 %v7553_v7  ;;  %s7586_s2 = smov 68   ;;  %s7587_s26 = smov 67   ;;  %vm1246_vm11 = vcmask 703488   ;;  %vm1278_vm12 = vcmask 695296   ;;  %vm1310_vm13 = vcmask 687104   ;;  %vm1342_vm14 = vcmask 556032  }
 0x1bb   : > { %6949 = vset.pattern.permute.xlu1 %v7552_v6  ;;  %1035 = vperm.xlu0 %6950, %v8105_v3   ;;  %v8142_v31 = vrot.slane %v838_v30, %v856_v28  ;;  %v8144_v32 = vrot.slane %v838_v30, %v852_v29  ;;  %v8148_v38 = vrot.slane %v838_v30, %v860_v33  ;;  %s7588_s25 = smov 66   ;;  %s7589_s30 = smov 65   ;;  %vm1374_vm15 = vcmask 547840  }
 0x1bc   : > { %1003 = vperm.xlu1 %6949, %v8105_v3   ;;  %v8150_v39 = vrot.slane %v838_v30, %v848_v34  ;;  %s7590_s5 = smov 64  }
 0x1bf   : > { %6953 = vset.pattern.permute.xlu0 %v7555_v9 }
 0x1c0   : > { %6951 = vset.pattern.permute.xlu1 %v7554_v8  ;;  %1131 = vperm.xlu0 %6953, %v8105_v3  }
 0x1c1   : > { %1067 = vperm.xlu1 %6951, %v8105_v3  }
 0x1c4   : > { %6956 = vset.pattern.permute.xlu0 %v7557_v11 }
 0x1c5   : > { %6952 = vset.pattern.permute.xlu1 %v7556_v10  ;;  %1227 = vperm.xlu0 %6956, %v8105_v3  }
 0x1c6   : > { %1099 = vperm.xlu1 %6952, %v8105_v3  }
 0x1c9   : > { %6959 = vset.pattern.permute.xlu0 %v7559_v13 }
 0x1ca   : > { %6954 = vset.pattern.permute.xlu1 %v7558_v12  ;;  %1323 = vperm.xlu0 %6959, %v8105_v3  }
 0x1cb   : > { %1163 = vperm.xlu1 %6954, %v8105_v3  }
 0x1ce   : > { %6962 = vset.pattern.permute.xlu0 %v7561_v15 }
 0x1cf   : > { %6955 = vset.pattern.permute.xlu1 %v7560_v14  ;;  %1419 = vperm.xlu0 %6962, %v8105_v3  }
 0x1d0   : > { %1195 = vperm.xlu1 %6955, %v8105_v3  }
 0x1d3   : > { %6965 = vset.pattern.permute.xlu0 %v7563_v17 }
 0x1d4   : > { %6957 = vset.pattern.permute.xlu1 %v7562_v16  ;;  %1515 = vperm.xlu0 %6965, %v8105_v3  }
 0x1d5   : > { %1259 = vperm.xlu1 %6957, %v8105_v3  }
 0x1d8   : > { %6968 = vset.pattern.permute.xlu0 %v7565_v19 }
 0x1d9   : > { %6958 = vset.pattern.permute.xlu1 %v7564_v18  ;;  %1611 = vperm.xlu0 %6968, %v8105_v3  }
 0x1da   : > { %1291 = vperm.xlu1 %6958, %v8105_v3  }
 0x1dd   : > { %6970 = vset.pattern.permute.xlu0 %v9310_v2 }
 0x1de   : > { %6960 = vset.pattern.permute.xlu1 %v7566_v20 }
 0x1df   : > { %1355 = vperm.xlu1 %6960, %v8105_v3  }
 0x1e3   : > { %6961 = vset.pattern.permute.xlu1 %v7567_v21 }
 0x1e4   : > { %1387 = vperm.xlu1 %6961, %v8105_v3  }
 0x1e8   : > { %6963 = vset.pattern.permute.xlu1 %v7568_v22 }
 0x1e9   : > { %1451 = vperm.xlu1 %6963, %v8105_v3  }
 0x1ed   : > { %6964 = vset.pattern.permute.xlu1 %v7569_v23 }
 0x1ee   : > { %1483 = vperm.xlu1 %6964, %v8105_v3  }
 0x1f2   : > { %6966 = vset.pattern.permute.xlu1 %v7570_v24 }
 0x1f3   : > { %1547 = vperm.xlu1 %6966, %v8105_v3  }
 0x1f7   : > { %6967 = vset.pattern.permute.xlu1 %v7571_v25 }
 0x1f8   : > { %1579 = vperm.xlu1 %6967, %v8105_v3  }
 0x1fc   : > { %6969 = vset.pattern.permute.xlu1 %v9310_v2 }
 0x1fd   : > { %842 = vperm.xlu1 %6969, %v8105_v3  }
 0x230   : > { %v876_v35 = vpop.permute.xlu0 %875 }
 0x231   : > { %v880_v36 = vmul.f32 %v876_v35, %v8142_v31  ;;  %v879_v37 = vmul.f32 %v876_v35, %v8144_v32  ;;  %v881_v40 = vmul.f32 %v876_v35, %v8148_v38  ;;  %v878_v41 = vmul.f32 %v876_v35, %v8150_v39  ;;  %v940_v45 = vpop.permute.xlu1 %939 }
 0x232   : > { %v943_v48 = vmul.f32 %v940_v45, %v8144_v32  ;;  %v944_v49 = vmul.f32 %v940_v45, %v8142_v31  ;;  %v945_v51 = vmul.f32 %v940_v45, %v8148_v38  ;;  %v942_v52 = vmul.f32 %v940_v45, %v8150_v39 }
 0x233   : > { %890 = vrot.lane.b32.xlu0 %v880_v36, %s7572_s7  ;;  %888 = vrot.lane.b32.xlu1 %v879_v37, %s7572_s7 }
 0x235   : > { %v908_v42 = vpop.permute.xlu0 %907 }
 0x236   : > { %v911_v43 = vmul.f32 %v908_v42, %v8144_v32  ;;  %v912_v44 = vmul.f32 %v908_v42, %v8142_v31  ;;  %v913_v46 = vmul.f32 %v908_v42, %v8148_v38  ;;  %v910_v47 = vmul.f32 %v908_v42, %v8150_v39  ;;  %v972_v50 = vpop.permute.xlu1 %971 }
 0x237   : > { %892 = vrot.lane.b32.xlu1 %v881_v40, %s7572_s7  ;;  %886 = vrot.lane.b32.xlu0 %v878_v41, %s7572_s7  ;;  %v975_v53 = vmul.f32 %v972_v50, %v8144_v32  ;;  %v976_v54 = vmul.f32 %v972_v50, %v8142_v31  ;;  %v977_v56 = vmul.f32 %v972_v50, %v8148_v38 }
 0x238   : > { %v974_v57 = vmul.f32 %v972_v50, %v8150_v39 }
 0x23a   : > { %v1036_v60 = vpop.permute.xlu0 %1035 }
 0x23b   : > { %920 = vrot.lane.b32.xlu1 %v911_v43, %s7573_s9  ;;  %922 = vrot.lane.b32.xlu0 %v912_v44, %s7573_s9  ;;  %v1004_v55 = vpop.permute.xlu1 %1003  ;;  %v1039_v63 = vmul.f32 %v1036_v60, %v8144_v32  ;;  %v1040_v0 = vmul.f32 %v1036_v60, %v8142_v31  ;;  %v1041_v3 = vmul.f32 %v1036_v60, %v8148_v38 }
 0x23c   : > { %v1007_v58 = vmul.f32 %v1004_v55, %v8144_v32  ;;  %v1008_v59 = vmul.f32 %v1004_v55, %v8142_v31  ;;  %v1009_v61 = vmul.f32 %v1004_v55, %v8148_v38  ;;  %v1006_v62 = vmul.f32 %v1004_v55, %v8150_v39 }
 0x23d   : > { %v1038_v4 = vmul.f32 %v1036_v60, %v8150_v39 }
 0x23f   : > { %924 = vrot.lane.b32.xlu1 %v913_v46, %s7573_s9  ;;  %918 = vrot.lane.b32.xlu0 %v910_v47, %s7573_s9  ;;  %v1132_v14 = vpop.permute.xlu0 %1131 }
 0x240   : > { %v1068_v1 = vpop.permute.xlu1 %1067  ;;  %v1135_v17 = vmul.f32 %v1132_v14, %v8144_v32  ;;  %v1136_v18 = vmul.f32 %v1132_v14, %v8142_v31  ;;  %v1137_v20 = vmul.f32 %v1132_v14, %v8148_v38  ;;  %v1134_v21 = vmul.f32 %v1132_v14, %v8150_v39 }
 0x241   : > { %v1071_v5 = vmul.f32 %v1068_v1, %v8144_v32  ;;  %v1072_v6 = vmul.f32 %v1068_v1, %v8142_v31  ;;  %v1073_v9 = vmul.f32 %v1068_v1, %v8148_v38  ;;  %v1070_v10 = vmul.f32 %v1068_v1, %v8150_v39 }
 0x243   : > { %952 = vrot.lane.b32.xlu1 %v943_v48, %s7574_s23  ;;  %954 = vrot.lane.b32.xlu0 %v944_v49, %s7574_s23 }
 0x244   : > { %v1228_v33 = vpop.permute.xlu0 %1227 }
 0x245   : > { %v1100_v7 = vpop.permute.xlu1 %1099  ;;  %v1231_v36 = vmul.f32 %v1228_v33, %v8144_v32  ;;  %v1232_v37 = vmul.f32 %v1228_v33, %v8142_v31  ;;  %v1233_v41 = vmul.f32 %v1228_v33, %v8148_v38  ;;  %v1230_v42 = vmul.f32 %v1228_v33, %v8150_v39 }
 0x246   : > { %v1103_v11 = vmul.f32 %v1100_v7, %v8144_v32  ;;  %v1104_v12 = vmul.f32 %v1100_v7, %v8142_v31  ;;  %v1105_v15 = vmul.f32 %v1100_v7, %v8148_v38  ;;  %v1102_v16 = vmul.f32 %v1100_v7, %v8150_v39 }
 0x247   : > { %956 = vrot.lane.b32.xlu1 %v945_v51, %s7574_s23  ;;  %950 = vrot.lane.b32.xlu0 %v942_v52, %s7574_s23 }
 0x249   : > { %v1324_v44 = vpop.permute.xlu0 %1323 }
 0x24a   : > { %v1164_v8 = vpop.permute.xlu1 %1163  ;;  %v1328_v60 = vmul.f32 %v1324_v44, %v8142_v31 }
 0x24b   : > { %984 = vrot.lane.b32.xlu1 %v975_v53, %s7575_s29  ;;  %986 = vrot.lane.b32.xlu0 %v976_v54, %s7575_s29  ;;  %v1167_v23 = vmul.f32 %v1164_v8, %v8144_v32  ;;  %v1168_v24 = vmul.f32 %v1164_v8, %v8142_v31  ;;  %v1169_v26 = vmul.f32 %v1164_v8, %v8148_v38 }
 0x24c   : > { %v1166_v27 = vmul.f32 %v1164_v8, %v8150_v39 }
 0x24e   : > { %v8238_v48 = vpop.permute.xlu0 %1419 }
 0x24f   : > { %988 = vrot.lane.b32.xlu1 %v977_v56, %s7575_s29  ;;  %982 = vrot.lane.b32.xlu0 %v974_v57, %s7575_s29  ;;  %v1196_v13 = vpop.permute.xlu1 %1195 }
 0x250   : > { %v1199_v28 = vmul.f32 %v1196_v13, %v8144_v32  ;;  %v1200_v29 = vmul.f32 %v1196_v13, %v8142_v31  ;;  %v1201_v34 = vmul.f32 %v1196_v13, %v8148_v38  ;;  %v1198_v35 = vmul.f32 %v1196_v13, %v8150_v39 }
 0x253   : > { %1016 = vrot.lane.b32.xlu1 %v1007_v58, %s7576_s11  ;;  %1018 = vrot.lane.b32.xlu0 %v1008_v59, %s7576_s11  ;;  %v8246_v54 = vpop.permute.xlu0 %1515  ;;  %v1327_v59 = vmul.f32 %v1324_v44, %v8144_v32 }
 0x254   : > { %v1260_v19 = vpop.permute.xlu1 %1259 }
 0x255   : > { %v1263_v45 = vmul.f32 %v1260_v19, %v8144_v32  ;;  %v1264_v46 = vmul.f32 %v1260_v19, %v8142_v31  ;;  %v1265_v49 = vmul.f32 %v1260_v19, %v8148_v38  ;;  %v1262_v50 = vmul.f32 %v1260_v19, %v8150_v39 }
 0x257   : > { %1020 = vrot.lane.b32.xlu1 %v1009_v61, %s7576_s11  ;;  %1014 = vrot.lane.b32.xlu0 %v1006_v62, %s7576_s11 }
 0x258   : > { %v8252_v58 = vpop.permute.xlu0 %1611 }
 0x259   : > { %v1292_v22 = vpop.permute.xlu1 %1291 }
 0x25a   : > { %v1295_v51 = vmul.f32 %v1292_v22, %v8144_v32  ;;  %v1296_v52 = vmul.f32 %v1292_v22, %v8142_v31  ;;  %v1297_v55 = vmul.f32 %v1292_v22, %v8148_v38  ;;  %v1294_v56 = vmul.f32 %v1292_v22, %v8150_v39 }
 0x25b   : > { %1048 = vrot.lane.b32.xlu1 %v1039_v63, %s7577_s4  ;;  %1050 = vrot.lane.b32.xlu0 %v1040_v0, %s7577_s4  ;;  %v1329_v63 = vmul.f32 %v1324_v44, %v8148_v38  ;;  %v1326_v0 = vmul.f32 %v1324_v44, %v8150_v39 }
 0x25e   : > { %v8214_v25 = vpop.permute.xlu1 %1355 }
 0x25f   : > { %1052 = vrot.lane.b32.xlu1 %v1041_v3, %s7577_s4  ;;  %1046 = vrot.lane.b32.xlu0 %v1038_v4, %s7577_s4  ;;  %v1359_v4 = vmul.f32 %v8214_v25, %v8144_v32  ;;  %v1361_v8 = vmul.f32 %v8214_v25, %v8148_v38  ;;  %s7591_s4 = smov 48  }
 0x263   : > { %1080 = vrot.lane.b32.xlu1 %v1071_v5, %s7578_s1  ;;  %1082 = vrot.lane.b32.xlu0 %v1072_v6, %s7578_s1  ;;  %v8222_v30 = vpop.permute.xlu1 %1387  ;;  %v1360_v5 = vmul.f32 %v8214_v25, %v8142_v31 }
 0x264   : > { %v1392_v13 = vmul.f32 %v8222_v30, %v8142_v31 }
 0x267   : > { %1084 = vrot.lane.b32.xlu1 %v1073_v9, %s7578_s1  ;;  %1078 = vrot.lane.b32.xlu0 %v1070_v10, %s7578_s1  ;;  %v1358_v9 = vmul.f32 %v8214_v25, %v8150_v39  ;;  %v1422_v25 = vmul.f32 %v8238_v48, %v8150_v39  ;;  %s7592_s1 = smov 47  }
 0x268   : > { %v8228_v40 = vpop.permute.xlu1 %1451 }
 0x26b   : > { %1112 = vrot.lane.b32.xlu1 %v1103_v11, %s7579_s20  ;;  %1114 = vrot.lane.b32.xlu0 %v1104_v12, %s7579_s20  ;;  %v1391_v12 = vmul.f32 %v8222_v30, %v8144_v32 }
 0x26d   : > { %v8232_v43 = vpop.permute.xlu1 %1483 }
 0x26f   : > { %1116 = vrot.lane.b32.xlu1 %v1105_v15, %s7579_s20  ;;  %1110 = vrot.lane.b32.xlu0 %v1102_v16, %s7579_s20  ;;  %v1393_v16 = vmul.f32 %v8222_v30, %v8148_v38  ;;  %s7593_s20 = smov 46  }
 0x272   : > { %v8236_v47 = vpop.permute.xlu1 %1547 }
 0x273   : > { %1144 = vrot.lane.b32.xlu1 %v1135_v17, %s7580_s28  ;;  %1146 = vrot.lane.b32.xlu0 %v1136_v18, %s7580_s28  ;;  %v1390_v17 = vmul.f32 %v8222_v30, %v8150_v39 }
 0x277   : > { %1148 = vrot.lane.b32.xlu1 %v1137_v20, %s7580_s28  ;;  %1142 = vrot.lane.b32.xlu0 %v1134_v21, %s7580_s28  ;;  %v8244_v53 = vpop.permute.xlu1 %1579  ;;  %v1423_v20 = vmul.f32 %v8238_v48, %v8144_v32  ;;  %v1424_v21 = vmul.f32 %v8238_v48, %v8142_v31 }
 0x27b   : > { %1176 = vrot.lane.b32.xlu1 %v1167_v23, %s7581_s12  ;;  %1178 = vrot.lane.b32.xlu0 %v1168_v24, %s7581_s12  ;;  %v1425_v24 = vmul.f32 %v8238_v48, %v8148_v38 }
 0x27c   : > { %v8250_v57 = vpop.permute.xlu1 %842 }
 0x27f   : > { %1180 = vrot.lane.b32.xlu1 %v1169_v26, %s7581_s12  ;;  %1174 = vrot.lane.b32.xlu0 %v1166_v27, %s7581_s12 }
 0x283   : > { %1208 = vrot.lane.b32.xlu1 %v1199_v28, %s7582_s0  ;;  %1210 = vrot.lane.b32.xlu0 %v1200_v29, %s7582_s0  ;;  %v1455_v28 = vmul.f32 %v8228_v40, %v8144_v32  ;;  %v1456_v29 = vmul.f32 %v8228_v40, %v8142_v31 }
 0x287   : > { %1212 = vrot.lane.b32.xlu1 %v1201_v34, %s7582_s0  ;;  %1206 = vrot.lane.b32.xlu0 %v1198_v35, %s7582_s0  ;;  %v1457_v34 = vmul.f32 %v8228_v40, %v8148_v38  ;;  %v1454_v35 = vmul.f32 %v8228_v40, %v8150_v39  ;;  %v1489_v40 = vmul.f32 %v8232_v43, %v8148_v38  ;;  %s7594_s0 = smov 45  }
 0x28b   : > { %1240 = vrot.lane.b32.xlu1 %v1231_v36, %s7583_s19  ;;  %1242 = vrot.lane.b32.xlu0 %v1232_v37, %s7583_s19 }
 0x28f   : > { %1244 = vrot.lane.b32.xlu1 %v1233_v41, %s7583_s19  ;;  %1238 = vrot.lane.b32.xlu0 %v1230_v42, %s7583_s19  ;;  %v1487_v41 = vmul.f32 %v8232_v43, %v8144_v32  ;;  %v1488_v42 = vmul.f32 %v8232_v43, %v8142_v31  ;;  %s7595_s19 = smov 44  }
 0x293   : > { %1272 = vrot.lane.b32.xlu1 %v1263_v45, %s7584_s18  ;;  %1274 = vrot.lane.b32.xlu0 %v1264_v46, %s7584_s18  ;;  %v1486_v46 = vmul.f32 %v8232_v43, %v8150_v39  ;;  %v1521_v43 = vmul.f32 %v8246_v54, %v8148_v38 }
 0x297   : > { %1276 = vrot.lane.b32.xlu1 %v1265_v49, %s7584_s18  ;;  %1270 = vrot.lane.b32.xlu0 %v1262_v50, %s7584_s18  ;;  %v1519_v50 = vmul.f32 %v8246_v54, %v8144_v32  ;;  %s7597_s18 = smov 115  }
 0x29b   : > { %1304 = vrot.lane.b32.xlu1 %v1295_v51, %s7585_s3  ;;  %1306 = vrot.lane.b32.xlu0 %v1296_v52, %s7585_s3  ;;  %v1520_v51 = vmul.f32 %v8246_v54, %v8142_v31 }
 0x29f   : > { %1308 = vrot.lane.b32.xlu1 %v1297_v55, %s7585_s3  ;;  %1302 = vrot.lane.b32.xlu0 %v1294_v56, %s7585_s3  ;;  %v1518_v56 = vmul.f32 %v8246_v54, %v8150_v39  ;;  %v1553_v54 = vmul.f32 %v8236_v47, %v8148_v38  ;;  %s7599_s3 = smov 113  }
 0x2a3   : > { %1336 = vrot.lane.b32.xlu1 %v1327_v59, %s7586_s2  ;;  %1338 = vrot.lane.b32.xlu0 %v1328_v60, %s7586_s2 }
 0x2a5   : > { %v8256_v61 = vpop.permute.xlu0 %890  ;;  %v8258_v62 = vpop.permute.xlu1 %888 }
 0x2a7   : > { %1340 = vrot.lane.b32.xlu1 %v1329_v63, %s7586_s2  ;;  %1334 = vrot.lane.b32.xlu0 %v1326_v0, %s7586_s2  ;;  %v1551_v63 = vmul.f32 %v8236_v47, %v8144_v32  ;;  %v1552_v0 = vmul.f32 %v8236_v47, %v8142_v31  ;;  %s7600_s2 = smov 112  }
 0x2a9   : > { %v8262_v1 = vpop.permute.xlu1 %892  ;;  %v8264_v3 = vpop.permute.xlu0 %886 }
 0x2ab   : > { %1368 = vrot.lane.b32.xlu1 %v1359_v4, %s7587_s26  ;;  %1370 = vrot.lane.b32.xlu0 %v1360_v5, %s7587_s26  ;;  %v1642_v4 = vld [vmem:[#allocation4] sm:$0xff] }
 0x2ad   : > { %v8270_v6 = vpop.permute.xlu1 %920  ;;  %v8272_v7 = vpop.permute.xlu0 %922 }
 0x2af   : > { %1372 = vrot.lane.b32.xlu1 %v1361_v8, %s7587_s26  ;;  %1366 = vrot.lane.b32.xlu0 %v1358_v9, %s7587_s26  ;;  %s7601_s26 = smov 103  }
 0x2b1   : > { %v8278_v10 = vpop.permute.xlu1 %924  ;;  %v8280_v11 = vpop.permute.xlu0 %918 }
 0x2b3   : > { %1400 = vrot.lane.b32.xlu1 %v1391_v12, %s7588_s25  ;;  %1402 = vrot.lane.b32.xlu0 %v1392_v13, %s7588_s25  ;;  %v1550_v13 = vmul.f32 %v8236_v47, %v8150_v39  ;;  %v1585_v47 = vmul.f32 %v8244_v53, %v8148_v38 }
 0x2b5   : > { %v8286_v14 = vpop.permute.xlu1 %952  ;;  %v8288_v15 = vpop.permute.xlu0 %954 }
 0x2b7   : > { %1404 = vrot.lane.b32.xlu1 %v1393_v16, %s7588_s25  ;;  %1398 = vrot.lane.b32.xlu0 %v1390_v17, %s7588_s25  ;;  %v1584_v16 = vmul.f32 %v8244_v53, %v8142_v31  ;;  %v1643_v17 = vld [vmem:[#allocation6] sm:$0xff]  ;;  %s7602_s25 = smov 102  }
 0x2b9   : > { %v8294_v18 = vpop.permute.xlu1 %956  ;;  %v8296_v19 = vpop.permute.xlu0 %950 }
 0x2bb   : > { %1432 = vrot.lane.b32.xlu1 %v1423_v20, %s7589_s30  ;;  %1434 = vrot.lane.b32.xlu0 %v1424_v21, %s7589_s30 }
 0x2bd   : > { %v8302_v22 = vpop.permute.xlu1 %984  ;;  %v8304_v23 = vpop.permute.xlu0 %986 }
 0x2bf   : > { %1436 = vrot.lane.b32.xlu1 %v1425_v24, %s7589_s30  ;;  %1430 = vrot.lane.b32.xlu0 %v1422_v25, %s7589_s30  ;;  %v1583_v24 = vmul.f32 %v8244_v53, %v8144_v32  ;;  %s7603_s30 = smov 101  }
 0x2c1   : > { %v8310_v26 = vpop.permute.xlu1 %988  ;;  %v8312_v27 = vpop.permute.xlu0 %982 }
 0x2c3   : > { %1464 = vrot.lane.b32.xlu1 %v1455_v28, %s7590_s5  ;;  %1466 = vrot.lane.b32.xlu0 %v1456_v29, %s7590_s5  ;;  %v1615_v29 = vmul.f32 %v8252_v58, %v8144_v32 }
 0x2c5   : > { %v8318_v30 = vpop.permute.xlu1 %1016  ;;  %v8320_v33 = vpop.permute.xlu0 %1018 }
 0x2c7   : > { %1468 = vrot.lane.b32.xlu1 %v1457_v34, %s7590_s5  ;;  %1462 = vrot.lane.b32.xlu0 %v1454_v35, %s7590_s5  ;;  %s7604_s5 = smov 100  }
 0x2c9   : > { %v8326_v36 = vpop.permute.xlu1 %1020  ;;  %v8328_v37 = vpop.permute.xlu0 %1014 }
 0x2cb   : > { %1496 = vrot.lane.b32.xlu1 %v1487_v41, %s7591_s4  ;;  %1498 = vrot.lane.b32.xlu0 %v1488_v42, %s7591_s4  ;;  %v1582_v41 = vmul.f32 %v8244_v53, %v8150_v39  ;;  %v1617_v42 = vmul.f32 %v8252_v58, %v8148_v38  ;;  %v1614_v53 = vmul.f32 %v8252_v58, %v8150_v39 }
 0x2cd   : > { %v8334_v44 = vpop.permute.xlu1 %1048  ;;  %v8336_v45 = vpop.permute.xlu0 %1050 }
 0x2cf   : > { %1500 = vrot.lane.b32.xlu1 %v1489_v40, %s7591_s4  ;;  %1494 = vrot.lane.b32.xlu0 %v1486_v46, %s7591_s4  ;;  %s7606_s4 = smov 91  }
 0x2d1   : > { %v8342_v48 = vpop.permute.xlu1 %1052  ;;  %v8344_v49 = vpop.permute.xlu0 %1046 }
 0x2d3   : > { %1528 = vrot.lane.b32.xlu1 %v1519_v50, %s7592_s1  ;;  %1530 = vrot.lane.b32.xlu0 %v1520_v51, %s7592_s1  ;;  %v1616_v50 = vmul.f32 %v8252_v58, %v8142_v31 }
 0x2d5   : > { %v8350_v52 = vpop.permute.xlu1 %1080  ;;  %v8352_v55 = vpop.permute.xlu0 %1082 }
 0x2d7   : > { %1532 = vrot.lane.b32.xlu1 %v1521_v43, %s7592_s1  ;;  %1526 = vrot.lane.b32.xlu0 %v1518_v56, %s7592_s1  ;;  %s7607_s1 = smov 90  }
 0x2d9   : > { %v8358_v59 = vpop.permute.xlu1 %1084  ;;  %v8360_v60 = vpop.permute.xlu0 %1078 }
 0x2db   : > { %1560 = vrot.lane.b32.xlu1 %v1551_v63, %s7593_s20  ;;  %1562 = vrot.lane.b32.xlu0 %v1552_v0, %s7593_s20 }
 0x2dd   : > { %v8366_v5 = vpop.permute.xlu1 %1112  ;;  %v8368_v8 = vpop.permute.xlu0 %1114 }
 0x2df   : > { %1564 = vrot.lane.b32.xlu1 %v1553_v54, %s7593_s20  ;;  %1646 = vperm.xlu0 %6970, %v1642_v4  }
 0x2e1   : > { %v8372_v9 = vpop.permute.xlu1 %1116  ;;  %v8374_v12 = vpop.permute.xlu0 %1110 }
 0x2e3   : > { %1558 = vrot.lane.b32.xlu1 %v1550_v13, %s7593_s20  ;;  %1594 = vrot.lane.b32.xlu0 %v1584_v16, %s7594_s0  ;;  %s7608_s20 = smov 89  }
 0x2e5   : > { %v8380_v20 = vpop.permute.xlu1 %1144  ;;  %v8382_v21 = vpop.permute.xlu0 %1146 }
 0x2e7   : > { %1592 = vrot.lane.b32.xlu1 %v1583_v24, %s7594_s0  ;;  %1655 = vperm.xlu0 %6970, %v1643_v17  }
 0x2e9   : > { %v8386_v25 = vpop.permute.xlu1 %1148  ;;  %v8388_v28 = vpop.permute.xlu0 %1142 }
 0x2eb   : > { %1596 = vrot.lane.b32.xlu1 %v1585_v47, %s7594_s0  ;;  %1624 = vrot.lane.b32.xlu0 %v1615_v29, %s7595_s19 }
 0x2ed   : > { %v8394_v34 = vpop.permute.xlu1 %1176  ;;  %v8396_v35 = vpop.permute.xlu0 %1178 }
 0x2ef   : > { %1590 = vrot.lane.b32.xlu1 %v1582_v41, %s7594_s0  ;;  %1628 = vrot.lane.b32.xlu0 %v1617_v42, %s7595_s19  ;;  %s7609_s0 = smov 80  }
 0x2f1   : > { %v8402_v40 = vpop.permute.xlu1 %1180  ;;  %v8404_v46 = vpop.permute.xlu0 %1174 }
 0x2f3   : > { %1626 = vrot.lane.b32.xlu1 %v1616_v50, %s7595_s19 }
 0x2f5   : > { %v8408_v51 = vpop.permute.xlu1 %1208  ;;  %v8410_v43 = vpop.permute.xlu0 %1210 }
 0x2f7   : > { %1622 = vrot.lane.b32.xlu1 %v1614_v53, %s7595_s19  ;;  %s7610_s19 = smov 79  }
 0x2f9   : > { %v8414_v56 = vpop.permute.xlu1 %1212  ;;  %v8416_v63 = vpop.permute.xlu0 %1206 }
 0x2fd   : > { %v8418_v0 = vpop.permute.xlu1 %1240  ;;  %v8420_v4 = vpop.permute.xlu0 %1242 }
 0x301   : > { %v8422_v54 = vpop.permute.xlu1 %1244  ;;  %v8424_v13 = vpop.permute.xlu0 %1238 }
 0x302   : > { %9376 = vst [vmem:[#allocation34_spill] sm:$0xff] %v8422_v54  ;;  %9377 = vst [vmem:[#allocation35_spill] sm:$0xff] %v8424_v13 }
 0x305   : > { %v8426_v16 = vpop.permute.xlu1 %1272  ;;  %v8428_v17 = vpop.permute.xlu0 %1274 }
 0x309   : > { %v8430_v24 = vpop.permute.xlu1 %1276  ;;  %v8432_v58 = vpop.permute.xlu0 %1270 }
 0x30a   : > { %9378 = vst [vmem:[#allocation36_spill] sm:$0xff] %v8430_v24  ;;  %9379 = vst [vmem:[#allocation37_spill] sm:$0xff] %v8432_v58 }
 0x30d   : > { %v8434_v47 = vpop.permute.xlu1 %1304  ;;  %v8436_v29 = vpop.permute.xlu0 %1306 }
 0x30e   : > { %9380 = vst [vmem:[#allocation38_spill] sm:$0xff] %v8434_v47  ;;  %9381 = vst [vmem:[#allocation39_spill] sm:$0xff] %v8436_v29 }
 0x311   : > { %v8438_v41 = vpop.permute.xlu1 %1308  ;;  %v8440_v42 = vpop.permute.xlu0 %1302 }
 0x312   : > { %9382 = vst [vmem:[#allocation40_spill] sm:$0xff] %v8438_v41  ;;  %9383 = vst [vmem:[#allocation41_spill] sm:$0xff] %v8440_v42 }
 0x315   : > { %v8442_v50 = vpop.permute.xlu1 %1336  ;;  %v8444_v53 = vpop.permute.xlu0 %1338 }
 0x316   : > { %9384 = vst [vmem:[#allocation42_spill] sm:$0xff] %v8442_v50  ;;  %9385 = vst [vmem:[#allocation43_spill] sm:$0xff] %v8444_v53 }
 0x319   : > { %v8446_v2 = vpop.permute.xlu1 %1340  ;;  %v8448_v13 = vpop.permute.xlu0 %1334 }
 0x31a   : > { %9386 = vst [vmem:[#allocation44_spill] sm:$0xff] %v8446_v2  ;;  %9387 = vst [vmem:[#allocation45_spill] sm:$0xff] %v8448_v13 }
 0x31d   : > { %v8450_v54 = vpop.permute.xlu1 %1368  ;;  %v8452_v24 = vpop.permute.xlu0 %1370 }
 0x31e   : > { %9388 = vst [vmem:[#allocation46_spill] sm:$0xff] %v8450_v54  ;;  %9389 = vst [vmem:[#allocation47_spill] sm:$0xff] %v8452_v24 }
 0x321   : > { %v8454_v58 = vpop.permute.xlu1 %1372  ;;  %v8456_v47 = vpop.permute.xlu0 %1366 }
 0x322   : > { %9390 = vst [vmem:[#allocation48_spill] sm:$0xff] %v8454_v58  ;;  %9391 = vst [vmem:[#allocation49_spill] sm:$0xff] %v8456_v47 }
 0x325   : > { %v8458_v29 = vpop.permute.xlu1 %1400  ;;  %v8460_v41 = vpop.permute.xlu0 %1402 }
 0x329   : > { %v8462_v42 = vpop.permute.xlu1 %1404  ;;  %v8464_v50 = vpop.permute.xlu0 %1398 }
 0x32a   : > { %9392 = vst [vmem:[#allocation50_spill] sm:$0xff] %v8462_v42  ;;  %9393 = vst [vmem:[#allocation51_spill] sm:$0xff] %v8464_v50  ;;  %v867_v42 = vmul.f32 %v8144_v32, %v8250_v57  ;;  %v896_v50 = vsel %vm894_vm0, %v8258_v62, %v8256_v61  ;;  %v868_v32 = vmul.f32 %v8142_v31, %v8250_v57 }
 0x32d   : > { %v8466_v53 = vpop.permute.xlu1 %1432  ;;  %v8468_v2 = vpop.permute.xlu0 %1434 }
 0x32e   : > { %9394 = vst [vmem:[#allocation52_spill] sm:$0xff] %v8466_v53 }
 0x331   : > { %v8470_v13 = vpop.permute.xlu1 %1436  ;;  %v8472_v54 = vpop.permute.xlu0 %1430 }
 0x332   : > { %9395 = vst [vmem:[#allocation53_spill] sm:$0xff] %v8470_v13  ;;  %9396 = vst [vmem:[#allocation54_spill] sm:$0xff] %v8472_v54  ;;  %v869_v54 = vmul.f32 %v8148_v38, %v8250_v57  ;;  %v928_v13 = vsel %vm926_vm1, %v8270_v6, %v8272_v7  ;;  %v895_v38 = vsel %vm894_vm0, %v8264_v3, %v8258_v62 }
 0x334   : > { %v905_v31 = vadd.f32 %v8262_v1, %v869_v54 }
 0x335   : > { %v8474_v24 = vpop.permute.xlu1 %1464  ;;  %v8476_v58 = vpop.permute.xlu0 %1466 }
 0x336   : > { %9397 = vst [vmem:[#allocation55_spill] sm:$0xff] %v8474_v24  ;;  %9398 = vst [vmem:[#allocation56_spill] sm:$0xff] %v8476_v58  ;;  %v866_v58 = vmul.f32 %v8150_v39, %v8250_v57  ;;  %v929_v39 = vsel %vm926_vm1, %v8272_v7, %v8278_v10  ;;  %v927_v57 = vsel %vm926_vm1, %v8280_v11, %v8270_v6 }
 0x337   : > { %v961_v7 = vsel %vm958_vm2, %v8288_v15, %v8294_v18  ;;  %v959_v6 = vsel %vm958_vm2, %v8296_v19, %v8286_v14  ;;  %v1024_v11 = vsel %vm1022_vm4, %v8318_v30, %v8320_v33 }
 0x339   : > { %v8478_v47 = vpop.permute.xlu1 %1468  ;;  %v8485_v53 = vpop.permute.xlu0 %1462 }
 0x33a   : > { %9399 = vst [vmem:[#allocation57_spill] sm:$0xff] %v8478_v47  ;;  %9400 = vst [vmem:[#allocation58_spill] sm:$0xff] %v8485_v53  ;;  %v903_v47 = vadd.f32 %v896_v50, %v867_v42  ;;  %v897_v53 = vsel %vm894_vm0, %v8256_v61, %v8262_v1  ;;  %v992_v61 = vsel %vm990_vm3, %v8302_v22, %v8304_v23 }
 0x33b   : > { %v904_v3 = vadd.f32 %v897_v53, %v868_v32  ;;  %v902_v50 = vadd.f32 %v895_v38, %v866_v58  ;;  %v937_v1 = vadd.f32 %v8278_v10, %v905_v31  ;;  %v993_v10 = vsel %vm990_vm3, %v8304_v23, %v8310_v26 }
 0x33c   : > { %v935_v42 = vadd.f32 %v928_v13, %v903_v47  ;;  %v1025_v23 = vsel %vm1022_vm4, %v8320_v33, %v8326_v36  ;;  %v1057_v33 = vsel %vm1054_vm5, %v8336_v45, %v8342_v48 }
 0x33d   : > { %v8492_v24 = vpop.permute.xlu1 %1496  ;;  %v8519_v47 = vpop.permute.xlu0 %1498  ;;  %v936_v54 = vadd.f32 %v929_v39, %v904_v3  ;;  %v934_v58 = vadd.f32 %v927_v57, %v902_v50  ;;  %v969_v53 = vadd.f32 %v8294_v18, %v937_v1 }
 0x33e   : > { %9401 = vst [vmem:[#allocation59_spill] sm:$0xff] %v8492_v24  ;;  %v960_v24 = vsel %vm958_vm2, %v8286_v14, %v8288_v15  ;;  %v991_v15 = vsel %vm990_vm3, %v8312_v27, %v8302_v22  ;;  %v1056_v14 = vsel %vm1054_vm5, %v8334_v44, %v8336_v45  ;;  %v1023_v22 = vsel %vm1022_vm4, %v8328_v37, %v8318_v30 }
 0x33f   : > { %v967_v13 = vadd.f32 %v960_v24, %v935_v42  ;;  %v968_v32 = vadd.f32 %v961_v7, %v936_v54  ;;  %v966_v38 = vadd.f32 %v959_v6, %v934_v58  ;;  %v1001_v18 = vadd.f32 %v8310_v26, %v969_v53 }
 0x340   : > { %v1088_v27 = vsel %vm1086_vm6, %v8350_v52, %v8352_v55  ;;  %v1055_v30 = vsel %vm1054_vm5, %v8344_v49, %v8334_v44  ;;  %v1120_v37 = vsel %vm1118_vm7, %v8366_v5, %v8368_v8  ;;  %v1089_v45 = vsel %vm1086_vm6, %v8352_v55, %v8358_v59 }
 0x341   : > { %v8517_v62 = vpop.permute.xlu1 %1500  ;;  %v999_v24 = vadd.f32 %v992_v61, %v967_v13  ;;  %v1000_v31 = vadd.f32 %v993_v10, %v968_v32  ;;  %v998_v39 = vadd.f32 %v991_v15, %v966_v38  ;;  %v8553_v61 = vpop.permute.xlu0 %1494  ;;  %v1033_v26 = vadd.f32 %v8326_v36, %v1001_v18 }
 0x342   : > { %v1087_v44 = vsel %vm1086_vm6, %v8360_v60, %v8350_v52  ;;  %v1152_v49 = vsel %vm1150_vm8, %v8380_v20, %v8382_v21  ;;  %v1119_v55 = vsel %vm1118_vm7, %v8374_v12, %v8366_v5  ;;  %v1184_v52 = vsel %vm1182_vm9, %v8394_v34, %v8396_v35 }
 0x343   : > { %v1031_v42 = vadd.f32 %v1024_v11, %v999_v24  ;;  %v1032_v50 = vadd.f32 %v1025_v23, %v1000_v31  ;;  %v1030_v13 = vadd.f32 %v1023_v22, %v998_v39  ;;  %v1065_v36 = vadd.f32 %v8342_v48, %v1033_v26  ;;  %v9403_v26 = vld [vmem:[#allocation35_spill] sm:$0xff] }
 0x344   : > { %v1121_v48 = vsel %vm1118_vm7, %v8368_v8, %v8372_v9  ;;  %v1153_v8 = vsel %vm1150_vm8, %v8382_v21, %v8386_v25  ;;  %v1151_v5 = vsel %vm1150_vm8, %v8388_v28, %v8380_v20  ;;  %v1216_v12 = vsel %vm1214_vm10, %v8408_v51, %v8410_v43 }
 0x345   : > { %v8541_v19 = vpop.permute.xlu1 %1528  ;;  %v1063_v57 = vadd.f32 %v1056_v14, %v1031_v42  ;;  %v1064_v7 = vadd.f32 %v1057_v33, %v1032_v50  ;;  %v1062_v6 = vadd.f32 %v1055_v30, %v1030_v13  ;;  %v1097_v54 = vadd.f32 %v8358_v59, %v1065_v36  ;;  %v8589_v10 = vpop.permute.xlu0 %1530  ;;  %v9405_v33 = vld [vmem:[#allocation38_spill] sm:$0xff]  ;;  %v9406_v36 = vld [vmem:[#allocation36_spill] sm:$0xff] }
 0x346   : > { %v1183_v21 = vsel %vm1182_vm9, %v8404_v46, %v8394_v34  ;;  %v1248_v20 = vsel %vm1246_vm11, %v8418_v0, %v8420_v4  ;;  %v1215_v34 = vsel %vm1214_vm10, %v8416_v63, %v8408_v51  ;;  %v1280_v46 = vsel %vm1278_vm12, %v8426_v16, %v8428_v17  ;;  %v9404_v63 = vld [vmem:[#allocation39_spill] sm:$0xff] }
 0x347   : > { %v1095_v1 = vadd.f32 %v1088_v27, %v1063_v57  ;;  %v1096_v58 = vadd.f32 %v1089_v45, %v1064_v7  ;;  %v1094_v24 = vadd.f32 %v1087_v44, %v1062_v6  ;;  %v1129_v59 = vadd.f32 %v8372_v9, %v1097_v54  ;;  %v9402_v57 = vld [vmem:[#allocation34_spill] sm:$0xff]  ;;  %v9407_v45 = vld [vmem:[#allocation37_spill] sm:$0xff]  ;;  %v9408_v44 = vld [vmem:[#allocation43_spill] sm:$0xff] }
 0x348   : > { %v1185_v9 = vsel %vm1182_vm9, %v8396_v35, %v8402_v40  ;;  %v1217_v35 = vsel %vm1214_vm10, %v8410_v43, %v8414_v56  ;;  %v1249_v43 = vsel %vm1246_vm11, %v8420_v4, %v9402_v57  ;;  %v1247_v51 = vsel %vm1246_vm11, %v9403_v26, %v8418_v0 }
 0x349   : > { %v8565_v3 = vpop.permute.xlu1 %1532  ;;  %v1127_v11 = vadd.f32 %v1120_v37, %v1095_v1  ;;  %v1128_v15 = vadd.f32 %v1121_v48, %v1096_v58  ;;  %v1126_v14 = vadd.f32 %v1119_v55, %v1094_v24  ;;  %v1161_v38 = vadd.f32 %v8386_v25, %v1129_v59  ;;  %v8623_v39 = vpop.permute.xlu0 %1526  ;;  %v9410_v55 = vld [vmem:[#allocation40_spill] sm:$0xff]  ;;  %v9412_v24 = vld [vmem:[#allocation47_spill] sm:$0xff] }
 0x34a   : > { %v1312_v30 = vsel %vm1310_vm13, %v9405_v33, %v9404_v63  ;;  %v1281_v4 = vsel %vm1278_vm12, %v8428_v17, %v9406_v36  ;;  %v1279_v0 = vsel %vm1278_vm12, %v9407_v45, %v8426_v16  ;;  %vm1406_vm5 = vcmask 539648   ;;  %v9411_v17 = vld [vmem:[#allocation41_spill] sm:$0xff]  ;;  %v9413_v16 = vld [vmem:[#allocation46_spill] sm:$0xff] }
 0x34b   : > { %v1159_v53 = vadd.f32 %v1152_v49, %v1127_v11  ;;  %v1160_v42 = vadd.f32 %v1153_v8, %v1128_v15  ;;  %v1158_v18 = vadd.f32 %v1151_v5, %v1126_v14  ;;  %v1193_v25 = vadd.f32 %v8402_v40, %v1161_v38  ;;  %v9409_v49 = vld [vmem:[#allocation42_spill] sm:$0xff] }
 0x34c   : > { %v1344_v7 = vsel %vm1342_vm14, %v9409_v49, %v9408_v44  ;;  %v1311_v58 = vsel %vm1310_vm13, %v9411_v17, %v9405_v33  ;;  %vm1438_vm6 = vcmask 531456   ;;  %vm1470_vm7 = vcmask 523264   ;;  %v9419_v33 = vld [vmem:[#allocation50_spill] sm:$0xff] }
 0x34d   : > { %v8587_v60 = vpop.permute.xlu1 %1560  ;;  %v1191_v32 = vadd.f32 %v1184_v52, %v1159_v53  ;;  %v1192_v22 = vadd.f32 %v1185_v9, %v1160_v42  ;;  %v1190_v27 = vadd.f32 %v1183_v21, %v1158_v18  ;;  %v1225_v40 = vadd.f32 %v8414_v56, %v1193_v25  ;;  %v8659_v15 = vpop.permute.xlu0 %1562  ;;  %v9415_v9 = vld [vmem:[#allocation45_spill] sm:$0xff] }
 0x34e   : > { %v1313_v52 = vsel %vm1310_vm13, %v9404_v63, %v9410_v55  ;;  %v1376_v53 = vsel %vm1374_vm15, %v9413_v16, %v9412_v24  ;;  %v1343_v21 = vsel %vm1342_vm14, %v9415_v9, %v9409_v49  ;;  %vm1502_vm10 = vcmask 392192   ;;  %v9423_v49 = vld [vmem:[#allocation53_spill] sm:$0xff] }
 0x34f   : > { %v1223_v23 = vadd.f32 %v1216_v12, %v1191_v32  ;;  %v1224_v50 = vadd.f32 %v1217_v35, %v1192_v22  ;;  %v1222_v13 = vadd.f32 %v1215_v34, %v1190_v27  ;;  %v1257_v56 = vadd.f32 %v9402_v57, %v1225_v40  ;;  %v9414_v32 = vld [vmem:[#allocation44_spill] sm:$0xff] }
 0x350   : > { %v1345_v38 = vsel %vm1342_vm14, %v9408_v44, %v9414_v32  ;;  %v9416_v35 = vld [vmem:[#allocation48_spill] sm:$0xff]  ;;  %vm1534_vm11 = vcmask 384000   ;;  %vm1566_vm12 = vcmask 375808   ;;  %vm1598_vm13 = vcmask 367616  }
 0x351   : > { %v8611_v28 = vpop.permute.xlu1 %1564  ;;  %v1255_v31 = vadd.f32 %v1248_v20, %v1223_v23  ;;  %v1256_v6 = vadd.f32 %v1249_v43, %v1224_v50  ;;  %v1254_v11 = vadd.f32 %v1247_v51, %v1222_v13  ;;  %v1289_v48 = vadd.f32 %v9406_v36, %v1257_v56  ;;  %v9418_v27 = vld [vmem:[#allocation52_spill] sm:$0xff]  ;;  %v9420_v50 = vld [vmem:[#allocation51_spill] sm:$0xff] }
 0x352   : > { %v1408_v20 = vsel %vm1406_vm5, %v8458_v29, %v8460_v41  ;;  %v1377_v34 = vsel %vm1374_vm15, %v9412_v24, %v9416_v35  ;;  %v1407_v13 = vsel %vm1406_vm5, %v9420_v50, %v8458_v29  ;;  %v9422_v56 = vld [vmem:[#allocation55_spill] sm:$0xff]  ;;  %v9426_v24 = vld [vmem:[#allocation57_spill] sm:$0xff]  ;;  %vm1630_vm14 = vcmask 359424  }
 0x353   : > { %v1287_v1 = vadd.f32 %v1280_v46, %v1255_v31  ;;  %v1288_v8 = vadd.f32 %v1281_v4, %v1256_v6  ;;  %v1286_v5 = vadd.f32 %v1279_v0, %v1254_v11  ;;  %v1321_v14 = vadd.f32 %v9410_v55, %v1289_v48  ;;  %v9417_v46 = vld [vmem:[#allocation49_spill] sm:$0xff]  ;;  %v9425_v29 = vld [vmem:[#allocation59_spill] sm:$0xff] }
 0x354   : > { %v1375_v22 = vsel %vm1374_vm15, %v9417_v46, %v9413_v16  ;;  %v1440_v31 = vsel %vm1438_vm6, %v9418_v27, %v8468_v2  ;;  %v1504_v11 = vsel %vm1502_vm10, %v9425_v29, %v8519_v47  ;;  %v9427_v16 = vld [vmem:[#allocation58_spill] sm:$0xff]  ;;  %v1503_v9 = vsel %vm1502_vm10, %v8553_v61, %v9425_v29 }
 0x355   : > { %v8635_v37 = vpop.permute.xlu1 %1558  ;;  %v1319_v54 = vadd.f32 %v1312_v30, %v1287_v1  ;;  %v1320_v42 = vadd.f32 %v1313_v52, %v1288_v8  ;;  %v1318_v18 = vadd.f32 %v1311_v58, %v1286_v5  ;;  %v1353_v25 = vadd.f32 %v9414_v32, %v1321_v14  ;;  %v9421_v1 = vld [vmem:[#allocation56_spill] sm:$0xff] }
 0x356   : > { %v1409_v30 = vsel %vm1406_vm5, %v8460_v41, %v9419_v33  ;;  %v1472_v36 = vsel %vm1470_vm7, %v9422_v56, %v9421_v1  ;;  %v9424_v41 = vld [vmem:[#allocation54_spill] sm:$0xff]  ;;  %v1536_v8 = vsel %vm1534_vm11, %v8541_v19, %v8589_v10  ;;  %vm1812_vm15 = vcmask 130048  }
 0x357   : > { %v1351_v12 = vadd.f32 %v1344_v7, %v1319_v54  ;;  %v1352_v57 = vadd.f32 %v1345_v38, %v1320_v42  ;;  %v1350_v43 = vadd.f32 %v1343_v21, %v1318_v18  ;;  %v1385_v63 = vadd.f32 %v9416_v35, %v1353_v25 }
 0x358   : > { %v1441_v7 = vsel %vm1438_vm6, %v8468_v2, %v9423_v49  ;;  %v1439_v6 = vsel %vm1438_vm6, %v9424_v41, %v9418_v27  ;;  %v1473_v2 = vsel %vm1470_vm7, %v9421_v1, %v9426_v24  ;;  %v1505_v38 = vsel %vm1502_vm10, %v8519_v47, %v8517_v62 }
 0x359   : > { %v8657_v59 = vpop.permute.xlu1 %1592  ;;  %v1383_v23 = vadd.f32 %v1376_v53, %v1351_v12  ;;  %v1384_v4 = vadd.f32 %v1377_v34, %v1352_v57  ;;  %v1382_v45 = vadd.f32 %v1375_v22, %v1350_v43  ;;  %v1417_v44 = vadd.f32 %v9419_v33, %v1385_v63 }
 0x35a   : > { %v1471_v53 = vsel %vm1470_vm7, %v9427_v16, %v9422_v56  ;;  %v1568_v21 = vsel %vm1566_vm12, %v8587_v60, %v8659_v15  ;;  %v1537_v34 = vsel %vm1534_vm11, %v8589_v10, %v8565_v3  ;;  %v1535_v47 = vsel %vm1534_vm11, %v8623_v39, %v8541_v19  ;;  %v1719_v16 = vld [vmem:[#allocation7 + $0x38] sm:$0xff] }
 0x35b   : > { %v1415_v26 = vadd.f32 %v1408_v20, %v1383_v23  ;;  %v1416_v48 = vadd.f32 %v1409_v30, %v1384_v4  ;;  %v1414_v55 = vadd.f32 %v1407_v13, %v1382_v45  ;;  %v1449_v58 = vadd.f32 %v9423_v49, %v1417_v44 }
 0x35c   : > { %v1567_v10 = vsel %vm1566_vm12, %v8635_v37, %v8587_v60  ;;  %vm2023_vm5 = vcmask 64512   ;;  %vm2545_vm6 = vcmask 924672   ;;  %vm2612_vm10 = vcmask 916480  }
 0x35d   : > { %v8681_v40 = vpop.permute.xlu1 %1596  ;;  %v1447_v0 = vadd.f32 %v1440_v31, %v1415_v26  ;;  %v1448_v5 = vadd.f32 %v1441_v7, %v1416_v48  ;;  %v1446_v12 = vadd.f32 %v1439_v6, %v1414_v55  ;;  %v1481_v32 = vadd.f32 %v9426_v24, %v1449_v58  ;;  %v1714_v24 = vld [vmem:[#allocation7 + $0x10] sm:$0xff] }
 0x35e   : > { %v8683_v51 = vpop.permute.xlu0 %1646  ;;  %vm2813_vm11 = vcmask 834560  }
 0x35f   : > { %v1479_v52 = vadd.f32 %v1472_v36, %v1447_v0  ;;  %v1480_v42 = vadd.f32 %v1473_v2, %v1448_v5  ;;  %v1478_v18 = vadd.f32 %v1471_v53, %v1446_v12  ;;  %v1513_v35 = vadd.f32 %v8517_v62, %v1481_v32  ;;  %v1717_v2 = vld [vmem:[#allocation7 + $0x28] sm:$0xff]  ;;  %v1716_v5 = vld [vmem:[#allocation7 + $0x20] sm:$0xff]  ;;  %v1718_v12 = vld [vmem:[#allocation7 + $0x30] sm:$0xff] }
 0x360   : > { %v1569_v62 = vsel %vm1566_vm12, %v8659_v15, %v8611_v28  ;;  %v1723_v32 = vld [vmem:[#allocation7 + $0x58] sm:$0xff]  ;;  %vm2880_vm12 = vcmask 826368  }
 0x361   : > { %v1591_v54 = vpop.permute.xlu1 %1590  ;;  %v1511_v14 = vadd.f32 %v1504_v11, %v1479_v52  ;;  %v1512_v46 = vadd.f32 %v1505_v38, %v1480_v42  ;;  %v1510_v22 = vadd.f32 %v1503_v9, %v1478_v18  ;;  %v1545_v31 = vadd.f32 %v8565_v3, %v1513_v35  ;;  %v1715_v52 = vld [vmem:[#allocation7 + $0x18] sm:$0xff]  ;;  %v1722_v42 = vld [vmem:[#allocation7 + $0x50] sm:$0xff]  ;;  %v1725_v18 = vld [vmem:[#allocation7 + $0x68] sm:$0xff] }
 0x362   : > { %v1595_v17 = vpop.permute.xlu0 %1594  ;;  %v1599_v33 = vsel %vm1598_vm13, %v1591_v54, %v8657_v59  ;;  %v6413_v9 = vpack.c.bf16 %v1718_v12, %v1716_v5  ;;  %v1757_v5 = vld [vmem:[#allocation7 + $0x168] sm:$0xff]  ;;  %v1759_v12 = vld [vmem:[#allocation7 + $0x178] sm:$0xff] }
 0x363   : > { %v1543_v23 = vadd.f32 %v1536_v8, %v1511_v14  ;;  %v1600_v61 = vsel %vm1598_vm13, %v8657_v59, %v1595_v17  ;;  %v1544_v57 = vadd.f32 %v1537_v34, %v1512_v46  ;;  %v1542_v43 = vadd.f32 %v1535_v47, %v1510_v22  ;;  %v1721_v14 = vld [vmem:[#allocation7 + $0x48] sm:$0xff]  ;;  %v1724_v34 = vld [vmem:[#allocation7 + $0x60] sm:$0xff]  ;;  %v1726_v47 = vld [vmem:[#allocation7 + $0x70] sm:$0xff] }
 0x364   : > { %v1577_v63 = vadd.f32 %v8611_v28, %v1545_v31  ;;  %v1601_v3 = vsel %vm1598_vm13, %v1595_v17, %v8681_v40  ;;  %v1712_v17 = vld [vmem:[#allocation7] sm:$0xff]  ;;  %v6411_v8 = vpack.c.bf16 %v1719_v16, %v1717_v2  ;;  %v1731_v46 = vld [vmem:[#allocation7 + $0x98] sm:$0xff]  ;;  %v6421_v22 = vpack.c.bf16 %v1726_v47, %v1724_v34  ;;  %v1765_v34 = vld [vmem:[#allocation7 + $0x1a8] sm:$0xff] }
 0x365   : > { %v1627_v20 = vpop.permute.xlu1 %1626  ;;  %v1575_v27 = vadd.f32 %v1568_v21, %v1543_v23  ;;  %v1576_v15 = vadd.f32 %v1569_v62, %v1544_v57  ;;  %v1574_v50 = vadd.f32 %v1567_v10, %v1542_v43  ;;  %v6409_v53 = vpack.c.bf16 %v1714_v24, %v1712_v17  ;;  %v1727_v23 = vld [vmem:[#allocation7 + $0x78] sm:$0xff]  ;;  %v1728_v31 = vld [vmem:[#allocation7 + $0x80] sm:$0xff]  ;;  %v1730_v62 = vld [vmem:[#allocation7 + $0x90] sm:$0xff] }
 0x366   : > { %v1656_v25 = vpop.permute.xlu0 %1655  ;;  %v1609_v60 = vadd.f32 %v8681_v40, %v1577_v63  ;;  %v6415_v21 = vpack.c.bf16 %v1723_v32, %v1721_v14  ;;  %v6419_v35 = vpack.c.bf16 %v1727_v23, %v1725_v18  ;;  %v1733_v10 = vld [vmem:[#allocation7 + $0xa8] sm:$0xff]  ;;  %v1735_v57 = vld [vmem:[#allocation7 + $0xb8] sm:$0xff]  ;;  %v6425_v43 = vpack.c.bf16 %v1730_v62, %v1728_v31  ;;  %v1750_v17 = vld [vmem:[#allocation7 + $0x130] sm:$0xff] }
 0x367   : > { %v1607_v19 = vadd.f32 %v1600_v61, %v1575_v27  ;;  %v1606_v1 = vadd.f32 %v1599_v33, %v1574_v50  ;;  %v1608_v56 = vadd.f32 %v1601_v3, %v1576_v15  ;;  %v1729_v61 = vld [vmem:[#allocation7 + $0x88] sm:$0xff]  ;;  %v1739_v33 = vld [vmem:[#allocation7 + $0xd8] sm:$0xff]  ;;  %v1736_v15 = vld [vmem:[#allocation7 + $0xc0] sm:$0xff]  ;;  %v6451_v32 = vpack.c.bf16 %v1759_v12, %v1757_v5 }
 0x368   : > { %v6423_v27 = vpack.c.bf16 %v1731_v46, %v1729_v61  ;;  %v1737_v63 = vld [vmem:[#allocation7 + $0xc8] sm:$0xff]  ;;  %v1738_v50 = vld [vmem:[#allocation7 + $0xd0] sm:$0xff]  ;;  %v1755_v24 = vld [vmem:[#allocation7 + $0x158] sm:$0xff]  ;;  %vm2947_vm13 = vcmask 818176  }
 0x369   : > { %v1623_v39 = vpop.permute.xlu1 %1622  ;;  %v1767_v47 = vld [vmem:[#allocation7 + $0x1b8] sm:$0xff]  ;;  %v1769_v31 = vld [vmem:[#allocation7 + $0x1c8] sm:$0xff]  ;;  %v1782_v5 = vld [vmem:[#allocation7 + $0x230] sm:$0xff] }
 0x36a   : > { %v1625_v26 = vpop.permute.xlu0 %1624  ;;  %v6459_v46 = vpack.c.bf16 %v1767_v47, %v1765_v34  ;;  %v1771_v62 = vld [vmem:[#allocation7 + $0x1d8] sm:$0xff]  ;;  %v1785_v12 = vld [vmem:[#allocation7 + $0x248] sm:$0xff]  ;;  %v1790_v34 = vld [vmem:[#allocation7 + $0x270] sm:$0xff] }
 0x36b   : > { %v1632_v30 = vsel %vm1630_vm14, %v1625_v26, %v1627_v20  ;;  %v1631_v37 = vsel %vm1630_vm14, %v1623_v39, %v1625_v26  ;;  %v1732_v39 = vld [vmem:[#allocation7 + $0xa0] sm:$0xff]  ;;  %v1734_v26 = vld [vmem:[#allocation7 + $0xb0] sm:$0xff]  ;;  %v1793_v47 = vld [vmem:[#allocation7 + $0x288] sm:$0xff] }
 0x36c   : > { %v1639_v13 = vadd.f32 %v1632_v30, %v1607_v19  ;;  %v1638_v45 = vadd.f32 %v1631_v37, %v1606_v1  ;;  %v6427_v19 = vpack.c.bf16 %v1735_v57, %v1733_v10  ;;  %v6429_v3 = vpack.c.bf16 %v1734_v26, %v1732_v39  ;;  %v1773_v26 = vld [vmem:[#allocation7 + $0x1e8] sm:$0xff] }
 0x36d   : > { %v6431_v30 = vpack.c.bf16 %v1739_v33, %v1737_v63  ;;  %v6433_v37 = vpack.c.bf16 %v1738_v50, %v1736_v15  ;;  %v6463_v57 = vpack.c.bf16 %v1771_v62, %v1769_v31  ;;  %v1775_v63 = vld [vmem:[#allocation7 + $0x1f8] sm:$0xff]  ;;  %v1777_v50 = vld [vmem:[#allocation7 + $0x208] sm:$0xff]  ;;  %v1794_v31 = vld [vmem:[#allocation7 + $0x290] sm:$0xff] }
 0x36e   : > { %v1650_v36 = vmul.f32 %v8683_v51, %v1639_v13  ;;  %v1629_v28 = vpop.permute.xlu0 %1628  ;;  %v1649_v40 = vmul.f32 %v8683_v51, %v1638_v45  ;;  %v1741_v13 = vld [vmem:[#allocation7 + $0xe8] sm:$0xff]  ;;  %v6467_v33 = vpack.c.bf16 %v1775_v63, %v1773_v26  ;;  %v1803_v63 = vld [vmem:[#allocation7 + $0x2d8] sm:$0xff] }
 0x36f   : > { %v1633_v4 = vsel %vm1630_vm14, %v1627_v20, %v1629_v28  ;;  %v1641_v59 = vadd.f32 %v1629_v28, %v1609_v60  ;;  %v1720_v20 = vld [vmem:[#allocation7 + $0x40] sm:$0xff]  ;;  %v1743_v60 = vld [vmem:[#allocation7 + $0xf8] sm:$0xff]  ;;  %v1745_v28 = vld [vmem:[#allocation7 + $0x108] sm:$0xff]  ;;  %vm3014_vm14 = vcmask 752640  }
 0x370   : > { %v1640_v0 = vadd.f32 %v1633_v4, %v1608_v56  ;;  %v8752_v49 = vadd.f32 %v1656_v25, %v1650_v36  ;;  %v8770_v55 = vadd.f32 %v1656_v25, %v1649_v40  ;;  %v6435_v1 = vpack.c.bf16 %v1743_v60, %v1741_v13  ;;  %v1740_v56 = vld [vmem:[#allocation7 + $0xe0] sm:$0xff]  ;;  %v1742_v36 = vld [vmem:[#allocation7 + $0xf0] sm:$0xff]  ;;  %v1747_v4 = vld [vmem:[#allocation7 + $0x118] sm:$0xff] }
 0x371   : > { %v1652_v44 = vmul.f32 %v8683_v51, %v1641_v59  ;;  %v6437_v59 = vpack.c.bf16 %v1742_v36, %v1740_v56  ;;  %v6439_v45 = vpack.c.bf16 %v1747_v4, %v1745_v28  ;;  %v1751_v40 = vld [vmem:[#allocation7 + $0x138] sm:$0xff]  ;;  %v1797_v62 = vld [vmem:[#allocation7 + $0x2a8] sm:$0xff] }
 0x372   : > { %v1651_v7 = vmul.f32 %v8683_v51, %v1640_v0  ;;  %v1663_v11 = vmax.f32 %v8752_v49, 0.0  ;;  %v1713_v51 = vld [vmem:[#allocation7 + $0x8] sm:$0xff]  ;;  %v1662_v38 = vmax.f32 %v8770_v55, 0.0  ;;  %v1744_v0 = vld [vmem:[#allocation7 + $0x100] sm:$0xff]  ;;  %v1779_v13 = vld [vmem:[#allocation7 + $0x218] sm:$0xff] }
 0x373   : > { %v8755_v41 = vadd.f32 %v1656_v25, %v1652_v44  ;;  %v6407_v58 = vpack.c.bf16 %v1715_v52, %v1713_v51  ;;  %v1746_v44 = vld [vmem:[#allocation7 + $0x110] sm:$0xff]  ;;  %v1748_v52 = vld [vmem:[#allocation7 + $0x120] sm:$0xff]  ;;  %v6471_v60 = vpack.c.bf16 %v1779_v13, %v1777_v50  ;;  %v1801_v26 = vld [vmem:[#allocation7 + $0x2c8] sm:$0xff] }
 0x374   : > { %v8758_v6 = vadd.f32 %v1656_v25, %v1651_v7  ;;  %v6417_v25 = vpack.c.bf16 %v1722_v42, %v1720_v20  ;;  %v1749_v7 = vld [vmem:[#allocation7 + $0x128] sm:$0xff]  ;;  %v6445_v2 = vpack.c.bf16 %v1750_v17, %v1748_v52  ;;  %v1763_v42 = vld [vmem:[#allocation7 + $0x198] sm:$0xff]  ;;  %v1778_v55 = vld [vmem:[#allocation7 + $0x210] sm:$0xff] }
 0x375   : > { %v1665_v29 = vmax.f32 %v8755_v41, 0.0  ;;  %6408 = vmatprep.subr.bf16.mxu0 %v6407_v58  ;;  %v6443_v51 = vpack.c.bf16 %v1751_v40, %v1749_v7  ;;  %v1753_v58 = vld [vmem:[#allocation7 + $0x148] sm:$0xff]  ;;  %v1783_v52 = vld [vmem:[#allocation7 + $0x238] sm:$0xff] }
 0x376   : > { %v1664_v54 = vmax.f32 %v8758_v6, 0.0  ;;  %6410 = vmatpush1.bf16.msra.mxu0 %v6409_v53  ;;  %v6447_v16 = vpack.c.bf16 %v1755_v24, %v1753_v58  ;;  %v1752_v53 = vld [vmem:[#allocation7 + $0x140] sm:$0xff]  ;;  %v1761_v20 = vld [vmem:[#allocation7 + $0x188] sm:$0xff]  ;;  %v1807_v13 = vld [vmem:[#allocation7 + $0x2f8] sm:$0xff] }
 0x377   : > { %1676 = vrot.lane.b32.xlu1 %v1665_v29, %s7572_s7  ;;  %6412 = vmatprep.subr.bf16.mxu0 %v6411_v8  ;;  %v1754_v8 = vld [vmem:[#allocation7 + $0x150] sm:$0xff]  ;;  %v6455_v23 = vpack.c.bf16 %v1763_v42, %v1761_v20  ;;  %v1789_v42 = vld [vmem:[#allocation7 + $0x268] sm:$0xff] }
 0x378   : > { %v6971_v48 = vpack.i.bf16 %v1664_v54, %v1663_v11  ;;  %v6449_v14 = vpack.c.bf16 %v1754_v8, %v1752_v53  ;;  %v1780_v8 = vld [vmem:[#allocation7 + $0x220] sm:$0xff]  ;;  %v1786_v20 = vld [vmem:[#allocation7 + $0x250] sm:$0xff]  ;;  %v1805_v50 = vld [vmem:[#allocation7 + $0x2e8] sm:$0xff] }
 0x37a   : > { %6972 = vrot.lane.b32.xlu0 %v6971_v48, %s7572_s7  ;;  %6414 = vmatpush1.bf16.msra.mxu0 %v6413_v9  ;;  %v6441_v48 = vpack.c.bf16 %v1746_v44, %v1744_v0  ;;  %v1756_v9 = vld [vmem:[#allocation7 + $0x160] sm:$0xff] }
 0x37b   : > { %6416 = vmatprep.subr.bf16.mxu0 %v6415_v21  ;;  %v1758_v21 = vld [vmem:[#allocation7 + $0x170] sm:$0xff] }
 0x37c   : > { %v6453_v18 = vpack.c.bf16 %v1758_v21, %v1756_v9  ;;  %v1784_v21 = vld [vmem:[#allocation7 + $0x240] sm:$0xff] }
 0x37e   : > { %1670 = vrot.lane.b32.xlu0 %v1662_v38, %s7572_s7  ;;  %6418 = vmatpush1.bf16.msra.mxu0 %v6417_v25  ;;  %v1760_v25 = vld [vmem:[#allocation7 + $0x180] sm:$0xff] }
 0x37f   : > { %6420 = vmatprep.subr.bf16.mxu0 %v6419_v35  ;;  %v1762_v35 = vld [vmem:[#allocation7 + $0x190] sm:$0xff] }
 0x380   : > { %v6457_v61 = vpack.c.bf16 %v1762_v35, %v1760_v25  ;;  %v1788_v35 = vld [vmem:[#allocation7 + $0x260] sm:$0xff] }
 0x382   : > { %6422 = vmatpush1.bf16.msra.mxu0 %v6421_v22  ;;  %v1764_v22 = vld [vmem:[#allocation7 + $0x1a0] sm:$0xff] }
 0x383   : > { %6424 = vmatprep.subr.bf16.mxu0 %v6423_v27  ;;  %v1766_v27 = vld [vmem:[#allocation7 + $0x1b0] sm:$0xff] }
 0x384   : > { %v6461_v10 = vpack.c.bf16 %v1766_v27, %v1764_v22  ;;  %v1792_v27 = vld [vmem:[#allocation7 + $0x280] sm:$0xff] }
 0x386   : > { %6426 = vmatpush1.bf16.msra.mxu0 %v6425_v43  ;;  %v1768_v43 = vld [vmem:[#allocation7 + $0x1c0] sm:$0xff] }
 0x387   : > { %6428 = vmatprep.subr.bf16.mxu0 %v6427_v19  ;;  %v1770_v19 = vld [vmem:[#allocation7 + $0x1d0] sm:$0xff] }
 0x388   : > { %v6465_v39 = vpack.c.bf16 %v1770_v19, %v1768_v43  ;;  %v1796_v19 = vld [vmem:[#allocation7 + $0x2a0] sm:$0xff] }
 0x38a   : > { %6430 = vmatpush1.bf16.msra.mxu0 %v6429_v3  ;;  %v1772_v3 = vld [vmem:[#allocation7 + $0x1e0] sm:$0xff] }
 0x38b   : > { %6432 = vmatprep.subr.bf16.mxu0 %v6431_v30  ;;  %v1774_v30 = vld [vmem:[#allocation7 + $0x1f0] sm:$0xff] }
 0x38c   : > { %v6469_v15 = vpack.c.bf16 %v1774_v30, %v1772_v3  ;;  %v6495_v3 = vpack.c.bf16 %v1803_v63, %v1801_v26  ;;  %v1800_v30 = vld [vmem:[#allocation7 + $0x2c0] sm:$0xff] }
 0x38e   : > { %6434 = vmatpush1.bf16.msra.mxu0 %v6433_v37 }
 0x38f   : > { %6436 = vmatprep.subr.bf16.mxu0 %v6435_v1 }
 0x392   : > { %6438 = vmatpush1.bf16.msra.mxu0 %v6437_v59 }
 0x393   : > { %6440 = vmatprep.subr.bf16.mxu0 %v6439_v45 }
 0x396   : > { %6442 = vmatpush1.bf16.msra.mxu0 %v6441_v48  ;;  %v1776_v48 = vld [vmem:[#allocation7 + $0x200] sm:$0xff] }
 0x397   : > { %6444 = vmatprep.subr.bf16.mxu0 %v6443_v51  ;;  %v1781_v51 = vld [vmem:[#allocation7 + $0x228] sm:$0xff] }
 0x398   : > { %v6475_v53 = vpack.c.bf16 %v1783_v52, %v1781_v51  ;;  %v3678_v52 = vld [vmem:[#allocation10 + $0x8] sm:$0xff] }
 0x39a   : > { %6446 = vmatpush1.bf16.msra.mxu0 %v6445_v2  ;;  %v6473_v2 = vpack.c.bf16 %v1778_v55, %v1776_v48 }
 0x39b   : > { %6448 = vmatprep.subr.bf16.mxu0 %v6447_v16 }
 0x39e   : > { %6450 = vmatpush1.bf16.msra.mxu0 %v6449_v14  ;;  %v1787_v14 = vld [vmem:[#allocation7 + $0x258] sm:$0xff] }
 0x39f   : > { %6452 = vmatprep.subr.bf16.mxu0 %v6451_v32  ;;  %v6477_v32 = vpack.c.bf16 %v1782_v5, %v1780_v8  ;;  %v6479_v9 = vpack.c.bf16 %v1787_v14, %v1785_v12 }
 0x3a2   : > { %6454 = vmatpush1.bf16.msra.mxu0 %v6453_v18  ;;  %v1791_v18 = vld [vmem:[#allocation7 + $0x278] sm:$0xff] }
 0x3a3   : > { %6456 = vmatprep.subr.bf16.mxu0 %v6455_v23  ;;  %v6481_v23 = vpack.c.bf16 %v1786_v20, %v1784_v21  ;;  %v6483_v25 = vpack.c.bf16 %v1791_v18, %v1789_v42 }
 0x3a6   : > { %6458 = vmatpush1.bf16.msra.mxu0 %v6457_v61  ;;  %v1795_v61 = vld [vmem:[#allocation7 + $0x298] sm:$0xff] }
 0x3a7   : > { %6460 = vmatprep.subr.bf16.mxu0 %v6459_v46  ;;  %v6485_v46 = vpack.c.bf16 %v1790_v34, %v1788_v35  ;;  %v6487_v22 = vpack.c.bf16 %v1795_v61, %v1793_v47 }
 0x3aa   : > { %6462 = vmatpush1.bf16.msra.mxu0 %v6461_v10  ;;  %v1799_v10 = vld [vmem:[#allocation7 + $0x2b8] sm:$0xff] }
 0x3ab   : > { %6464 = vmatprep.subr.bf16.mxu0 %v6463_v57  ;;  %v6489_v57 = vpack.c.bf16 %v1794_v31, %v1792_v27  ;;  %v6491_v43 = vpack.c.bf16 %v1799_v10, %v1797_v62 }
 0x3ae   : > { %6466 = vmatpush1.bf16.msra.mxu0 %v6465_v39  ;;  %v1798_v39 = vld [vmem:[#allocation7 + $0x2b0] sm:$0xff] }
 0x3af   : > { %6468 = vmatprep.subr.bf16.mxu0 %v6467_v33  ;;  %v6493_v33 = vpack.c.bf16 %v1798_v39, %v1796_v19 }
 0x3b2   : > { %6470 = vmatpush1.bf16.msra.mxu0 %v6469_v15  ;;  %v1802_v15 = vld [vmem:[#allocation7 + $0x2d0] sm:$0xff] }
 0x3b3   : > { %6472 = vmatprep.subr.bf16.mxu0 %v6471_v60  ;;  %v6497_v60 = vpack.c.bf16 %v1802_v15, %v1800_v30 }
 0x3e9   : > { %v1677_v36 = vpop.permute.xlu1 %1676 }
 0x3ea   : > { %v1688_v6 = vmax.f32 %v1665_v29, %v1677_v36 }
 0x3ec   : > { %v6973_v37 = vpop.permute.xlu0 %6972 }
 0x3ed   : > { %v6975_v1 = vunpack.i.h.bf16 %v6973_v37  ;;  %v6974_v56 = vunpack.i.l.bf16 %v6973_v37  ;;  %v6499_v37 = vpack.c.bf16 %v1807_v13, %v1805_v50 }
 0x3ef   : > { %v1680_v28 = vsel %vm894_vm0, %v6975_v1, %v1677_v36  ;;  %v1679_v4 = vsel %vm894_vm0, %v6974_v56, %v6975_v1  ;;  %v1804_v1 = vld [vmem:[#allocation7 + $0x2e0] sm:$0xff]  ;;  %v1809_v36 = vld [vmem:[#allocation7 + $0x308] sm:$0xff] }
 0x3f0   : > { %v8781_v59 = vmax.f32 %v1664_v54, %v1680_v28  ;;  %v1686_v45 = vmax.f32 %v1663_v11, %v1679_v4  ;;  %v1671_v0 = vpop.permute.xlu0 %1670  ;;  %v1811_v28 = vld [vmem:[#allocation7 + $0x318] sm:$0xff] }
 0x3f1   : > { %v1678_v44 = vsel %vm894_vm0, %v1671_v0, %v6974_v56  ;;  %v1806_v56 = vld [vmem:[#allocation7 + $0x2f0] sm:$0xff]  ;;  %v1808_v0 = vld [vmem:[#allocation7 + $0x300] sm:$0xff] }
 0x3f2   : > { %v1685_v7 = vmax.f32 %v1662_v38, %v1678_v44  ;;  %v6976_v40 = vpack.i.bf16 %v8781_v59, %v1686_v45  ;;  %v6501_v4 = vpack.c.bf16 %v1806_v56, %v1804_v1  ;;  %v1810_v44 = vld [vmem:[#allocation7 + $0x310] sm:$0xff] }
 0x3f4   : > { %6977 = vrot.lane.b32.xlu1 %v6976_v40, %s7576_s11  ;;  %1693 = vrot.lane.b32.xlu0 %v1685_v7, %s7576_s11 }
 0x3f8   : > { %1699 = vrot.lane.b32.xlu1 %v1688_v6, %s7576_s11  ;;  %s7596_s11 = smov 116  }
 0x466   : > { %v8794_v54 = vpop.permute.xlu1 %6977  ;;  %v1694_v38 = vpop.permute.xlu0 %1693 }
 0x467   : > { %v6980_v49 = vunpack.i.h.bf16 %v8794_v54  ;;  %v6979_v11 = vunpack.i.l.bf16 %v8794_v54  ;;  %v3677_v54 = vld [vmem:[#allocation10] sm:$0xff] }
 0x469   : > { %v1701_v17 = vsel %vm1022_vm4, %v1694_v38, %v6979_v11  ;;  %v1702_v41 = vsel %vm1022_vm4, %v6979_v11, %v6980_v49  ;;  %v9428_v11 = vmov 0  }
 0x46a   : > { %v1708_v29 = vmax.f32 %v1685_v7, %v1701_v17  ;;  %v8802_v58 = vpop.permute.xlu1 %1699  ;;  %v1709_v24 = vmax.f32 %v1686_v45, %v1702_v41  ;;  %v6503_v45 = vpack.c.bf16 %v1811_v28, %v1809_v36  ;;  %v6505_v7 = vpack.c.bf16 %v1810_v44, %v1808_v0 }
 0x46b   : > { %v1711_v16 = vmax.f32 %v1688_v6, %v8802_v58  ;;  %v1703_v40 = vsel %vm1022_vm4, %v6980_v49, %v8802_v58  ;;  %v3676_v49 = vld [vmem:[#allocation9 + $0x8] sm:$0xff]  ;;  %vm2027_vm4 = vcmask 1043456  }
 0x46c   : > { %1880 = vmatprep.mubr.f32.mxu0 %v1709_v24  ;;  %v1710_v6 = vmax.f32 %v8781_v59, %v1703_v40  ;;  %v3675_v59 = vld [vmem:[#allocation9] sm:$0xff] }
 0x46d   : > { %1881 = vmatmul.mubr.f32.vlgmr.msra.gmra.mrb[0].mxu0 %v1708_v29 }
 0x46e   : > { %6474 = vmatpush1.bf16.msra.mxu0 %v6473_v2  ;;  %5992 = vmatprep.mubr.msk.f32.mxu0 %vm1812_vm15, %v1711_v16 }
 0x46f   : > { %6476 = vmatprep.subr.bf16.mxu0 %v6475_v53 }
 0x472   : > { %6478 = vmatpush1.bf16.msra.mxu0 %v6477_v32 }
 0x473   : > { %6480 = vmatprep.subr.bf16.mxu0 %v6479_v9 }
 0x476   : > { %6482 = vmatpush1.bf16.msra.mxu0 %v6481_v23 }
 0x477   : > { %6484 = vmatprep.subr.bf16.mxu0 %v6483_v25 }
 0x47a   : > { %6486 = vmatpush1.bf16.msra.mxu0 %v6485_v46 }
 0x47b   : > { %6488 = vmatprep.subr.bf16.mxu0 %v6487_v22 }
 0x47e   : > { %6490 = vmatpush1.bf16.msra.mxu0 %v6489_v57 }
 0x47f   : > { %6492 = vmatprep.subr.bf16.mxu0 %v6491_v43 }
 0x482   : > { %6494 = vmatpush1.bf16.msra.mxu0 %v6493_v33 }
 0x483   : > { %6496 = vmatprep.subr.bf16.mxu0 %v6495_v3 }
 0x486   : > { %6498 = vmatpush1.bf16.msra.mxu0 %v6497_v60 }
 0x487   : > { %6500 = vmatprep.subr.bf16.mxu0 %v6499_v37 }
 0x48a   : > { %6502 = vmatpush1.bf16.msra.mxu0 %v6501_v4 }
 0x48b   : > { %6504 = vmatprep.subr.bf16.mxu0 %v6503_v45 }
 0x48e   : > { %6506 = vmatpush1.bf16.msra.mxu0 %v6505_v7 }
 0x491   : > { %1952 = vmatmul.mubr.f32.vlgmr.msra.gmra.mrb[0].mxu0 %v1710_v6 }
 0x492   : > { %2066 = vmatprep.mubr.bf16.mxu0 %v9428_v11 }
 0x564   : > { %v1953_v48 = vpop.f32.mrb[0].mxu0 }
 0x565   : > { %v8812_v55 = vpack.c.bf16 %v1953_v48, %v1953_v48  ;;  %v1955_v38 = vpop.f32.mrb[1].mxu0 }
 0x566   : > { %v8814_v51 = vpack.c.bf16 %v1955_v38, %v1955_v38 }
 0x567   : > { %2139 = vrot.lane.b32.xlu0 %v8812_v55, %s7573_s9 }
 0x568   : > { %2141 = vrot.lane.b32.xlu1 %v8814_v51, %s7573_s9 }
 0x56b   : > { %2206 = vrot.lane.b32.xlu0 %v8812_v55, %s7574_s23 }
 0x56c   : > { %2208 = vrot.lane.b32.xlu1 %v8814_v51, %s7574_s23  ;;  %s7598_s23 = smov 114  }
 0x56f   : > { %2273 = vrot.lane.b32.xlu0 %v8812_v55, %s7575_s29 }
 0x570   : > { %2275 = vrot.lane.b32.xlu1 %v8814_v51, %s7575_s29 }
 0x573   : > { %2340 = vrot.lane.b32.xlu0 %v8812_v55, %s7596_s11 }
 0x574   : > { %2342 = vrot.lane.b32.xlu1 %v8814_v51, %s7596_s11 }
 0x577   : > { %2407 = vrot.lane.b32.xlu0 %v8812_v55, %s7597_s18 }
 0x578   : > { %2409 = vrot.lane.b32.xlu1 %v8814_v51, %s7597_s18 }
 0x57b   : > { %2474 = vrot.lane.b32.xlu0 %v8812_v55, %s7598_s23 }
 0x57c   : > { %2476 = vrot.lane.b32.xlu1 %v8814_v51, %s7598_s23 }
 0x57f   : > { %2541 = vrot.lane.b32.xlu0 %v8812_v55, %s7599_s3 }
 0x580   : > { %2543 = vrot.lane.b32.xlu1 %v8814_v51, %s7599_s3  ;;  %s7611_s3 = smov 78  }
 0x583   : > { %2608 = vrot.lane.b32.xlu0 %v8812_v55, %s7600_s2 }
 0x584   : > { %2610 = vrot.lane.b32.xlu1 %v8814_v51, %s7600_s2  ;;  %s7613_s2 = smov 76  }
 0x587   : > { %2675 = vrot.lane.b32.xlu0 %v8812_v55, %s7580_s28 }
 0x588   : > { %2677 = vrot.lane.b32.xlu1 %v8814_v51, %s7580_s28  ;;  %s7605_s28 = smov 92  }
 0x58b   : > { %2742 = vrot.lane.b32.xlu0 %v8812_v55, %s7601_s26 }
 0x58c   : > { %2744 = vrot.lane.b32.xlu1 %v8814_v51, %s7601_s26 }
 0x58f   : > { %2809 = vrot.lane.b32.xlu0 %v8812_v55, %s7602_s25 }
 0x590   : > { %2811 = vrot.lane.b32.xlu1 %v8814_v51, %s7602_s25  ;;  %s7618_s25 = smov 123  }
 0x593   : > { %2876 = vrot.lane.b32.xlu0 %v8812_v55, %s7603_s30 }
 0x594   : > { %2878 = vrot.lane.b32.xlu1 %v8814_v51, %s7603_s30  ;;  %s9429_s30 = sld [smem:[#allocation65_spill]] }
 0x597   : > { %2943 = vrot.lane.b32.xlu0 %v8812_v55, %s7604_s5 }
 0x598   : > { %2945 = vrot.lane.b32.xlu1 %v8814_v51, %s7604_s5  ;;  %s7615_s5 = smov 121  }
 0x59a   : > { %v7001_v24 = vld [vmem:[%s9429_s30 + $0x10] sm:$0xff]   ;;  %v7002_v9 = vld [vmem:[%s9429_s30 + $0x18] sm:$0xff]   ;;  %v7003_v47 = vld [vmem:[%s9429_s30 + $0x20] sm:$0xff]  }
 0x59b   : > { %3010 = vrot.lane.b32.xlu0 %v8812_v55, %s7605_s28  ;;  %v7004_v43 = vld [vmem:[%s9429_s30 + $0x28] sm:$0xff]   ;;  %v7005_v50 = vld [vmem:[%s9429_s30 + $0x30] sm:$0xff]   ;;  %v7006_v45 = vld [vmem:[%s9429_s30 + $0x38] sm:$0xff]  }
 0x59c   : > { %3012 = vrot.lane.b32.xlu1 %v8814_v51, %s7605_s28  ;;  %s7616_s28 = smov 122  }
 0x59f   : > { %3077 = vrot.lane.b32.xlu0 %v8812_v55, %s7606_s4 }
 0x5a0   : > { %3079 = vrot.lane.b32.xlu1 %v8814_v51, %s7606_s4  ;;  %s7617_s4 = smov 120  }
 0x5a3   : > { %3144 = vrot.lane.b32.xlu0 %v8812_v55, %s7607_s1 }
 0x5a4   : > { %3146 = vrot.lane.b32.xlu1 %v8814_v51, %s7607_s1  ;;  %s5991_s1 = sshll.u32 %s9436_s24, 3 }
 0x5a7   : > { %3211 = vrot.lane.b32.xlu0 %v8812_v55, %s7608_s20 }
 0x5a8   : > { %3213 = vrot.lane.b32.xlu1 %v8814_v51, %s7608_s20 }
 0x5ab   : > { %3278 = vrot.lane.b32.xlu0 %v8812_v55, %s7581_s12 }
 0x5ac   : > { %3280 = vrot.lane.b32.xlu1 %v8814_v51, %s7581_s12  ;;  %s7612_s12 = smov 77  }
 0x5af   : > { %3345 = vrot.lane.b32.xlu0 %v8812_v55, %s7609_s0 }
 0x5b0   : > { %3347 = vrot.lane.b32.xlu1 %v8814_v51, %s7609_s0 }
 0x5b3   : > { %3412 = vrot.lane.b32.xlu0 %v8812_v55, %s7610_s19 }
 0x5b4   : > { %3414 = vrot.lane.b32.xlu1 %v8814_v51, %s7610_s19  ;;  %s9433_s19 = sld [smem:[#allocation72_spill]] }
 0x5b7   : > { %3479 = vrot.lane.b32.xlu0 %v8812_v55, %s7611_s3 }
 0x5b8   : > { %3481 = vrot.lane.b32.xlu1 %v8814_v51, %s7611_s3 }
 0x5ba   : > { %s836_s3 = scalar_lea.vmem %s9433_s19, %s5991_s1 }
 0x5bb   : > { %2017 = vrot.lane.b32.xlu0 %v8812_v55, %s7572_s7 }
 0x5bc   : > { %2019 = vrot.lane.b32.xlu1 %v8814_v51, %s7572_s7 }
 0x5bf   : > { %3546 = vrot.lane.b32.xlu0 %v8812_v55, %s7612_s12 }
 0x5c0   : > { %3548 = vrot.lane.b32.xlu1 %v8814_v51, %s7612_s12 }
 0x5c3   : > { %3613 = vrot.lane.b32.xlu0 %v8812_v55, %s7613_s2 }
 0x5c4   : > { %3615 = vrot.lane.b32.xlu1 %v8814_v51, %s7613_s2 }
 0x5c7   : > { %3681 = vperm.xlu0 %6970, %v3675_v59  }
 0x5c8   : > { %3695 = vperm.xlu1 %6969, %v3677_v54   ;;  %v7007_v54 = vld [vmem:[%s9429_s30 + $0x40] sm:$0xff]  }
 0x5cb   : > { %3686 = vperm.xlu0 %6970, %v3676_v49  }
 0x5cc   : > { %3700 = vperm.xlu1 %6969, %v3678_v52  }
 0x5d9   : > { %v2140_v17 = vpop.permute.xlu0 %2139 }
 0x5da   : > { %v2142_v41 = vpop.permute.xlu1 %2141 }
 0x5db   : > { %6000 = vmatprep.subr.msk.bf16.mxu1 %vm2027_vm4, %v2142_v41  ;;  %v2144_v29 = vsel %vm926_vm1, %v2140_v17, %v2142_v41  ;;  %vm2344_vm1 = vcmask 949248  }
 0x5dc   : > { %v2149_v58 = vsel %vm2027_vm4, %v2144_v29, 0 }
 0x5dd   : > { %v2207_v2 = vpop.permute.xlu0 %2206  ;;  %2155 = vmatpush1.bf16.msra.mxu1 %v2149_v58 }
 0x5de   : > { %v2209_v16 = vpop.permute.xlu1 %2208 }
 0x5df   : > { %v2211_v53 = vsel %vm958_vm2, %v2207_v2, %v2209_v16  ;;  %6003 = vmatprep.subr.msk.bf16.mxu1 %vm2027_vm4, %v2209_v16  ;;  %vm2411_vm2 = vcmask 941056  }
 0x5e0   : > { %6001 = vmatmul.mubr.msk.bf16.vlgmr.msra.gmra.mrb[0].mxu1 %vm2023_vm5, %v7001_v24  ;;  %v2216_v8 = vsel %vm2027_vm4, %v2211_v53, 0 }
 0x5e1   : > { %v2274_v5 = vpop.permute.xlu0 %2273  ;;  %2222 = vmatpush1.bf16.msra.mxu1 %v2216_v8  ;;  %2253 = vmatprep.mubr.bf16.mxu1 %v9428_v11  ;;  %v7008_v8 = vld [vmem:[%s9429_s30 + $0x48] sm:$0xff]  }
 0x5e2   : > { %v2276_v12 = vpop.permute.xlu1 %2275 }
 0x5e3   : > { %6006 = vmatprep.subr.msk.bf16.mxu1 %vm2027_vm4, %v2276_v12  ;;  %v2278_v21 = vsel %vm990_vm3, %v2274_v5, %v2276_v12  ;;  %vm2478_vm3 = vcmask 932864   ;;  %v7009_v5 = vld [vmem:[%s9429_s30 + $0x8] sm:$0xff]  }
 0x5e4   : > { %v2283_v18 = vsel %vm2027_vm4, %v2278_v21, 0  ;;  %v7011_v21 = vld [vmem:[%s9429_s30 + $0x58] sm:$0xff]  }
 0x5e5   : > { %v2341_v14 = vpop.permute.xlu0 %2340 }
 0x5e6   : > { %v2343_v32 = vpop.permute.xlu1 %2342 }
 0x5e7   : > { %v2345_v61 = vsel %vm2344_vm1, %v2341_v14, %v2343_v32 }
 0x5e8   : > { %v2350_v27 = vsel %vm2027_vm4, %v2345_v61, 0 }
 0x5e9   : > { %v2408_v20 = vpop.permute.xlu0 %2407 }
 0x5ea   : > { %v2410_v42 = vpop.permute.xlu1 %2409 }
 0x5eb   : > { %v2412_v19 = vsel %vm2411_vm2, %v2408_v20, %v2410_v42  ;;  %vm3081_vm2 = vcmask 744448  }
 0x5ec   : > { %6004 = vmatmul.mubr.msk.bf16.vlgmr.msra.gmra.mrb[0].mxu1 %vm2023_vm5, %v7002_v9  ;;  %v2417_v63 = vsel %vm2027_vm4, %v2412_v19, 0 }
 0x5ed   : > { %2289 = vmatpush1.bf16.msra.mxu1 %v2283_v18  ;;  %v2475_v23 = vpop.permute.xlu0 %2474  ;;  %2320 = vmatprep.mubr.bf16.mxu1 %v9428_v11  ;;  %v7023_v18 = vld [vmem:[%s9429_s30] sm:$0xff]  }
 0x5ee   : > { %6009 = vmatprep.subr.msk.bf16.mxu1 %vm2027_vm4, %v2343_v32  ;;  %v2477_v25 = vpop.permute.xlu1 %2476  ;;  %v2086_v32 = vsel %vm2027_vm4, %v8812_v55, 0 }
 0x5ef   : > { %v2479_v13 = vsel %vm2478_vm3, %v2475_v23, %v2477_v25  ;;  %v7012_v23 = vld [vmem:[%s9429_s30 + $0x60] sm:$0xff]   ;;  %vm3148_vm3 = vcmask 736256  }
 0x5f0   : > { %v2484_v1 = vsel %vm2027_vm4, %v2479_v13, 0 }
 0x5f1   : > { %v2542_v35 = vpop.permute.xlu0 %2541 }
 0x5f2   : > { %v2544_v34 = vpop.permute.xlu1 %2543 }
 0x5f3   : > { %v2546_v0 = vsel %vm2545_vm6, %v2542_v35, %v2544_v34  ;;  %vm3215_vm6 = vcmask 728064  }
 0x5f4   : > { %v2551_v40 = vsel %vm2027_vm4, %v2546_v0, 0  ;;  %v7022_v0 = vld [vmem:[%s9429_s30 + $0xb0] sm:$0xff]  }
 0x5f5   : > { %v2609_v46 = vpop.permute.xlu0 %2608 }
 0x5f6   : > { %v2611_v22 = vpop.permute.xlu1 %2610 }
 0x5f7   : > { %v2613_v49 = vsel %vm2612_vm10, %v2609_v46, %v2611_v22  ;;  %v7014_v46 = vld [vmem:[%s9429_s30 + $0x70] sm:$0xff]   ;;  %vm3349_vm10 = vcmask 654336  }
 0x5f8   : > { %6007 = vmatmul.mubr.msk.bf16.vlgmr.msra.gmra.mrb[0].mxu1 %vm2023_vm5, %v7003_v47  ;;  %v2618_v41 = vsel %vm2027_vm4, %v2613_v49, 0 }
 0x5f9   : > { %2356 = vmatpush1.bf16.msra.mxu1 %v2350_v27  ;;  %v8908_v31 = vpop.permute.xlu0 %2675  ;;  %2387 = vmatprep.mubr.bf16.mxu1 %v9428_v11 }
 0x5fa   : > { %6012 = vmatprep.subr.msk.bf16.mxu1 %vm2027_vm4, %v2410_v42  ;;  %v8912_v62 = vpop.permute.xlu1 %2677 }
 0x5fb   : > { %v2680_v12 = vsel %vm1150_vm8, %v8908_v31, %v8912_v62  ;;  %vm2746_vm8 = vcmask 842752   ;;  %v7015_v31 = vld [vmem:[%s9429_s30 + $0x78] sm:$0xff]  }
 0x5fc   : > { %v2685_v14 = vsel %vm2027_vm4, %v2680_v12, 0 }
 0x5fd   : > { %v8914_v10 = vpop.permute.xlu0 %2742 }
 0x5fe   : > { %v8916_v57 = vpop.permute.xlu1 %2744 }
 0x5ff   : > { %v2747_v9 = vsel %vm2746_vm8, %v8914_v10, %v8916_v57  ;;  %vm3483_vm8 = vcmask 637952  }
 0x600   : > { %v2752_v55 = vsel %vm2027_vm4, %v2747_v9, 0  ;;  %v3756_v9 = vld [vmem:[#allocation12] sm:$0xff] }
 0x601   : > { %v8921_v39 = vpop.permute.xlu0 %2809 }
 0x602   : > { %v8923_v26 = vpop.permute.xlu1 %2811 }
 0x603   : > { %v2814_v20 = vsel %vm2813_vm11, %v8921_v39, %v8923_v26  ;;  %v7017_v39 = vld [vmem:[%s9429_s30 + $0x88] sm:$0xff]   ;;  %vm3550_vm11 = vcmask 629760  }
 0x604   : > { %6010 = vmatmul.mubr.msk.bf16.vlgmr.msra.gmra.mrb[0].mxu1 %vm2023_vm5, %v7004_v43  ;;  %v2819_v42 = vsel %vm2027_vm4, %v2814_v20, 0 }
 0x605   : > { %2423 = vmatpush1.bf16.msra.mxu1 %v2417_v63  ;;  %v8927_v33 = vpop.permute.xlu0 %2876  ;;  %2454 = vmatprep.mubr.bf16.mxu1 %v9428_v11 }
 0x606   : > { %6015 = vmatprep.subr.msk.bf16.mxu1 %vm2027_vm4, %v2477_v25  ;;  %v8931_v3 = vpop.permute.xlu1 %2878 }
 0x607   : > { %v2881_v25 = vsel %vm2880_vm12, %v8927_v33, %v8931_v3  ;;  %v7018_v33 = vld [vmem:[%s9429_s30 + $0x90] sm:$0xff]   ;;  %vm3617_vm12 = vcmask 621568  }
 0x608   : > { %v2886_v35 = vsel %vm2027_vm4, %v2881_v25, 0  ;;  %v3759_v25 = vld [vmem:[#allocation12 + $0x18] sm:$0xff] }
 0x609   : > { %v8933_v30 = vpop.permute.xlu0 %2943 }
 0x60a   : > { %v8935_v15 = vpop.permute.xlu1 %2945 }
 0x60b   : > { %v2948_v47 = vsel %vm2947_vm13, %v8933_v30, %v8935_v15 }
 0x60c   : > { %v2953_v61 = vsel %vm2027_vm4, %v2948_v47, 0 }
 0x60d   : > { %v8940_v60 = vpop.permute.xlu0 %3010 }
 0x60e   : > { %v8942_v37 = vpop.permute.xlu1 %3012 }
 0x610   : > { %6013 = vmatmul.mubr.msk.bf16.vlgmr.msra.gmra.mrb[0].mxu1 %vm2023_vm5, %v7005_v50 }
 0x611   : > { %2490 = vmatpush1.bf16.msra.mxu1 %v2484_v1  ;;  %v8946_v56 = vpop.permute.xlu0 %3077  ;;  %2521 = vmatprep.mubr.bf16.mxu1 %v9428_v11 }
 0x612   : > { %6018 = vmatprep.subr.msk.bf16.mxu1 %vm2027_vm4, %v2544_v34  ;;  %v8950_v36 = vpop.permute.xlu1 %3079  ;;  %v7013_v34 = vld [vmem:[%s9429_s30 + $0x68] sm:$0xff]  }
 0x615   : > { %v8952_v28 = vpop.permute.xlu0 %3144 }
 0x616   : > { %v8954_v4 = vpop.permute.xlu1 %3146 }
 0x617   : > { %v3149_v43 = vsel %vm3148_vm3, %v8952_v28, %v8954_v4 }
 0x618   : > { %v3154_v19 = vsel %vm2027_vm4, %v3149_v43, 0 }
 0x619   : > { %v8959_v44 = vpop.permute.xlu0 %3211 }
 0x61a   : > { %v8961_v7 = vpop.permute.xlu1 %3213 }
 0x61c   : > { %6016 = vmatmul.mubr.msk.bf16.vlgmr.msra.gmra.mrb[0].mxu1 %vm2023_vm5, %v7006_v45 }
 0x61d   : > { %2557 = vmatpush1.bf16.msra.mxu1 %v2551_v40  ;;  %v8965_v6 = vpop.permute.xlu0 %3278  ;;  %2588 = vmatprep.mubr.bf16.mxu1 %v9428_v11 }
 0x61e   : > { %6021 = vmatprep.subr.msk.bf16.mxu1 %vm2027_vm4, %v2611_v22  ;;  %v8969_v48 = vpop.permute.xlu1 %3280  ;;  %v3015_v22 = vsel %vm3014_vm14, %v8940_v60, %v8942_v37  ;;  %v7020_v60 = vld [vmem:[%s9429_s30 + $0xa0] sm:$0xff]  }
 0x61f   : > { %v3020_v27 = vsel %vm2027_vm4, %v3015_v22, 0 }
 0x621   : > { %v8971_v38 = vpop.permute.xlu0 %3345 }
 0x622   : > { %v8973_v59 = vpop.permute.xlu1 %3347 }
 0x623   : > { %v3350_v50 = vsel %vm3349_vm10, %v8971_v38, %v8973_v59 }
 0x624   : > { %v3355_v13 = vsel %vm2027_vm4, %v3350_v50, 0  ;;  %v3767_v50 = vld [vmem:[#allocation12 + $0x58] sm:$0xff] }
 0x625   : > { %v8978_v52 = vpop.permute.xlu0 %3412 }
 0x626   : > { %v8980_v17 = vpop.permute.xlu1 %3414 }
 0x628   : > { %6019 = vmatmul.mubr.msk.bf16.vlgmr.msra.gmra.mrb[0].mxu1 %vm2023_vm5, %v7007_v54  ;;  %v7025_v54 = vld [vmem:[%s9429_s30 + $0xc0] sm:$0xff]  }
 0x629   : > { %2624 = vmatpush1.bf16.msra.mxu1 %v2618_v41  ;;  %v8984_v29 = vpop.permute.xlu0 %3479  ;;  %2655 = vmatprep.mubr.bf16.mxu1 %v9428_v11 }
 0x62a   : > { %6024 = vmatprep.subr.msk.bf16.mxu1 %vm2027_vm4, %v8912_v62  ;;  %v8989_v58 = vpop.permute.xlu1 %3481  ;;  %v3082_v62 = vsel %vm3081_vm2, %v8946_v56, %v8950_v36  ;;  %v7021_v56 = vld [vmem:[%s9429_s30 + $0xa8] sm:$0xff]  }
 0x62b   : > { %v3087_v10 = vsel %vm2027_vm4, %v3082_v62, 0  ;;  %v3760_v62 = vld [vmem:[#allocation12 + $0x20] sm:$0xff] }
 0x62d   : > { %v2018_v24 = vpop.permute.xlu0 %2017 }
 0x62e   : > { %v2020_v2 = vpop.permute.xlu1 %2019 }
 0x62f   : > { %v2022_v16 = vsel %vm894_vm0, %v2018_v24, %v2020_v2  ;;  %5994 = vmatprep.subr.msk.bf16.mxu0 %vm2027_vm4, %v2020_v2 }
 0x630   : > { %v2029_v53 = vsel %vm2027_vm4, %v2022_v16, 0 }
 0x631   : > { %2035 = vmatpush1.bf16.msra.mxu0 %v2029_v53  ;;  %v3547_v45 = vpop.permute.xlu0 %3546 }
 0x632   : > { %5997 = vmatprep.subr.msk.bf16.mxu0 %vm2027_vm4, %v8814_v51  ;;  %v7010_v51 = vld [vmem:[%s9429_s30 + $0x50] sm:$0xff]  }
 0x634   : > { %6022 = vmatmul.mubr.msk.bf16.vlgmr.msra.gmra.mrb[0].mxu1 %vm2023_vm5, %v7008_v8  ;;  %5995 = vmatmul.mubr.msk.bf16.vlgmr.msra.gmra.mrb[4].mxu0 %vm2023_vm5, %v7009_v5 }
 0x635   : > { %2691 = vmatpush1.bf16.msra.mxu1 %v2685_v14  ;;  %2092 = vmatpush1.bf16.msra.mxu0 %v2086_v32 }
 0x636   : > { %6027 = vmatprep.subr.msk.bf16.mxu1 %vm2027_vm4, %v8916_v57  ;;  %2722 = vmatprep.mubr.bf16.mxu1 %v9428_v11  ;;  %v7016_v57 = vld [vmem:[%s9429_s30 + $0x80] sm:$0xff]  }
 0x637   : > { %2123 = vmatprep.mubr.bf16.mxu0 %v9428_v11 }
 0x640   : > { %6025 = vmatmul.mubr.msk.bf16.vlgmr.msra.gmra.mrb[0].mxu1 %vm2023_vm5, %v7010_v51  ;;  %5998 = vmatmul.mubr.msk.bf16.vlgmr.msra.gmra.mrb[4].mxu0 %vm2023_vm5, %v7023_v18  ;;  %v7614_v18 = vmov 0.0|0.0  }
 0x641   : > { %2758 = vmatpush1.bf16.msra.mxu1 %v2752_v55  ;;  %2789 = vmatprep.mubr.bf16.mxu1 %v9428_v11  ;;  %v3757_v55 = vld [vmem:[#allocation12 + $0x8] sm:$0xff] }
 0x642   : > { %6030 = vmatprep.subr.msk.bf16.mxu1 %vm2027_vm4, %v8923_v26  ;;  %v3216_v26 = vsel %vm3215_vm6, %v8959_v44, %v8961_v7  ;;  %6507 = vmatprep.subr.bf16.mxu0 %v7614_v18 }
 0x643   : > { %v3221_v63 = vsel %vm2027_vm4, %v3216_v26, 0  ;;  %v3763_v26 = vld [vmem:[#allocation12 + $0x38] sm:$0xff] }
 0x64c   : > { %6028 = vmatmul.mubr.msk.bf16.vlgmr.msra.gmra.mrb[0].mxu1 %vm2023_vm5, %v7011_v21  ;;  %v3758_v21 = vld [vmem:[#allocation12 + $0x10] sm:$0xff] }
 0x64d   : > { %2825 = vmatpush1.bf16.msra.mxu1 %v2819_v42  ;;  %2856 = vmatprep.mubr.bf16.mxu1 %v9428_v11  ;;  %v6511_v22 = vpack.c.bf16 %v3759_v25, %v3758_v21  ;;  %v4530_v21 = vld [vmem:[#allocation15] sm:$0xff]  ;;  %v4537_v25 = vld [vmem:[#allocation16 + $0x18] sm:$0xff] }
 0x64e   : > { %6033 = vmatprep.subr.msk.bf16.mxu1 %vm2027_vm4, %v8931_v3  ;;  %v3283_v3 = vsel %vm1182_vm9, %v8965_v6, %v8969_v48  ;;  %vm3416_vm9 = vcmask 646144   ;;  %v3614_v6 = vpop.permute.xlu0 %3613 }
 0x64f   : > { %v3288_v30 = vsel %vm2027_vm4, %v3283_v3, 0  ;;  %v3765_v3 = vld [vmem:[#allocation12 + $0x48] sm:$0xff] }
 0x658   : > { %6031 = vmatmul.mubr.msk.bf16.vlgmr.msra.gmra.mrb[0].mxu1 %vm2023_vm5, %v7012_v23  ;;  %v6508_v23 = vpack.c.bf16 %v3757_v55, %v3756_v9  ;;  %v4531_v55 = vld [vmem:[#allocation15 + $0x8] sm:$0xff] }
 0x659   : > { %2892 = vmatpush1.bf16.msra.mxu1 %v2886_v35  ;;  %2923 = vmatprep.mubr.bf16.mxu1 %v9428_v11 }
 0x65a   : > { %6036 = vmatprep.subr.msk.bf16.mxu1 %vm2027_vm4, %v8935_v15  ;;  %v7019_v15 = vld [vmem:[%s9429_s30 + $0x98] sm:$0xff]   ;;  %6509 = vmatpush1.bf16.msra.mxu0 %v6508_v23  ;;  %v4532_v23 = vld [vmem:[#allocation15 + $0x10] sm:$0xff] }
 0x65b   : > { %6510 = vmatprep.subr.bf16.mxu0 %v7614_v18 }
 0x65e   : > { %6512 = vmatpush1.bf16.msra.mxu0 %v6511_v22  ;;  %v7029_v22 = vld [vmem:[#allocation13 + $0x8] sm:$0xff]  }
 0x65f   : > { %6513 = vmatprep.subr.bf16.mxu0 %v7614_v18 }
 0x664   : > { %6034 = vmatmul.mubr.msk.bf16.vlgmr.msra.gmra.mrb[0].mxu1 %vm2023_vm5, %v7013_v34 }
 0x665   : > { %2959 = vmatpush1.bf16.msra.mxu1 %v2953_v61  ;;  %2990 = vmatprep.mubr.bf16.mxu1 %v9428_v11 }
 0x666   : > { %6039 = vmatprep.subr.msk.bf16.mxu1 %vm2027_vm4, %v8942_v37  ;;  %v3417_v37 = vsel %vm3416_vm9, %v8978_v52, %v8980_v17 }
 0x667   : > { %v3422_v1 = vsel %vm2027_vm4, %v3417_v37, 0  ;;  %v3769_v37 = vld [vmem:[#allocation12 + $0x68] sm:$0xff] }
 0x670   : > { %6037 = vmatmul.mubr.msk.bf16.vlgmr.msra.gmra.mrb[0].mxu1 %vm2023_vm5, %v7014_v46 }
 0x671   : > { %3026 = vmatpush1.bf16.msra.mxu1 %v3020_v27  ;;  %3057 = vmatprep.mubr.bf16.mxu1 %v9428_v11 }
 0x672   : > { %6042 = vmatprep.subr.msk.bf16.mxu1 %vm2027_vm4, %v8950_v36  ;;  %v3484_v36 = vsel %vm3483_vm8, %v8984_v29, %v8989_v58  ;;  %v3682_v29 = vpop.permute.xlu0 %3681 }
 0x673   : > { %v3489_v28 = vsel %vm2027_vm4, %v3484_v36, 0  ;;  %v3771_v36 = vld [vmem:[#allocation12 + $0x78] sm:$0xff] }
 0x676   : > { %v3687_v14 = vpop.permute.xlu0 %3686 }
 0x67c   : > { %6040 = vmatmul.mubr.msk.bf16.vlgmr.msra.gmra.mrb[0].mxu1 %vm2023_vm5, %v7015_v31 }
 0x67d   : > { %3093 = vmatpush1.bf16.msra.mxu1 %v3087_v10  ;;  %3124 = vmatprep.mubr.bf16.mxu1 %v9428_v11  ;;  %v3761_v10 = vld [vmem:[#allocation12 + $0x28] sm:$0xff] }
 0x67e   : > { %6045 = vmatprep.subr.msk.bf16.mxu1 %vm2027_vm4, %v8954_v4  ;;  %v3549_v4 = vpop.permute.xlu1 %3548  ;;  %v6514_v43 = vpack.c.bf16 %v3761_v10, %v3760_v62  ;;  %v7031_v62 = vld [vmem:[#allocation13 + $0x28] sm:$0xff]   ;;  %v7032_v10 = vld [vmem:[#allocation13 + $0x30] sm:$0xff]  }
 0x67f   : > { %v3551_v44 = vsel %vm3550_vm11, %v3547_v45, %v3549_v4  ;;  %v3773_v45 = vld [vmem:[#allocation12 + $0x88] sm:$0xff] }
 0x680   : > { %6515 = vmatpush1.bf16.msra.mxu0 %v6514_v43  ;;  %v7033_v43 = vld [vmem:[#allocation13 + $0x38] sm:$0xff]  }
 0x681   : > { %6516 = vmatprep.subr.bf16.mxu0 %v7614_v18 }
 0x682   : > { %v3616_v40 = vpop.permute.xlu1 %3615 }
 0x683   : > { %v3618_v38 = vsel %vm3617_vm12, %v3614_v6, %v3616_v40 }
 0x688   : > { %6043 = vmatmul.mubr.msk.bf16.vlgmr.msra.gmra.mrb[0].mxu1 %vm2023_vm5, %v7016_v57 }
 0x689   : > { %3160 = vmatpush1.bf16.msra.mxu1 %v3154_v19  ;;  %3191 = vmatprep.mubr.bf16.mxu1 %v9428_v11 }
 0x68a   : > { %6048 = vmatprep.subr.msk.bf16.mxu1 %vm2027_vm4, %v8961_v7  ;;  %v3556_v7 = vsel %vm2027_vm4, %v3551_v44, 0 }
 0x694   : > { %6046 = vmatmul.mubr.msk.bf16.vlgmr.msra.gmra.mrb[0].mxu1 %vm2023_vm5, %v7017_v39  ;;  %v3762_v39 = vld [vmem:[#allocation12 + $0x30] sm:$0xff] }
 0x695   : > { %3227 = vmatpush1.bf16.msra.mxu1 %v3221_v63  ;;  %3258 = vmatprep.mubr.bf16.mxu1 %v9428_v11  ;;  %v6517_v63 = vpack.c.bf16 %v3763_v26, %v3762_v39  ;;  %v7035_v26 = vld [vmem:[#allocation13 + $0x48] sm:$0xff]  }
 0x696   : > { %6051 = vmatprep.subr.msk.bf16.mxu1 %vm2027_vm4, %v8969_v48  ;;  %v7024_v48 = vld [vmem:[%s9429_s30 + $0xb8] sm:$0xff]  }
 0x697   : > { %6518 = vmatpush1.bf16.msra.mxu0 %v6517_v63  ;;  %v7036_v63 = vld [vmem:[#allocation13 + $0x50] sm:$0xff]  }
 0x698   : > { %6519 = vmatprep.subr.bf16.mxu0 %v7614_v18 }
 0x6a0   : > { %6049 = vmatmul.mubr.msk.bf16.vlgmr.msra.gmra.mrb[0].mxu1 %vm2023_vm5, %v7018_v33  ;;  %v3764_v33 = vld [vmem:[#allocation12 + $0x40] sm:$0xff] }
 0x6a1   : > { %3294 = vmatpush1.bf16.msra.mxu1 %v3288_v30  ;;  %3325 = vmatprep.mubr.bf16.mxu1 %v9428_v11  ;;  %v6520_v30 = vpack.c.bf16 %v3765_v3, %v3764_v33  ;;  %v7037_v3 = vld [vmem:[#allocation13 + $0x58] sm:$0xff]  }
 0x6a2   : > { %6054 = vmatprep.subr.msk.bf16.mxu1 %vm2027_vm4, %v8973_v59  ;;  %v3623_v59 = vsel %vm2027_vm4, %v3618_v38, 0 }
 0x6a3   : > { %6521 = vmatpush1.bf16.msra.mxu0 %v6520_v30  ;;  %v7038_v30 = vld [vmem:[#allocation13 + $0x60] sm:$0xff]  }
 0x6a4   : > { %6522 = vmatprep.subr.bf16.mxu0 %v7614_v18 }
 0x6ac   : > { %6052 = vmatmul.mubr.msk.bf16.vlgmr.msra.gmra.mrb[0].mxu1 %vm2023_vm5, %v7019_v15  ;;  %v3766_v15 = vld [vmem:[#allocation12 + $0x50] sm:$0xff] }
 0x6ad   : > { %3361 = vmatpush1.bf16.msra.mxu1 %v3355_v13  ;;  %3392 = vmatprep.mubr.bf16.mxu1 %v9428_v11  ;;  %v6523_v13 = vpack.c.bf16 %v3767_v50, %v3766_v15  ;;  %v7039_v50 = vld [vmem:[#allocation13 + $0x68] sm:$0xff]  }
 0x6ae   : > { %6057 = vmatprep.subr.msk.bf16.mxu1 %vm2027_vm4, %v8980_v17 }
 0x6af   : > { %6524 = vmatpush1.bf16.msra.mxu0 %v6523_v13  ;;  %v7040_v13 = vld [vmem:[#allocation13 + $0x70] sm:$0xff]  }
 0x6b0   : > { %6525 = vmatprep.subr.bf16.mxu0 %v7614_v18 }
 0x6b8   : > { %6055 = vmatmul.mubr.msk.bf16.vlgmr.msra.gmra.mrb[0].mxu1 %vm2023_vm5, %v7020_v60  ;;  %v3768_v60 = vld [vmem:[#allocation12 + $0x60] sm:$0xff] }
 0x6b9   : > { %3428 = vmatpush1.bf16.msra.mxu1 %v3422_v1  ;;  %3459 = vmatprep.mubr.bf16.mxu1 %v9428_v11  ;;  %v6526_v1 = vpack.c.bf16 %v3769_v37, %v3768_v60  ;;  %v7041_v37 = vld [vmem:[#allocation13 + $0x78] sm:$0xff]  }
 0x6ba   : > { %6060 = vmatprep.subr.msk.bf16.mxu1 %vm2027_vm4, %v8989_v58  ;;  %v3696_v58 = vpop.permute.xlu1 %3695 }
 0x6bb   : > { %6527 = vmatpush1.bf16.msra.mxu0 %v6526_v1  ;;  %v7042_v1 = vld [vmem:[#allocation13 + $0x80] sm:$0xff]  }
 0x6bc   : > { %6528 = vmatprep.subr.bf16.mxu0 %v7614_v18 }
 0x6be   : > { %v3701_v35 = vpop.permute.xlu1 %3700 }
 0x6c4   : > { %6058 = vmatmul.mubr.msk.bf16.vlgmr.msra.gmra.mrb[0].mxu1 %vm2023_vm5, %v7021_v56  ;;  %v3770_v56 = vld [vmem:[#allocation12 + $0x70] sm:$0xff] }
 0x6c5   : > { %3495 = vmatpush1.bf16.msra.mxu1 %v3489_v28  ;;  %3526 = vmatprep.mubr.bf16.mxu1 %v9428_v11  ;;  %v6529_v28 = vpack.c.bf16 %v3771_v36, %v3770_v56  ;;  %v7043_v56 = vld [vmem:[#allocation13 + $0x88] sm:$0xff]  }
 0x6c6   : > { %6063 = vmatprep.subr.msk.bf16.mxu1 %vm2027_vm4, %v3549_v4  ;;  %v3772_v4 = vld [vmem:[#allocation12 + $0x80] sm:$0xff] }
 0x6c7   : > { %6530 = vmatpush1.bf16.msra.mxu0 %v6529_v28 }
 0x6c8   : > { %6531 = vmatprep.subr.bf16.mxu0 %v7614_v18  ;;  %v4533_v18 = vld [vmem:[#allocation15 + $0x18] sm:$0xff] }
 0x6d0   : > { %6061 = vmatmul.mubr.msk.bf16.vlgmr.msra.gmra.mrb[0].mxu1 %vm2023_vm5, %v7022_v0  ;;  %v6532_v0 = vpack.c.bf16 %v3773_v45, %v3772_v4 }
 0x6d1   : > { %3562 = vmatpush1.bf16.msra.mxu1 %v3556_v7  ;;  %3593 = vmatprep.mubr.bf16.mxu1 %v9428_v11 }
 0x6d2   : > { %6066 = vmatprep.subr.msk.bf16.mxu1 %vm2027_vm4, %v3616_v40  ;;  %6533 = vmatpush1.bf16.msra.mxu0 %v6532_v0 }
 0x6dc   : > { %6064 = vmatmul.mubr.msk.bf16.vlgmr.msra.gmra.mrb[0].mxu1 %vm2023_vm5, %v7024_v48 }
 0x6dd   : > { %3629 = vmatpush1.bf16.msra.mxu1 %v3623_v59  ;;  %3660 = vmatprep.mubr.bf16.mxu1 %v9428_v11 }
 0x6e8   : > { %6067 = vmatmul.mubr.msk.bf16.vlgmr.msra.gmra.mrb[0].mxu1 %vm2023_vm5, %v7025_v54  ;;  %vm5755_vm5 = vcmask 4096  }
 0x713   : > { %v2125_v49 = vpop.f32.mrb[4].mxu0 }
 0x714   : > { %v2127_v52 = vpop.f32.mrb[5].mxu0 }
 0x715   : > { %v2129_v17 = vpop.f32.mrb[6].mxu0 }
 0x716   : > { %v2131_v41 = vpop.f32.mrb[7].mxu0 }
 0x7bb   : > { %v3662_v24 = vpop.f32.mrb[0].mxu1 }
 0x7bc   : > { %v6542_v2 = vadd.f32 %v3662_v24, %v2125_v49  ;;  %v3664_v16 = vpop.f32.mrb[1].mxu1 }
 0x7bd   : > { %v6543_v53 = vadd.f32 %v3664_v16, %v2127_v52  ;;  %v3666_v8 = vpop.f32.mrb[2].mxu1 }
 0x7be   : > { %v3689_v5 = vmul.f32 %v6542_v2, %v3682_v29  ;;  %v6544_v12 = vadd.f32 %v3666_v8, %v2129_v17  ;;  %v3668_v11 = vpop.f32.mrb[3].mxu1 }
 0x7bf   : > { %v3690_v32 = vmul.f32 %v6543_v53, %v3682_v29  ;;  %v6545_v51 = vadd.f32 %v3668_v11, %v2131_v41 }
 0x7c0   : > { %v9155_v20 = vadd.f32 %v3696_v58, %v3689_v5  ;;  %v3691_v42 = vmul.f32 %v6544_v12, %v3687_v14  ;;  %v7026_v12 = vld [vmem:[#allocation13 + $0x10] sm:$0xff]  }
 0x7c1   : > { %v3704_v34 = vadd.f32 %v3696_v58, %v3690_v32  ;;  %v3692_v47 = vmul.f32 %v6545_v51, %v3687_v14 }
 0x7c2   : > { %v3707_v61 = vmax.f32 %v9155_v20, 0.0  ;;  %v3705_v46 = vadd.f32 %v3701_v35, %v3691_v42  ;;  %v4535_v20 = vld [vmem:[#allocation16 + $0x8] sm:$0xff]  ;;  %v4534_v42 = vld [vmem:[#allocation16] sm:$0xff] }
 0x7c3   : > { %v3708_v27 = vmax.f32 %v3704_v34, 0.0  ;;  %v3706_v31 = vadd.f32 %v3701_v35, %v3692_v47  ;;  %v4536_v35 = vld [vmem:[#allocation16 + $0x10] sm:$0xff]  ;;  %v7027_v47 = vld [vmem:[#allocation13 + $0x18] sm:$0xff]  }
 0x7c4   : > { %3715 = vrot.lane.b32.xlu0 %v3707_v61, %s7572_s7  ;;  %v3709_v57 = vmax.f32 %v3705_v46, 0.0 }
 0x7c5   : > { %3717 = vrot.lane.b32.xlu1 %v3708_v27, %s7572_s7  ;;  %v3710_v19 = vmax.f32 %v3706_v31, 0.0 }
 0x7c8   : > { %3719 = vrot.lane.b32.xlu0 %v3709_v57, %s7572_s7 }
 0x7c9   : > { %3721 = vrot.lane.b32.xlu1 %v3710_v19, %s7572_s7 }
 0x836   : > { %v3716_v44 = vpop.permute.xlu0 %3715 }
 0x837   : > { %v3718_v7 = vpop.permute.xlu1 %3717 }
 0x838   : > { %v3723_v40 = vsel %vm894_vm0, %v3716_v44, %v3718_v7  ;;  %v3730_v6 = vmax.f32 %v3708_v27, %v3718_v7  ;;  %v7030_v27 = vld [vmem:[#allocation13 + $0x20] sm:$0xff]  }
 0x839   : > { %v3729_v48 = vmax.f32 %v3707_v61, %v3723_v40  ;;  %v7028_v61 = vld [vmem:[#allocation13] sm:$0xff]  }
 0x83a   : > { %v3720_v38 = vpop.permute.xlu0 %3719  ;;  %3739 = vrot.lane.b32.xlu1 %v3730_v6, %s7596_s11 }
 0x83b   : > { %3737 = vrot.lane.b32.xlu0 %v3729_v48, %s7596_s11  ;;  %v3722_v59 = vpop.permute.xlu1 %3721 }
 0x83c   : > { %v3724_v54 = vsel %vm894_vm0, %v3720_v38, %v3722_v59  ;;  %v3732_v49 = vmax.f32 %v3710_v19, %v3722_v59  ;;  %v7034_v19 = vld [vmem:[#allocation13 + $0x40] sm:$0xff]   ;;  %vm4635_vm0 = vcmask 293888  }
 0x83d   : > { %v3731_v52 = vmax.f32 %v3709_v57, %v3724_v54 }
 0x83e   : > { %3743 = vrot.lane.b32.xlu1 %v3732_v49, %s7596_s11 }
 0x83f   : > { %3741 = vrot.lane.b32.xlu0 %v3731_v52, %s7596_s11 }
 0x8ac   : > { %v3740_v17 = vpop.permute.xlu1 %3739 }
 0x8ad   : > { %v3753_v41 = vmax.f32 %v3730_v6, %v3740_v17  ;;  %v3738_v29 = vpop.permute.xlu0 %3737 }
 0x8ae   : > { %v3746_v58 = vsel %vm2344_vm1, %v3738_v29, %v3740_v17 }
 0x8af   : > { %v3752_v24 = vmax.f32 %v3729_v48, %v3746_v58  ;;  %6068 = vmatprep.mubr.msk.f32.mxu0 %vm1812_vm15, %v3753_v41 }
 0x8b0   : > { %v3744_v2 = vpop.permute.xlu1 %3743 }
 0x8b1   : > { %v3755_v16 = vmax.f32 %v3732_v49, %v3744_v2  ;;  %v3742_v53 = vpop.permute.xlu0 %3741  ;;  %3845 = vmatmul.mubr.f32.vlgmr.msra.gmra.mrb[2].mxu0 %v3752_v24 }
 0x8b2   : > { %v3747_v8 = vsel %vm2344_vm1, %v3742_v53, %v3744_v2 }
 0x8b3   : > { %v3754_v5 = vmax.f32 %v3731_v52, %v3747_v8  ;;  %6069 = vmatprep.mubr.msk.f32.mxu0 %vm1812_vm15, %v3755_v16 }
 0x8b5   : > { %3850 = vmatmul.mubr.f32.gmra.mrb[8].mxu0 %v3754_v5 }
 0x8b6   : > { %6243 = vmatprep.mubr.msk.bf16.mxu0 %vm1812_vm15, %v7026_v12 }
 0x984   : > { %v3846_v11 = vpop.f32.mrb[2].mxu0 }
 0x985   : > { %v3848_v14 = vpop.f32.mrb[3].mxu0 }
 0x988   : > { %v3851_v32 = vpop.f32.mrb[8].mxu0 }
 0x989   : > { %v3855_v51 = vpack.c.bf16 %v3851_v32, %v3846_v11  ;;  %v3853_v9 = vpop.f32.mrb[9].mxu0 }
 0x98b   : > { %4036 = vrot.lane.b32.xlu1 %v3855_v51, %s7573_s9  ;;  %3903 = vrot.lane.b32.xlu0 %v3855_v51, %s7572_s7 }
 0x98f   : > { %4180 = vrot.lane.b32.xlu1 %v3855_v51, %s7615_s5  ;;  %4108 = vrot.lane.b32.xlu0 %v3855_v51, %s7616_s28  ;;  %s7619_s5 = smov 119  }
 0x993   : > { %4324 = vrot.lane.b32.xlu1 %v3855_v51, %s7596_s11  ;;  %4252 = vrot.lane.b32.xlu0 %v3855_v51, %s7617_s4  ;;  %s7620_s11 = smov 118  }
 0x997   : > { %4468 = vrot.lane.b32.xlu1 %v3855_v51, %s7598_s23  ;;  %4396 = vrot.lane.b32.xlu0 %v3855_v51, %s7597_s18  ;;  %s9430_s23 = sld [smem:[#allocation69_spill]]  ;;  %s9432_s18 = sld [smem:[#allocation70_spill]] }
 0x99b   : > { %4545 = vperm.xlu1 %6969, %v4531_v55   ;;  %4540 = vperm.xlu0 %6970, %v4530_v21  }
 0x99d   : > { %v4630_v54 = vld [vmem:[%s9430_s23] sm:$0xff]  ;;  %v4631_v49 = vld [vmem:[%s9430_s23 + $0x8] sm:$0xff]  ;;  %v4632_v52 = vld [vmem:[%s9430_s23 + $0x10] sm:$0xff] }
 0x99e   : > { %v6534_v58 = vpack.c.bf16 %v4631_v49, %v4630_v54  ;;  %v4633_v24 = vld [vmem:[%s9430_s23 + $0x18] sm:$0xff]  ;;  %v4634_v9 = vld [vmem:[%s9430_s23 + $0x20] sm:$0xf] }
 0x99f   : > { %4569 = vperm.xlu1 %6969, %v4535_v20   ;;  %4564 = vperm.xlu0 %6970, %v4534_v42   ;;  %v6538_v16 = vpack.c.bf16 %v4633_v24, %v4632_v52  ;;  %v7052_v54 = vld [vmem:[#allocation18 + $0x40] sm:$0xff]   ;;  %v7055_v24 = vld [vmem:[#allocation18 + $0x58] sm:$0xff]  }
 0x9a3   : > { %4555 = vperm.xlu1 %6969, %v4533_v18   ;;  %4550 = vperm.xlu0 %6970, %v4532_v23  }
 0x9a7   : > { %4579 = vperm.xlu1 %6969, %v4537_v25   ;;  %4574 = vperm.xlu0 %6970, %v4536_v35  }
 0x9fd   : > { %v3904_v34 = vpop.permute.xlu0 %3903  ;;  %v4037_v46 = vpop.permute.xlu1 %4036 }
 0x9fe   : > { %6241 = vmatprep.subr.bf16.mxu0 %v3904_v34 }
 0x9ff   : > { %6242 = vmatpush3.bf16.msra.mxu0 %v3904_v34 }
 0xa00   : > { %6247 = vmatprep.subr.bf16.mxu0 %v3855_v51 }
 0xa01   : > { %v4109_v31 = vpop.permute.xlu0 %4108  ;;  %v4181_v57 = vpop.permute.xlu1 %4180 }
 0xa02   : > { %6244 = vmatmul.mubr.msk.bf16.vlgmr.msra.gmra.mrb[12].mxu0 %vm1812_vm15, %v7027_v47 }
 0xa03   : > { %6248 = vmatpush3.bf16.msra.mxu0 %v3855_v51  ;;  %6249 = vmatprep.mubr.msk.bf16.mxu0 %vm1812_vm15, %v7028_v61 }
 0xa04   : > { %6253 = vmatprep.subr.bf16.mxu0 %v4037_v46 }
 0xa05   : > { %v4253_v39 = vpop.permute.xlu0 %4252  ;;  %v4325_v33 = vpop.permute.xlu1 %4324 }
 0xa09   : > { %v4397_v15 = vpop.permute.xlu0 %4396  ;;  %v4469_v60 = vpop.permute.xlu1 %4468 }
 0xa0e   : > { %6250 = vmatmul.mubr.msk.bf16.vlgmr.msra.gmra.mrb[12].mxu0 %vm1812_vm15, %v7029_v22 }
 0xa0f   : > { %6254 = vmatpush3.bf16.msra.mxu0 %v4037_v46  ;;  %6255 = vmatprep.mubr.msk.bf16.mxu0 %vm1812_vm15, %v7030_v27 }
 0xa10   : > { %6259 = vmatprep.subr.bf16.mxu0 %v4109_v31 }
 0xa1a   : > { %6256 = vmatmul.mubr.msk.bf16.vlgmr.msra.gmra.mrb[12].mxu0 %vm1812_vm15, %v7031_v62  ;;  %v4541_v36 = vpop.permute.xlu0 %4540  ;;  %v4546_v28 = vpop.permute.xlu1 %4545 }
 0xa1b   : > { %6260 = vmatpush3.bf16.msra.mxu0 %v4109_v31  ;;  %6261 = vmatprep.mubr.msk.bf16.mxu0 %vm1812_vm15, %v7032_v10  ;;  %v7044_v10 = vld [vmem:[#allocation18 + $0x10] sm:$0xff]  }
 0xa1c   : > { %6265 = vmatprep.subr.bf16.mxu0 %v4181_v57 }
 0xa1e   : > { %v4565_v4 = vpop.permute.xlu0 %4564  ;;  %v4570_v45 = vpop.permute.xlu1 %4569 }
 0xa22   : > { %v4551_v0 = vpop.permute.xlu0 %4550  ;;  %v4556_v7 = vpop.permute.xlu1 %4555 }
 0xa26   : > { %6262 = vmatmul.mubr.msk.bf16.vlgmr.msra.gmra.mrb[12].mxu0 %vm1812_vm15, %v7033_v43  ;;  %v4575_v2 = vpop.permute.xlu0 %4574  ;;  %v4580_v12 = vpop.permute.xlu1 %4579 }
 0xa27   : > { %6266 = vmatpush3.bf16.msra.mxu0 %v4181_v57  ;;  %6267 = vmatprep.mubr.msk.bf16.mxu0 %vm1812_vm15, %v7034_v19 }
 0xa28   : > { %6271 = vmatprep.subr.bf16.mxu0 %v4253_v39 }
 0xa32   : > { %6268 = vmatmul.mubr.msk.bf16.vlgmr.msra.gmra.mrb[12].mxu0 %vm1812_vm15, %v7035_v26 }
 0xa33   : > { %6272 = vmatpush3.bf16.msra.mxu0 %v4253_v39  ;;  %6273 = vmatprep.mubr.msk.bf16.mxu0 %vm1812_vm15, %v7036_v63 }
 0xa34   : > { %6277 = vmatprep.subr.bf16.mxu0 %v4325_v33 }
 0xa3e   : > { %6274 = vmatmul.mubr.msk.bf16.vlgmr.msra.gmra.mrb[12].mxu0 %vm1812_vm15, %v7037_v3  ;;  %v5442_v3 = vld [vmem:[#allocation21] sm:$0xff] }
 0xa3f   : > { %6278 = vmatpush3.bf16.msra.mxu0 %v4325_v33  ;;  %6279 = vmatprep.mubr.msk.bf16.mxu0 %vm1812_vm15, %v7038_v30  ;;  %v5438_v33 = vld [vmem:[#allocation19] sm:$0xff]  ;;  %v5439_v30 = vld [vmem:[#allocation19 + $0x8] sm:$0xff] }
 0xa40   : > { %6283 = vmatprep.subr.bf16.mxu0 %v4397_v15 }
 0xa4a   : > { %6280 = vmatmul.mubr.msk.bf16.vlgmr.msra.gmra.mrb[12].mxu0 %vm1812_vm15, %v7039_v50  ;;  %v5443_v50 = vld [vmem:[#allocation21 + $0x8] sm:$0xff] }
 0xa4b   : > { %6284 = vmatpush3.bf16.msra.mxu0 %v4397_v15  ;;  %6285 = vmatprep.mubr.msk.bf16.mxu0 %vm1812_vm15, %v7040_v13  ;;  %v5440_v15 = vld [vmem:[#allocation19 + $0x10] sm:$0xff] }
 0xa4c   : > { %6289 = vmatprep.subr.bf16.mxu0 %v4469_v60  ;;  %v5444_v13 = vld [vmem:[#allocation21 + $0x10] sm:$0xff] }
 0xa56   : > { %6286 = vmatmul.mubr.msk.bf16.vlgmr.msra.gmra.mrb[12].mxu0 %vm1812_vm15, %v7041_v37  ;;  %v5445_v37 = vld [vmem:[#allocation21 + $0x18] sm:$0xff] }
 0xa57   : > { %6290 = vmatpush3.bf16.msra.mxu0 %v4469_v60  ;;  %6291 = vmatprep.mubr.msk.bf16.mxu0 %vm1812_vm15, %v7042_v1  ;;  %v5441_v60 = vld [vmem:[#allocation19 + $0x18] sm:$0xff] }
 0xa58   : > { %6535 = vmatprep.subr.bf16.mxu0 %v6534_v58 }
 0xa62   : > { %6292 = vmatmul.mubr.msk.bf16.vlgmr.msra.gmra.mrb[12].mxu0 %vm1812_vm15, %v7043_v56  ;;  %vm4792_vm15 = vcmask 261120  }
 0xa63   : > { %6537 = vmatpush3.bf16.msra.mxu0 %v6534_v58  ;;  %6315 = vmatprep.mubr.msk.bf16.mxu1 %vm4792_vm15, %v7044_v10 }
 0xa64   : > { %6539 = vmatprep.subr.bf16.mxu0 %v6538_v16 }
 0xa67   : > { %6541 = vmatpush3.bf16.msra.mxu0 %v6538_v16 }
 0xa68   : > { %6303 = vmatprep.subr.msk.mxu0 %vm2027_vm4, %v4634_v9 }
 0xa6b   : > { %6304 = vmatpush3.msk.msra.mxu0 %vm2027_vm4, %v4634_v9  ;;  %v7061_v9 = vld [vmem:[#allocation18 + $0x88] sm:$0xff]   ;;  %vm7622_vm4 = vmmov 0  }
 0xb35   : > { %v6293_v44 = vpop.f32.mrb[12].mxu0 }
 0xb36   : > { %v4511_v40 = vpop.f32.mrb[13].mxu0  ;;  %v4560_v6 = vmul.f32 %v6293_v44, %v4551_v0  ;;  %v7048_v0 = vld [vmem:[#allocation18 + $0x20] sm:$0xff]  }
 0xb37   : > { %v4558_v48 = vmul.f32 %v4541_v36, %v4511_v40  ;;  %v6294_v38 = vpop.f32.mrb[14].mxu0  ;;  %v7045_v36 = vld [vmem:[#allocation18 + $0x18] sm:$0xff]   ;;  %v7049_v40 = vld [vmem:[#allocation18 + $0x28] sm:$0xff]  }
 0xb38   : > { %v4514_v59 = vpop.f32.mrb[15].mxu0  ;;  %v4561_v41 = vmul.f32 %v6294_v38, %v4556_v7  ;;  %v4584_v53 = vadd.f32 %v4575_v2, %v4560_v6  ;;  %v7050_v6 = vld [vmem:[#allocation18 + $0x30] sm:$0xff]   ;;  %v7056_v2 = vld [vmem:[#allocation18 + $0x60] sm:$0xff]  }
 0xb39   : > { %v4582_v17 = vadd.f32 %v4565_v4, %v4558_v48  ;;  %v4559_v29 = vmul.f32 %v4546_v28, %v4514_v59  ;;  %v7046_v28 = vld [vmem:[#allocation18] sm:$0xff]   ;;  %v7051_v59 = vld [vmem:[#allocation18 + $0x38] sm:$0xff]  }
 0xb3a   : > { %v4585_v11 = vadd.f32 %v4580_v12, %v4561_v41  ;;  %v4588_v32 = vmax.f32 %v4584_v53, 0.0  ;;  %v7054_v41 = vld [vmem:[#allocation18 + $0x50] sm:$0xff]  }
 0xb3b   : > { %v4586_v8 = vmax.f32 %v4582_v17, 0.0  ;;  %v4583_v5 = vadd.f32 %v4570_v45, %v4559_v29  ;;  %v7047_v45 = vld [vmem:[#allocation18 + $0x8] sm:$0xff]  }
 0xb3c   : > { %v4589_v51 = vmax.f32 %v4585_v11, 0.0  ;;  %v7053_v17 = vld [vmem:[#allocation18 + $0x48] sm:$0xff]  }
 0xb3d   : > { %v4587_v14 = vmax.f32 %v4583_v5, 0.0  ;;  %4594 = vrot.lane.b32.xlu0 %v4586_v8, %s7572_s7  ;;  %v7058_v5 = vld [vmem:[#allocation18 + $0x70] sm:$0xff]  }
 0xb3f   : > { %4596 = vrot.lane.b32.xlu1 %v4587_v14, %s7572_s7 }
 0xb41   : > { %4598 = vrot.lane.b32.xlu0 %v4588_v32, %s7572_s7 }
 0xb43   : > { %4600 = vrot.lane.b32.xlu1 %v4589_v51, %s7572_s7 }
 0xbaf   : > { %v4595_v55 = vpop.permute.xlu0 %4594 }
 0xbb0   : > { %v4606_v21 = vmax.f32 %v4586_v8, %v4595_v55  ;;  %v7057_v8 = vld [vmem:[#allocation18 + $0x68] sm:$0xff]  }
 0xbb1   : > { %v4597_v20 = vpop.permute.xlu1 %4596 }
 0xbb2   : > { %v4607_v42 = vmax.f32 %v4587_v14, %v4597_v20  ;;  %4614 = vrot.lane.b32.xlu0 %v4606_v21, %s7616_s28  ;;  %v7059_v14 = vld [vmem:[#allocation18 + $0x78] sm:$0xff]  }
 0xbb3   : > { %v4599_v18 = vpop.permute.xlu0 %4598 }
 0xbb4   : > { %v4608_v23 = vmax.f32 %v4588_v32, %v4599_v18  ;;  %4616 = vrot.lane.b32.xlu1 %v4607_v42, %s7616_s28  ;;  %v7060_v32 = vld [vmem:[#allocation18 + $0x80] sm:$0xff]  }
 0xbb5   : > { %v4601_v25 = vpop.permute.xlu1 %4600 }
 0xbb6   : > { %v4609_v35 = vmax.f32 %v4589_v51, %v4601_v25  ;;  %4618 = vrot.lane.b32.xlu0 %v4608_v23, %s7616_s28 }
 0xbb8   : > { %4620 = vrot.lane.b32.xlu1 %v4609_v35, %s7616_s28 }
 0xc24   : > { %v4615_v34 = vpop.permute.xlu0 %4614 }
 0xc25   : > { %v4626_v47 = vmax.f32 %v4606_v21, %v4615_v34 }
 0xc26   : > { %v4617_v61 = vpop.permute.xlu1 %4616 }
 0xc27   : > { %v4627_v46 = vmax.f32 %v4607_v42, %v4617_v61  ;;  %6305 = vmatprep.mubr.msk.f32.mxu0 %vm4635_vm0, %v4626_v47 }
 0xc28   : > { %v4619_v22 = vpop.permute.xlu0 %4618 }
 0xc29   : > { %v4628_v27 = vmax.f32 %v4608_v23, %v4619_v22  ;;  %6306 = vmatmul.mubr.msk.f32.vlgmr.msra.gmra.mrb[10].mxu0 %vm4635_vm0, %v4627_v46 }
 0xc2a   : > { %v4621_v31 = vpop.permute.xlu1 %4620 }
 0xc2b   : > { %v4629_v62 = vmax.f32 %v4609_v35, %v4621_v31  ;;  %6308 = vmatprep.mubr.msk.f32.mxu0 %vm4635_vm0, %v4628_v27 }
 0xc2d   : > { %6309 = vmatmul.mubr.msk.f32.gmra.mrb[16].mxu0 %vm4635_vm0, %v4629_v62 }
 0xcfc   : > { %v6307_v57 = vpop.f32.mrb[10].mxu0 }
 0xcfd   : > { %v4717_v43 = vpop.f32.mrb[11].mxu0 }
 0xcfe   : > { %v4736_v19 = vpack.c.bf16 %v6307_v57, %v4717_v43 }
 0xd00   : > { %4786 = vrot.lane.b32.xlu0 %v4736_v19, %s7572_s7  ;;  %v6310_v39 = vpop.f32.mrb[16].mxu0 }
 0xd01   : > { %v4727_v26 = vpop.f32.mrb[17].mxu0 }
 0xd02   : > { %v4737_v63 = vpack.c.bf16 %v6310_v39, %v4727_v26 }
 0xd04   : > { %4923 = vrot.lane.b32.xlu0 %v4736_v19, %s7573_s9  ;;  %4788 = vrot.lane.b32.xlu1 %v4737_v63, %s7572_s7 }
 0xd08   : > { %4998 = vrot.lane.b32.xlu0 %v4736_v19, %s7575_s29  ;;  %4925 = vrot.lane.b32.xlu1 %v4737_v63, %s7573_s9 }
 0xd0c   : > { %5073 = vrot.lane.b32.xlu0 %v4736_v19, %s7618_s25  ;;  %5000 = vrot.lane.b32.xlu1 %v4737_v63, %s7575_s29 }
 0xd10   : > { %5148 = vrot.lane.b32.xlu0 %v4736_v19, %s7616_s28  ;;  %5075 = vrot.lane.b32.xlu1 %v4737_v63, %s7618_s25 }
 0xd14   : > { %5223 = vrot.lane.b32.xlu0 %v4736_v19, %s7617_s4  ;;  %5150 = vrot.lane.b32.xlu1 %v4737_v63, %s7616_s28 }
 0xd18   : > { %5298 = vrot.lane.b32.xlu0 %v4736_v19, %s7619_s5  ;;  %5225 = vrot.lane.b32.xlu1 %v4737_v63, %s7617_s4 }
 0xd1c   : > { %5373 = vrot.lane.b32.xlu0 %v4736_v19, %s7620_s11  ;;  %5300 = vrot.lane.b32.xlu1 %v4737_v63, %s7619_s5 }
 0xd20   : > { %5448 = vperm.xlu0 %6970, %v5438_v33   ;;  %5375 = vrot.lane.b32.xlu1 %v4737_v63, %s7620_s11 }
 0xd24   : > { %5472 = vperm.xlu0 %6970, %v5442_v3   ;;  %5453 = vperm.xlu1 %6969, %v5439_v30  }
 0xd28   : > { %5458 = vperm.xlu0 %6970, %v5440_v15   ;;  %5477 = vperm.xlu1 %6969, %v5443_v50  }
 0xd2c   : > { %5482 = vperm.xlu0 %6970, %v5444_v13   ;;  %5463 = vperm.xlu1 %6969, %v5441_v60  }
 0xd30   : > { %5487 = vperm.xlu1 %6969, %v5445_v37  }
 0xd72   : > { %v4787_v1 = vpop.permute.xlu0 %4786 }
 0xd73   : > { %6311 = vmatprep.subr.bf16.mxu1 %v4787_v1 }
 0xd74   : > { %6312 = vmatpush3.bf16.msra.mxu1 %v4787_v1 }
 0xd76   : > { %v4789_v56 = vpop.permute.xlu1 %4788  ;;  %v4924_v4 = vpop.permute.xlu0 %4923 }
 0xd77   : > { %6313 = vmatprep.subr.bf16.mxu1 %v4789_v56 }
 0xd78   : > { %6314 = vmatpush3.bf16.msra.mxu1 %v4789_v56 }
 0xd79   : > { %6319 = vmatprep.subr.bf16.mxu1 %v4736_v19 }
 0xd7a   : > { %v4926_v44 = vpop.permute.xlu1 %4925  ;;  %v4999_v7 = vpop.permute.xlu0 %4998 }
 0xd7b   : > { %6316 = vmatmul.mubr.msk.bf16.vlgmr.msra.gmra.mrb[4].mxu1 %vm4792_vm15, %v7045_v36 }
 0xd7c   : > { %6320 = vmatpush3.bf16.msra.mxu1 %v4736_v19  ;;  %6323 = vmatprep.mubr.msk.bf16.mxu1 %vm4792_vm15, %v7046_v28 }
 0xd7d   : > { %6321 = vmatprep.subr.bf16.mxu1 %v4737_v63 }
 0xd7e   : > { %v5001_v48 = vpop.permute.xlu1 %5000  ;;  %v5074_v38 = vpop.permute.xlu0 %5073 }
 0xd80   : > { %6322 = vmatpush3.bf16.msra.mxu1 %v4737_v63 }
 0xd81   : > { %6327 = vmatprep.subr.bf16.mxu1 %v4924_v4 }
 0xd82   : > { %v5076_v49 = vpop.permute.xlu1 %5075  ;;  %v5149_v52 = vpop.permute.xlu0 %5148 }
 0xd86   : > { %v5151_v29 = vpop.permute.xlu1 %5150  ;;  %v5224_v58 = vpop.permute.xlu0 %5223 }
 0xd87   : > { %6324 = vmatmul.mubr.msk.bf16.vlgmr.msra.gmra.mrb[4].mxu1 %vm4792_vm15, %v7047_v45 }
 0xd88   : > { %6328 = vmatpush3.bf16.msra.mxu1 %v4924_v4  ;;  %6331 = vmatprep.mubr.msk.bf16.mxu1 %vm4792_vm15, %v7048_v0 }
 0xd89   : > { %6329 = vmatprep.subr.bf16.mxu1 %v4926_v44 }
 0xd8a   : > { %v5226_v16 = vpop.permute.xlu1 %5225  ;;  %v5299_v53 = vpop.permute.xlu0 %5298 }
 0xd8c   : > { %6330 = vmatpush3.bf16.msra.mxu1 %v4926_v44  ;;  %v7062_v44 = vld [vmem:[#allocation22] sm:$0xff]  }
 0xd8d   : > { %6335 = vmatprep.subr.bf16.mxu1 %v4999_v7  ;;  %6387 = vmatprep.mubr.msk.bf16.mxu0 %vm4792_vm15, %v7062_v44 }
 0xd8e   : > { %v5301_v12 = vpop.permute.xlu1 %5300  ;;  %v5374_v11 = vpop.permute.xlu0 %5373 }
 0xd92   : > { %v5376_v51 = vpop.permute.xlu1 %5375 }
 0xd93   : > { %6332 = vmatmul.mubr.msk.bf16.vlgmr.msra.gmra.mrb[4].mxu1 %vm4792_vm15, %v7049_v40  ;;  %v5548_v40 = vld [vmem:[#allocation24] sm:$0xff] }
 0xd94   : > { %6336 = vmatpush3.bf16.msra.mxu1 %v4999_v7  ;;  %6339 = vmatprep.mubr.msk.bf16.mxu1 %vm4792_vm15, %v7050_v6  ;;  %v5549_v7 = vld [vmem:[#allocation24 + $0x8] sm:$0xff]  ;;  %v5551_v6 = vld [vmem:[#allocation24 + $0x18] sm:$0xff] }
 0xd95   : > { %6337 = vmatprep.subr.bf16.mxu1 %v5001_v48 }
 0xd98   : > { %6338 = vmatpush3.bf16.msra.mxu1 %v5001_v48  ;;  %v5550_v48 = vld [vmem:[#allocation24 + $0x10] sm:$0xff] }
 0xd99   : > { %6343 = vmatprep.subr.bf16.mxu1 %v5074_v38 }
 0xd9f   : > { %6340 = vmatmul.mubr.msk.bf16.vlgmr.msra.gmra.mrb[4].mxu1 %vm4792_vm15, %v7051_v59  ;;  %v5449_v55 = vpop.permute.xlu0 %5448  ;;  %v5552_v59 = vld [vmem:[#allocation24 + $0x20] sm:$0xff] }
 0xda0   : > { %6344 = vmatpush3.bf16.msra.mxu1 %v5074_v38  ;;  %6347 = vmatprep.mubr.msk.bf16.mxu1 %vm4792_vm15, %v7052_v54  ;;  %v5553_v38 = vld [vmem:[#allocation24 + $0x28] sm:$0xff]  ;;  %v5555_v54 = vld [vmem:[#allocation24 + $0x38] sm:$0xff] }
 0xda1   : > { %6345 = vmatprep.subr.bf16.mxu1 %v5076_v49 }
 0xda3   : > { %v5454_v21 = vpop.permute.xlu1 %5453  ;;  %v5473_v20 = vpop.permute.xlu0 %5472 }
 0xda4   : > { %6346 = vmatpush3.bf16.msra.mxu1 %v5076_v49  ;;  %v5554_v49 = vld [vmem:[#allocation24 + $0x30] sm:$0xff] }
 0xda5   : > { %6351 = vmatprep.subr.bf16.mxu1 %v5149_v52 }
 0xda7   : > { %v5478_v42 = vpop.permute.xlu1 %5477  ;;  %v5459_v18 = vpop.permute.xlu0 %5458 }
 0xdab   : > { %6348 = vmatmul.mubr.msk.bf16.vlgmr.msra.gmra.mrb[4].mxu1 %vm4792_vm15, %v7053_v17  ;;  %v5464_v23 = vpop.permute.xlu1 %5463  ;;  %v5483_v47 = vpop.permute.xlu0 %5482 }
 0xdac   : > { %6352 = vmatpush3.bf16.msra.mxu1 %v5149_v52  ;;  %6355 = vmatprep.mubr.msk.bf16.mxu1 %vm4792_vm15, %v7054_v41 }
 0xdad   : > { %6353 = vmatprep.subr.bf16.mxu1 %v5151_v29 }
 0xdaf   : > { %v5488_v62 = vpop.permute.xlu1 %5487 }
 0xdb0   : > { %6354 = vmatpush3.bf16.msra.mxu1 %v5151_v29 }
 0xdb1   : > { %6359 = vmatprep.subr.bf16.mxu1 %v5224_v58 }
 0xdb7   : > { %6356 = vmatmul.mubr.msk.bf16.vlgmr.msra.gmra.mrb[4].mxu1 %vm4792_vm15, %v7055_v24 }
 0xdb8   : > { %6360 = vmatpush3.bf16.msra.mxu1 %v5224_v58  ;;  %6363 = vmatprep.mubr.msk.bf16.mxu1 %vm4792_vm15, %v7056_v2 }
 0xdb9   : > { %6361 = vmatprep.subr.bf16.mxu1 %v5226_v16 }
 0xdbc   : > { %6362 = vmatpush3.bf16.msra.mxu1 %v5226_v16 }
 0xdbd   : > { %6367 = vmatprep.subr.bf16.mxu1 %v5299_v53 }
 0xdc3   : > { %6364 = vmatmul.mubr.msk.bf16.vlgmr.msra.gmra.mrb[4].mxu1 %vm4792_vm15, %v7057_v8 }
 0xdc4   : > { %6368 = vmatpush3.bf16.msra.mxu1 %v5299_v53  ;;  %6371 = vmatprep.mubr.msk.bf16.mxu1 %vm4792_vm15, %v7058_v5 }
 0xdc5   : > { %6369 = vmatprep.subr.bf16.mxu1 %v5301_v12 }
 0xdc8   : > { %6370 = vmatpush3.bf16.msra.mxu1 %v5301_v12 }
 0xdc9   : > { %6375 = vmatprep.subr.bf16.mxu1 %v5374_v11 }
 0xdcf   : > { %6372 = vmatmul.mubr.msk.bf16.vlgmr.msra.gmra.mrb[4].mxu1 %vm4792_vm15, %v7059_v14  ;;  %v7063_v14 = vld [vmem:[#allocation22 + $0x8] sm:$0xff]  }
 0xdd0   : > { %6376 = vmatpush3.bf16.msra.mxu1 %v5374_v11  ;;  %6379 = vmatprep.mubr.msk.bf16.mxu1 %vm4792_vm15, %v7060_v32  ;;  %v7064_v32 = vld [vmem:[#allocation22 + $0x10] sm:$0xff]  }
 0xdd1   : > { %6377 = vmatprep.subr.bf16.mxu1 %v5376_v51 }
 0xdd4   : > { %6378 = vmatpush3.bf16.msra.mxu1 %v5376_v51  ;;  %v7065_v51 = vld [vmem:[#allocation22 + $0x18] sm:$0xff]  }
 0xddb   : > { %6380 = vmatmul.mubr.msk.bf16.vlgmr.msra.gmra.mrb[4].mxu1 %vm4792_vm15, %v7061_v9  ;;  %v7621_v9 = vmov 0.0  }
 0xeae   : > { %v6381_v25 = vpop.f32.mrb[4].mxu1 }
 0xeaf   : > { %v5468_v35 = vmul.f32 %v6381_v25, %v5459_v18  ;;  %v5419_v34 = vpop.f32.mrb[5].mxu1 }
 0xeb0   : > { %v5466_v61 = vmul.f32 %v5449_v55, %v5419_v34  ;;  %v6382_v46 = vpop.f32.mrb[6].mxu1 }
 0xeb1   : > { %v5492_v22 = vadd.f32 %v5483_v47, %v5468_v35  ;;  %v5469_v27 = vmul.f32 %v6382_v46, %v5464_v23  ;;  %v5422_v31 = vpop.f32.mrb[7].mxu1 }
 0xeb2   : > { %v5490_v10 = vadd.f32 %v5473_v20, %v5466_v61  ;;  %v5467_v57 = vmul.f32 %v5454_v21, %v5422_v31 }
 0xeb3   : > { %v5493_v43 = vadd.f32 %v5488_v62, %v5469_v27  ;;  %v5496_v39 = vmax.f32 %v5492_v22, 0.0 }
 0xeb4   : > { %v5491_v19 = vadd.f32 %v5478_v42, %v5467_v57  ;;  %v5494_v63 = vmax.f32 %v5490_v10, 0.0 }
 0xeb5   : > { %v5497_v26 = vmax.f32 %v5493_v43, 0.0 }
 0xeb6   : > { %v5495_v33 = vmax.f32 %v5491_v19, 0.0 }
 0xeb7   : > { %v6986_v3 = vpack.i.bf16 %v5497_v26, %v5496_v39 }
 0xeb8   : > { %v6981_v30 = vpack.i.bf16 %v5495_v33, %v5494_v63 }
 0xeb9   : > { %6987 = vrot.lane.b32.xlu1 %v6986_v3, %s7572_s7 }
 0xeba   : > { %6982 = vrot.lane.b32.xlu0 %v6981_v30, %s7572_s7 }
 0xf2b   : > { %v6988_v15 = vpop.permute.xlu1 %6987 }
 0xf2c   : > { %v6990_v50 = vunpack.i.h.bf16 %v6988_v15  ;;  %v6989_v13 = vunpack.i.l.bf16 %v6988_v15  ;;  %v6983_v60 = vpop.permute.xlu0 %6982 }
 0xf2d   : > { %v6985_v37 = vunpack.i.h.bf16 %v6983_v60  ;;  %v6984_v1 = vunpack.i.l.bf16 %v6983_v60 }
 0xf2e   : > { %v5517_v56 = vmax.f32 %v5497_v26, %v6990_v50  ;;  %v5516_v36 = vmax.f32 %v5496_v39, %v6989_v13 }
 0xf2f   : > { %v5515_v28 = vmax.f32 %v5495_v33, %v6985_v37  ;;  %v5514_v4 = vmax.f32 %v5494_v63, %v6984_v1 }
 0xf30   : > { %v6996_v45 = vpack.i.bf16 %v5517_v56, %v5516_v36 }
 0xf31   : > { %v6991_v0 = vpack.i.bf16 %v5515_v28, %v5514_v4 }
 0xf32   : > { %6997 = vrot.lane.b32.xlu1 %v6996_v45, %s7575_s29  ;;  %v5705_v45 = vld [vmem:[%s9432_s18] sm:$0xf] }
 0xf33   : > { %6992 = vrot.lane.b32.xlu0 %v6991_v0, %s7575_s29  ;;  %s9431_s29 = sld [smem:[#allocation71_spill]] }
 0xf36   : > { %5563 = vperm.xlu1 %6969, %v5549_v7  }
 0xf37   : > { %5558 = vperm.xlu0 %6970, %v5548_v40  }
 0xf39   : > { %v5706_v52 = vld [vmem:[%s9431_s29] sm:$0xff] }
 0xf3a   : > { %5573 = vperm.xlu1 %6969, %v5551_v6  }
 0xf3b   : > { %5568 = vperm.xlu0 %6970, %v5550_v48  }
 0xf3e   : > { %5583 = vperm.xlu1 %6969, %v5553_v38  }
 0xf3f   : > { %5578 = vperm.xlu0 %6970, %v5552_v59  }
 0xf42   : > { %5593 = vperm.xlu1 %6969, %v5555_v54  }
 0xf43   : > { %5588 = vperm.xlu0 %6970, %v5554_v49  }
 0xf47   : > { %5709 = vperm.xlu0 %6970, %v5706_v52  }
 0xfa4   : > { %v6998_v17 = vpop.permute.xlu1 %6997 }
 0xfa5   : > { %v7000_v41 = vunpack.i.h.bf16 %v6998_v17  ;;  %v6999_v29 = vunpack.i.l.bf16 %v6998_v17  ;;  %v6993_v58 = vpop.permute.xlu0 %6992 }
 0xfa6   : > { %v6995_v24 = vunpack.i.h.bf16 %v6993_v58  ;;  %v6994_v2 = vunpack.i.l.bf16 %v6993_v58 }
 0xfa7   : > { %v5537_v16 = vmax.f32 %v5517_v56, %v7000_v41  ;;  %v5536_v53 = vmax.f32 %v5516_v36, %v6999_v29 }
 0xfa8   : > { %v5535_v8 = vmax.f32 %v5515_v28, %v6995_v24  ;;  %v5534_v5 = vmax.f32 %v5514_v4, %v6994_v2 }
 0xfa9   : > { %v5539_v11 = vpack.c.bf16 %v5537_v16, %v5536_v53 }
 0xfaa   : > { %v5538_v12 = vpack.c.bf16 %v5535_v8, %v5534_v5 }
 0xfac   : > { %6383 = vmatprep.subr.bf16.mxu0 %v5538_v12 }
 0xfad   : > { %6384 = vmatpush3.bf16.msra.mxu0 %v5538_v12 }
 0xfae   : > { %6385 = vmatprep.subr.bf16.mxu0 %v5539_v11 }
 0xfb1   : > { %6386 = vmatpush3.bf16.msra.mxu0 %v5539_v11 }
 0xfb2   : > { %6395 = vmatprep.subr.bf16.mxu0 %v7621_v9 }
 0xfb4   : > { %6388 = vmatmul.mubr.msk.bf16.vlgmr.msra.gmra.mrb[20].mxu0 %vm4792_vm15, %v7063_v14 }
 0xfb5   : > { %6391 = vmatprep.mubr.msk.bf16.mxu0 %vm4792_vm15, %v7064_v32  ;;  %v5564_v21 = vpop.permute.xlu1 %5563 }
 0xfb6   : > { %v5559_v55 = vpop.permute.xlu0 %5558 }
 0xfb9   : > { %v5574_v42 = vpop.permute.xlu1 %5573 }
 0xfba   : > { %v5569_v20 = vpop.permute.xlu0 %5568 }
 0xfbc   : > { %6392 = vmatmul.mubr.msk.bf16.gmra.mrb[24].mxu0 %vm4792_vm15, %v7065_v51 }
 0xfbd   : > { %6403 = vmatprep.mubr.msk.bf16.mxu0 %vm7622_vm4, %v7621_v9  ;;  %v5584_v22 = vpop.permute.xlu1 %5583 }
 0xfbe   : > { %v5579_v35 = vpop.permute.xlu0 %5578 }
 0xfc1   : > { %v5594_v3 = vpop.permute.xlu1 %5593 }
 0xfc2   : > { %v5589_v19 = vpop.permute.xlu0 %5588 }
 0xfc6   : > { %v5710_v0 = vpop.permute.xlu0 %5709 }
0x1087   : > { %v6389_v18 = vpop.f32.mrb[20].mxu0 }
0x1088   : > { %v5671_v23 = vadd.f32 %v6389_v18, %v5569_v20  ;;  %v5662_v25 = vpop.f32.mrb[21].mxu0 }
0x1089   : > { %v5663_v34 = vadd.f32 %v5662_v25, %v5559_v55  ;;  %v6390_v47 = vpop.f32.mrb[22].mxu0 }
0x108a   : > { %v5674_v61 = vadd.f32 %v6390_v47, %v5574_v42  ;;  %v5665_v46 = vpop.f32.mrb[23].mxu0  ;;  %v5695_v31 = vmax.f32 %v5671_v23, 0.0 }
0x108b   : > { %v5666_v27 = vadd.f32 %v5665_v46, %v5564_v21  ;;  %v5693_v10 = vmax.f32 %v5663_v34, 0.0 }
0x108c   : > { %v5696_v62 = vmax.f32 %v5674_v61, 0.0 }
0x108d   : > { %v5694_v57 = vmax.f32 %v5666_v27, 0.0 }
0x108e   : > { %v5702_v43 = vpack.c.bf16 %v5696_v62, %v5695_v31 }
0x108f   : > { %v5701_v39 = vpack.c.bf16 %v5694_v57, %v5693_v10  ;;  %v6393_v26 = vpop.f32.mrb[24].mxu0 }
0x1090   : > { %v5687_v63 = vadd.f32 %v6393_v26, %v5589_v19  ;;  %v5678_v33 = vpop.f32.mrb[25].mxu0 }
0x1091   : > { %v5679_v30 = vadd.f32 %v5678_v33, %v5579_v35  ;;  %v6394_v15 = vpop.f32.mrb[26].mxu0  ;;  %6396 = vmatpush3.bf16.msra.mxu0 %v5701_v39 }
0x1092   : > { %v5690_v50 = vadd.f32 %v6394_v15, %v5594_v3  ;;  %v5681_v13 = vpop.f32.mrb[27].mxu0  ;;  %6397 = vmatprep.subr.bf16.mxu0 %v7621_v9  ;;  %v5699_v37 = vmax.f32 %v5687_v63, 0.0 }
0x1093   : > { %v5682_v60 = vadd.f32 %v5681_v13, %v5584_v22  ;;  %v5697_v56 = vmax.f32 %v5679_v30, 0.0 }
0x1094   : > { %v5700_v1 = vmax.f32 %v5690_v50, 0.0 }
0x1095   : > { %v5698_v36 = vmax.f32 %v5682_v60, 0.0  ;;  %6398 = vmatpush3.bf16.msra.mxu0 %v5702_v43 }
0x1096   : > { %v5704_v28 = vpack.c.bf16 %v5700_v1, %v5699_v37  ;;  %6399 = vmatprep.subr.bf16.mxu0 %v7621_v9 }
0x1097   : > { %v5703_v4 = vpack.c.bf16 %v5698_v36, %v5697_v56 }
0x1099   : > { %6400 = vmatpush3.bf16.msra.mxu0 %v5703_v4 }
0x109a   : > { %6401 = vmatprep.subr.bf16.mxu0 %v7621_v9 }
0x109d   : > { %6402 = vmatpush3.bf16.msra.mxu0 %v5704_v28 }
0x10a0   : > { %6404 = vmatmul.mubr.msk.bf16.vlgmr.msra.gmra.mrb[28].mxu0 %vm1470_vm7, %v5705_v45 }
0x1173   : > { %v5749_v44 = vpop.f32.mrb[28].mxu0 }
0x1174   : > { %v5750_v7 = vadd.f32 %v5749_v44, %v5710_v0  ;;  %v6405_v40 = vpop.f32.mrb[29].mxu0 }
0x1175   : > { %v5752_v6 = vpop.f32.mrb[30].mxu0 }
0x1176   : > { %5756 = vst.msk [vmem:[%s836_s3] sm:$0x1f] %vm5755_vm5, %v5750_v7  ;;  %v6406_v48 = vpop.f32.mrb[31].mxu0 }
0x1177 PF: > { %s9434_s12 = sld [smem:[#allocation33_spill]] }
0x117d   : > { %s38_s1 = sadd.s32 1, %s9434_s12  }
0x117e   : > { %p35_p2 = scmp.ge.s32.totalorder %s38_s1, 4  }
0x1180   :  { %37 = sbr.rel (!%p35_p2) target bundleno = 22 (0x16), region = 191 }
0x1187   :  { %5776 = vsyncpa [#allocation3], 1 }
0x1188   :  { %5778 = vsyncpa [#allocation3 + $0x1], 1 }
0x1189   :  { %5779 = vsyncpa [#allocation5], 1 }
0x118a   :  { %5780 = vsyncpa [#allocation8], 1 }
0x118b   :  { %5781 = vsyncpa [#allocation11], 1 }
0x118c   :  { %5782 = vsyncpa [#allocation14], 1 }
0x118d   :  { %5783 = vsyncpa [#allocation17], 1 }
0x118e   :  { %5784 = vsyncpa [#allocation20], 1 }
0x118f   :  { %5785 = vsyncpa [#allocation23], 1 }

</bundles_post_ra>
